<compile_context>
chip_gen: v5e
topology: v5e:2x2
jax: 0.10.0
libtpu: 0.0.40
codegen_flags: <defaults>
</compile_context>

<pallas_src>
import math
from functools import partial

import numpy as np
import jax
import jax.numpy as jnp
from jax.experimental import pallas as pl
from jax.experimental.pallas import tpu as pltpu


# ---------------------------------------------------------------------------
# Pallas kernels
# ---------------------------------------------------------------------------
def _matmul_bias_relu_kernel(x_ref, w_ref, b_ref, o_ref):
    # o = relu(x @ w + b); bf16 operands, f32 accumulate.
    acc = jnp.dot(x_ref[...], w_ref[...], preferred_element_type=jnp.float32)
    acc = acc + b_ref[...]
    o_ref[...] = jnp.maximum(acc, 0.0).astype(o_ref.dtype)


def _matmul_bias_kernel(x_ref, w_ref, b_ref, o_ref):
    # o = x @ w + b; bf16 operands, f32 accumulate (phase-decomposed up-conv).
    acc = jnp.dot(x_ref[...], w_ref[...], preferred_element_type=jnp.float32)
    o_ref[...] = (acc + b_ref[...]).astype(o_ref.dtype)


def _emb_fc_kernel(flat_ref, ew_ref, eb_ref, g1_ref, b1_ref,
                   fw_ref, fb_ref, g2_ref, b2_ref,
                   emb_out_ref, fc_out_ref):
    # embedding Linear (bf16 matmul, f32 acc) -> emitted as-is (module output)
    emb = jnp.dot(flat_ref[...], ew_ref[...],
                  preferred_element_type=jnp.float32) + eb_ref[...]
    emb_out_ref[...] = emb

    # BatchNorm1d(32, eps=0.8) in train mode (biased batch stats), f32 math.
    m1 = jnp.mean(emb, axis=0, keepdims=True)
    v1 = jnp.mean((emb - m1) ** 2, axis=0, keepdims=True)
    x = (emb - m1) * jax.lax.rsqrt(v1 + 0.8) * g1_ref[...] + b1_ref[...]
    x = jnp.maximum(x, 0.0)

    # Linear(32, down_dim): bf16 operands, f32 accumulate.
    y = jnp.dot(x.astype(fw_ref.dtype), fw_ref[...],
                preferred_element_type=jnp.float32) + fb_ref[...]

    # BatchNorm1d(down_dim, eps=1e-5) + ReLU, f32 math, bf16 store (lane-dense).
    m2 = jnp.mean(y, axis=0, keepdims=True)
    v2 = jnp.mean((y - m2) ** 2, axis=0, keepdims=True)
    y = (y - m2) * jax.lax.rsqrt(v2 + 1e-5) * g2_ref[...] + b2_ref[...]
    fc_out_ref[...] = jnp.maximum(y, 0.0).astype(fc_out_ref.dtype)


# ---------------------------------------------------------------------------
# Tiny XLA layout glue (runs per forward; pure pad/slice/reshape/transpose)
# ---------------------------------------------------------------------------
def _im2col_s2(x):
    """NCHW (N,C,H,W), k=3, stride=2, pad=1 -> (N*Ho*Wo, C*9), cols = c*9 + tap."""
    N, C, H, W = x.shape
    xp = jnp.pad(x, ((0, 0), (0, 0), (1, 1), (1, 1)))
    Ho, Wo = H // 2, W // 2
    cols = []
    for i in range(3):
        for j in range(3):
            cols.append(xp[:, :, i:i + 2 * Ho:2, j:j + 2 * Wo:2])
    cols = jnp.stack(cols, axis=2)                       # (N, C, 9, Ho, Wo)
    cols = cols.reshape(N, C * 9, Ho * Wo).transpose(0, 2, 1)
    return cols.reshape(N * Ho * Wo, C * 9)


def _im2col_up(fmap):
    """NHWC (N,ds,ds,64) 3x3/s1/p1 patches -> (N*ds*ds, 9*64), cols = tap*64 + c."""
    N, H, W, C = fmap.shape
    xp = jnp.pad(fmap, ((0, 0), (1, 1), (1, 1), (0, 0)))
    cols = jnp.concatenate(
        [xp[:, a:a + H, b:b + W, :] for a in range(3) for b in range(3)], axis=-1)
    return cols.reshape(N * H * W, 9 * C)


# ---------------------------------------------------------------------------
# One-time parameter preparation (hoisted out of the forward pass)
# ---------------------------------------------------------------------------
def _phase_weight(w_up):
    """conv_up_w (co,64,3,3) -> (9*64, 4*co) GEMM weight for the phase-decomposed
    (sub-pixel) formulation of nearest-2x upsample + 3x3/s1/p1 conv."""
    co = w_up.shape[0]
    wph = np.zeros((9, 64, 4, co), np.float32)        # [tap=(r+1)*3+(s+1), c, phase, o]
    for py in range(2):
        for px in range(2):
            ph = py * 2 + px
            for ky in range(3):
                r = -1 if (py == 0 and ky == 0) else (1 if (py == 1 and ky == 2) else 0)
                for kx in range(3):
                    s = -1 if (px == 0 and kx == 0) else (1 if (px == 1 and kx == 2) else 0)
                    t = (r + 1) * 3 + (s + 1)
                    wph[t, :, ph, :] += w_up[:, :, ky, kx].T
    return wph.reshape(9 * 64, 4 * co)


def init_params(key, channels, img_size):
    """Parameters in PyTorch layout (Conv2d OIHW, Linear (out,in))."""
    ds = img_size // 2
    down_dim = 64 * ds * ds
    ks = jax.random.split(key, 4)
    p = {}
    p["conv_down_w"] = 0.05 * jax.random.normal(ks[0], (64, channels, 3, 3), jnp.float32)
    p["conv_down_b"] = jnp.zeros((64,), jnp.float32)
    p["emb_w"] = 0.02 * jax.random.normal(ks[1], (32, down_dim), jnp.float32)
    p["emb_b"] = jnp.zeros((32,), jnp.float32)
    p["bn1_g"] = jnp.ones((32,), jnp.float32)
    p["bn1_b"] = jnp.zeros((32,), jnp.float32)
    p["fc_w"] = 0.05 * jax.random.normal(ks[2], (down_dim, 32), jnp.float32)
    p["fc_b"] = jnp.zeros((down_dim,), jnp.float32)
    p["bn2_g"] = jnp.ones((down_dim,), jnp.float32)
    p["bn2_b"] = jnp.zeros((down_dim,), jnp.float32)
    p["conv_up_w"] = 0.05 * jax.random.normal(ks[3], (channels, 64, 3, 3), jnp.float32)
    p["conv_up_b"] = jnp.zeros((channels,), jnp.float32)
    return p


def prepare_params(params, channels, img_size):
    """One-time weight layout work: reshapes / NCHW->NHWC permutes / bf16 casts /
    phase-weight construction.  Runs once, NOT per forward."""
    ds = img_size // 2
    P = ds * ds
    co = channels
    bf16 = jnp.bfloat16
    f32 = jnp.float32
    q = {}
    # down conv -> im2col GEMM weight (C*9, 64) bf16, bias (1, 64) f32
    q["wd"] = jnp.asarray(params["conv_down_w"]).reshape(64, -1).T.astype(bf16)
    q["bd"] = jnp.asarray(params["conv_down_b"]).reshape(1, 64).astype(f32)
    # embedding Linear: rows permuted NCHW-flat (c*P+p) -> NHWC-flat (p*64+c)
    q["ew"] = (jnp.asarray(params["emb_w"]).reshape(32, 64, P)
               .transpose(2, 1, 0).reshape(P * 64, 32).astype(bf16))
    q["eb"] = jnp.asarray(params["emb_b"]).reshape(1, 32).astype(f32)
    q["g1"] = jnp.asarray(params["bn1_g"]).reshape(1, 32).astype(f32)
    q["b1"] = jnp.asarray(params["bn1_b"]).reshape(1, 32).astype(f32)
    # fc Linear: output columns permuted to NHWC-flat order, bf16
    q["fw"] = (jnp.asarray(params["fc_w"]).reshape(64, P, 32)
               .transpose(2, 1, 0).reshape(32, P * 64).astype(bf16))

    def perm_vec(v):   # NCHW-flat -> NHWC-flat feature order
        return jnp.asarray(v).reshape(64, P).T.reshape(1, P * 64).astype(f32)

    q["fb"] = perm_vec(params["fc_b"])
    q["g2"] = perm_vec(params["bn2_g"])
    q["b2"] = perm_vec(params["bn2_b"])
    # up conv: phase-decomposed GEMM weight (576, 4*co) + tiled bias (1, 4*co)
    q["wu"] = jnp.asarray(_phase_weight(np.asarray(params["conv_up_w"]))).astype(bf16)
    q["bu"] = jnp.tile(jnp.asarray(params["conv_up_b"]).astype(f32), (4,)).reshape(1, 4 * co)
    return q


def _vmem_limit(*nbytes):
    need = 2 * sum(int(b) for b in nbytes) + (4 << 20)
    return int(min(max(need, 32 << 20), 64 << 20))


# ---------------------------------------------------------------------------
# Forward pass
# ---------------------------------------------------------------------------
@partial(jax.jit, static_argnums=(2, 3))
def discriminator_forward(prep, img, channels, img_size):
    N = img.shape[0]
    ds = img_size // 2
    P = ds * ds
    down_dim = 64 * P
    co = channels
    bf16 = jnp.bfloat16
    VMEM = pltpu.MemorySpace.VMEM

    rows = N * P
    rt = math.gcd(rows, 512)          # row tile (rows is always a multiple of 64)

    # ---- call 1: down Conv2d(channels, 64, 3, s=2, p=1) + ReLU -------------
    cols1 = _im2col_s2(img).astype(bf16)                       # (rows, C*9)
    k1 = cols1.shape[1]
    down = pl.pallas_call(
        _matmul_bias_relu_kernel,
        grid=(rows // rt,),
        in_specs=[pl.BlockSpec((rt, k1), lambda r: (r, 0)),
                  pl.BlockSpec((k1, 64), lambda r: (0, 0)),
                  pl.BlockSpec((1, 64), lambda r: (0, 0))],
        out_specs=pl.BlockSpec((rt, 64), lambda r: (r, 0)),
        out_shape=jax.ShapeDtypeStruct((rows, 64), bf16),
        compiler_params=pltpu.CompilerParams(
            dimension_semantics=("parallel",),
            vmem_limit_bytes=_vmem_limit(rt * k1 * 2, k1 * 64 * 2, rt * 64 * 2)),
    )(cols1, prep["wd"], prep["bd"])

    # NHWC-flat view of the feature map: contiguous reshape, zero data movement.
    flat = down.reshape(N, down_dim)

    # ---- call 2: embedding + BN1(eps=0.8) + ReLU + Linear + BN2 + ReLU -----
    emb, fc_act = pl.pallas_call(
        _emb_fc_kernel,
        in_specs=[pl.BlockSpec(memory_space=VMEM)] * 9,
        out_specs=(pl.BlockSpec(memory_space=VMEM),
                   pl.BlockSpec(memory_space=VMEM)),
        out_shape=(jax.ShapeDtypeStruct((N, 32), jnp.float32),
                   jax.ShapeDtypeStruct((N, down_dim), bf16)),
        compiler_params=pltpu.CompilerParams(
            vmem_limit_bytes=_vmem_limit(
                N * down_dim * 2, down_dim * 32 * 2, 32 * down_dim * 2,
                4 * N * down_dim, 2 * N * down_dim, 4 * 4 * down_dim)),
    )(flat, prep["ew"], prep["eb"], prep["g1"], prep["b1"],
      prep["fw"], prep["fb"], prep["g2"], prep["b2"])

    # ---- call 3: Upsample(x2 nearest) + Conv2d(64, co, 3, 1, 1) ------------
    # Phase-decomposed: one GEMM (rows, 576) x (576, 4*co), batch folded into M.
    fmap = fc_act.reshape(N, ds, ds, 64)                       # contiguous NHWC
    cols2 = _im2col_up(fmap)                                   # (rows, 576) bf16
    outp = pl.pallas_call(
        _matmul_bias_kernel,
        grid=(rows // rt,),
        in_specs=[pl.BlockSpec((rt, 576), lambda r: (r, 0)),
                  pl.BlockSpec((576, 4 * co), lambda r: (0, 0)),
                  pl.BlockSpec((1, 4 * co), lambda r: (0, 0))],
        out_specs=pl.BlockSpec((rt, 4 * co), lambda r: (r, 0)),
        out_shape=jax.ShapeDtypeStruct((rows, 4 * co), jnp.float32),
        compiler_params=pltpu.CompilerParams(
            dimension_semantics=("parallel",),
            vmem_limit_bytes=_vmem_limit(rt * 576 * 2, 576 * 4 * co * 2,
                                         rt * 4 * co * 4)),
    )(cols2, prep["wu"], prep["bu"])

    # Interleave the 4 sub-pixel phases back into the (N, co, H, W) image.
    out = (outp.reshape(N, ds, ds, 2, 2, co)
           .transpose(0, 5, 1, 3, 2, 4)
           .reshape(N, co, img_size, img_size))
    return out, emb


if __name__ == "__main__":
    channels, img_size, batch = 4, 16, 2
    key = jax.random.PRNGKey(0)
    kp, kx = jax.random.split(key)
    params = init_params(kp, channels, img_size)
    prep = prepare_params(params, channels, img_size)   # one-time weight layout work
    img = jax.random.normal(kx, (batch, channels, img_size, img_size), jnp.float32)

    out, emb = discriminator_forward(prep, img, channels, img_size)
    jax.block_until_ready((out, emb))

    assert out.shape == (batch, channels, img_size, img_size), out.shape
    assert emb.shape == (batch, 32), emb.shape
    assert out.dtype == jnp.float32 and emb.dtype == jnp.float32
    assert bool(jnp.all(jnp.isfinite(out))) and bool(jnp.all(jnp.isfinite(emb)))
    print("KERNEL_OK")
</pallas_src>

<mosaic_0001>
module attributes {stable_mosaic.version = 11 : i64} {
  func.func @_matmul_bias_relu_kernel(%arg0: i32, %arg1: memref<128x36xbf16, #tpu.memory_space<vmem>>, %arg2: memref<36x64xbf16, #tpu.memory_space<vmem>>, %arg3: memref<1x64xf32, #tpu.memory_space<vmem>>, %arg4: memref<128x64xbf16, #tpu.memory_space<vmem>>) attributes {dimension_semantics = [#tpu.dimension_semantics<parallel>], iteration_bounds = array<i64: 1>, scalar_prefetch = 0 : i64, scratch_operands = 0 : i64, tpu.core_type = #tpu.core_type<tc>, window_params = [{transform_indices = @transform_0, window_bounds = array<i64: 128, 36>}, {pipeline_mode = #tpu.pipeline_mode<synchronous>, transform_indices = @transform_1, window_bounds = array<i64: 36, 64>}, {pipeline_mode = #tpu.pipeline_mode<synchronous>, transform_indices = @transform_2, window_bounds = array<i64: 1, 64>}, {transform_indices = @transform_3, window_bounds = array<i64: 128, 64>}]} {
    %c0 = arith.constant 0 : index
    %c0_0 = arith.constant 0 : index
    %0 = vector.load %arg1[%c0, %c0_0] : memref<128x36xbf16, #tpu.memory_space<vmem>>, vector<128x36xbf16>
    %c0_1 = arith.constant 0 : index
    %c0_2 = arith.constant 0 : index
    %1 = vector.load %arg2[%c0_1, %c0_2] : memref<36x64xbf16, #tpu.memory_space<vmem>>, vector<36x64xbf16>
    %cst = arith.constant dense<0.000000e+00> : vector<128x64xf32>
    %2 = tpu.matmul %0, %1, %cst {dimension_numbers = #tpu.dot_dimension_numbers<[1], [0], [0], [1], [0, 0, 1, 1], [], []>} : vector<128x36xbf16>, vector<36x64xbf16>, vector<128x64xf32> -> vector<128x64xf32>
    %c0_3 = arith.constant 0 : index
    %c0_4 = arith.constant 0 : index
    %3 = vector.load %arg3[%c0_3, %c0_4] : memref<1x64xf32, #tpu.memory_space<vmem>>, vector<1x64xf32>
    %4 = vector.broadcast %3 : vector<1x64xf32> to vector<128x64xf32>
    %5 = arith.addf %2, %4 : vector<128x64xf32>
    %cst_5 = arith.constant 0.000000e+00 : f32
    %6 = vector.broadcast %cst_5 : f32 to vector<128x64xf32>
    %7 = arith.maximumf %5, %6 : vector<128x64xf32>
    %8 = arith.truncf %7 : vector<128x64xf32> to vector<128x64xbf16>
    %c0_6 = arith.constant 0 : index
    %c0_7 = arith.constant 0 : index
    %9 = vector.load %arg4[%c0_6, %c0_7] : memref<128x64xbf16, #tpu.memory_space<vmem>>, vector<128x64xbf16>
    tpu.vector_store %arg4[%c0_6, %c0_7], %8 {strides = array<i32>} : memref<128x64xbf16, #tpu.memory_space<vmem>>, vector<128x64xbf16>,
    return
  }
  func.func @transform_0(%arg0: i32) -> (i32, i32) {
    %c0_i32 = arith.constant 0 : i32
    %c0_i32_0 = arith.constant 0 : i32
    return %arg0, %c0_i32 : i32, i32
  }
  func.func @transform_1(%arg0: i32) -> (i32, i32) {
    %c0_i32 = arith.constant 0 : i32
    %c0_i32_0 = arith.constant 0 : i32
    %c0_i32_1 = arith.constant 0 : i32
    return %c0_i32, %c0_i32_0 : i32, i32
  }
  func.func @transform_2(%arg0: i32) -> (i32, i32) {
    %c0_i32 = arith.constant 0 : i32
    %c0_i32_0 = arith.constant 0 : i32
    %c0_i32_1 = arith.constant 0 : i32
    return %c0_i32, %c0_i32_0 : i32, i32
  }
  func.func @transform_3(%arg0: i32) -> (i32, i32) {
    %c0_i32 = arith.constant 0 : i32
    %c0_i32_0 = arith.constant 0 : i32
    return %arg0, %c0_i32 : i32, i32
  }
}

module attributes {stable_mosaic.version = 11 : i64} {
  func.func @_emb_fc_kernel(%arg0: memref<2x4096xbf16, #tpu.memory_space<vmem>>, %arg1: memref<4096x32xbf16, #tpu.memory_space<vmem>>, %arg2: memref<1x32xf32, #tpu.memory_space<vmem>>, %arg3: memref<1x32xf32, #tpu.memory_space<vmem>>, %arg4: memref<1x32xf32, #tpu.memory_space<vmem>>, %arg5: memref<32x4096xbf16, #tpu.memory_space<vmem>>, %arg6: memref<1x4096xf32, #tpu.memory_space<vmem>>, %arg7: memref<1x4096xf32, #tpu.memory_space<vmem>>, %arg8: memref<1x4096xf32, #tpu.memory_space<vmem>>, %arg9: memref<2x32xf32, #tpu.memory_space<vmem>>, %arg10: memref<2x4096xbf16, #tpu.memory_space<vmem>>) attributes {dimension_semantics = [], scalar_prefetch = 0 : i64, scratch_operands = 0 : i64, tpu.core_type = #tpu.core_type<tc>} {
    %c0 = arith.constant 0 : index
    %c0_0 = arith.constant 0 : index
    %0 = vector.load %arg0[%c0, %c0_0] : memref<2x4096xbf16, #tpu.memory_space<vmem>>, vector<2x4096xbf16>
    %c0_1 = arith.constant 0 : index
    %c0_2 = arith.constant 0 : index
    %1 = vector.load %arg1[%c0_1, %c0_2] : memref<4096x32xbf16, #tpu.memory_space<vmem>>, vector<4096x32xbf16>
    %cst = arith.constant dense<0.000000e+00> : vector<2x32xf32>
    %2 = tpu.matmul %0, %1, %cst {dimension_numbers = #tpu.dot_dimension_numbers<[1], [0], [0], [1], [0, 0, 1, 1], [], []>} : vector<2x4096xbf16>, vector<4096x32xbf16>, vector<2x32xf32> -> vector<2x32xf32>
    %c0_3 = arith.constant 0 : index
    %c0_4 = arith.constant 0 : index
    %3 = vector.load %arg2[%c0_3, %c0_4] : memref<1x32xf32, #tpu.memory_space<vmem>>, vector<1x32xf32>
    %4 = vector.broadcast %3 : vector<1x32xf32> to vector<2x32xf32>
    %5 = arith.addf %2, %4 : vector<2x32xf32>
    %c0_5 = arith.constant 0 : index
    %c0_6 = arith.constant 0 : index
    %6 = vector.load %arg9[%c0_5, %c0_6] : memref<2x32xf32, #tpu.memory_space<vmem>>, vector<2x32xf32>
    tpu.vector_store %arg9[%c0_5, %c0_6], %5 {strides = array<i32>} : memref<2x32xf32, #tpu.memory_space<vmem>>, vector<2x32xf32>,
    %cst_7 = arith.constant dense<0.000000e+00> : vector<32xf32>
    %7 = vector.multi_reduction <add>, %5, %cst_7 [0] : vector<2x32xf32> to vector<32xf32>
    %8 = vector.shape_cast %7 : vector<32xf32> to vector<1x32xf32>
    %cst_8 = arith.constant 2.000000e+00 : f32
    %9 = vector.broadcast %cst_8 : f32 to vector<1x32xf32>
    %10 = arith.divf %8, %9 : vector<1x32xf32>
    %11 = vector.broadcast %10 : vector<1x32xf32> to vector<2x32xf32>
    %12 = arith.subf %5, %11 : vector<2x32xf32>
    %13 = arith.mulf %12, %12 : vector<2x32xf32>
    %cst_9 = arith.constant dense<0.000000e+00> : vector<32xf32>
    %14 = vector.multi_reduction <add>, %13, %cst_9 [0] : vector<2x32xf32> to vector<32xf32>
    %15 = vector.shape_cast %14 : vector<32xf32> to vector<1x32xf32>
    %cst_10 = arith.constant 2.000000e+00 : f32
    %16 = vector.broadcast %cst_10 : f32 to vector<1x32xf32>
    %17 = arith.divf %15, %16 : vector<1x32xf32>
    %18 = vector.broadcast %10 : vector<1x32xf32> to vector<2x32xf32>
    %19 = arith.subf %5, %18 : vector<2x32xf32>
    %cst_11 = arith.constant 8.000000e-01 : f32
    %20 = vector.broadcast %cst_11 : f32 to vector<1x32xf32>
    %21 = arith.addf %17, %20 : vector<1x32xf32>
    %22 = math.rsqrt %21 : vector<1x32xf32>
    %23 = vector.broadcast %22 : vector<1x32xf32> to vector<2x32xf32>
    %24 = arith.mulf %19, %23 : vector<2x32xf32>
    %c0_12 = arith.constant 0 : index
    %c0_13 = arith.constant 0 : index
    %25 = vector.load %arg3[%c0_12, %c0_13] : memref<1x32xf32, #tpu.memory_space<vmem>>, vector<1x32xf32>
    %26 = vector.broadcast %25 : vector<1x32xf32> to vector<2x32xf32>
    %27 = arith.mulf %24, %26 : vector<2x32xf32>
    %c0_14 = arith.constant 0 : index
    %c0_15 = arith.constant 0 : index
    %28 = vector.load %arg4[%c0_14, %c0_15] : memref<1x32xf32, #tpu.memory_space<vmem>>, vector<1x32xf32>
    %29 = vector.broadcast %28 : vector<1x32xf32> to vector<2x32xf32>
    %30 = arith.addf %27, %29 : vector<2x32xf32>
    %cst_16 = arith.constant 0.000000e+00 : f32
    %31 = vector.broadcast %cst_16 : f32 to vector<2x32xf32>
    %32 = arith.maximumf %30, %31 : vector<2x32xf32>
    %33 = arith.truncf %32 : vector<2x32xf32> to vector<2x32xbf16>
    %c0_17 = arith.constant 0 : index
    %c0_18 = arith.constant 0 : index
    %34 = vector.load %arg5[%c0_17, %c0_18] : memref<32x4096xbf16, #tpu.memory_space<vmem>>, vector<32x4096xbf16>
    %cst_19 = arith.constant dense<0.000000e+00> : vector<2x4096xf32>
    %35 = tpu.matmul %33, %34, %cst_19 {dimension_numbers = #tpu.dot_dimension_numbers<[1], [0], [0], [1], [0, 0, 1, 1], [], []>} : vector<2x32xbf16>, vector<32x4096xbf16>, vector<2x4096xf32> -> vector<2x4096xf32>
    %c0_20 = arith.constant 0 : index
    %c0_21 = arith.constant 0 : index
    %36 = vector.load %arg6[%c0_20, %c0_21] : memref<1x4096xf32, #tpu.memory_space<vmem>>, vector<1x4096xf32>
    %37 = vector.broadcast %36 : vector<1x4096xf32> to vector<2x4096xf32>
    %38 = arith.addf %35, %37 : vector<2x4096xf32>
    %cst_22 = arith.constant dense<0.000000e+00> : vector<4096xf32>
    %39 = vector.multi_reduction <add>, %38, %cst_22 [0] : vector<2x4096xf32> to vector<4096xf32>
    %40 = vector.shape_cast %39 : vector<4096xf32> to vector<1x4096xf32>
    %cst_23 = arith.constant 2.000000e+00 : f32
    %41 = vector.broadcast %cst_23 : f32 to vector<1x4096xf32>
    %42 = arith.divf %40, %41 : vector<1x4096xf32>
    %43 = vector.broadcast %42 : vector<1x4096xf32> to vector<2x4096xf32>
    %44 = arith.subf %38, %43 : vector<2x4096xf32>
    %45 = arith.mulf %44, %44 : vector<2x4096xf32>
    %cst_24 = arith.constant dense<0.000000e+00> : vector<4096xf32>
    %46 = vector.multi_reduction <add>, %45, %cst_24 [0] : vector<2x4096xf32> to vector<4096xf32>
    %47 = vector.shape_cast %46 : vector<4096xf32> to vector<1x4096xf32>
    %cst_25 = arith.constant 2.000000e+00 : f32
    %48 = vector.broadcast %cst_25 : f32 to vector<1x4096xf32>
    %49 = arith.divf %47, %48 : vector<1x4096xf32>
    %50 = vector.broadcast %42 : vector<1x4096xf32> to vector<2x4096xf32>
    %51 = arith.subf %38, %50 : vector<2x4096xf32>
    %cst_26 = arith.constant 9.99999974E-6 : f32
    %52 = vector.broadcast %cst_26 : f32 to vector<1x4096xf32>
    %53 = arith.addf %49, %52 : vector<1x4096xf32>
    %54 = math.rsqrt %53 : vector<1x4096xf32>
    %55 = vector.broadcast %54 : vector<1x4096xf32> to vector<2x4096xf32>
    %56 = arith.mulf %51, %55 : vector<2x4096xf32>
    %c0_27 = arith.constant 0 : index
    %c0_28 = arith.constant 0 : index
    %57 = vector.load %arg7[%c0_27, %c0_28] : memref<1x4096xf32, #tpu.memory_space<vmem>>, vector<1x4096xf32>
    %58 = vector.broadcast %57 : vector<1x4096xf32> to vector<2x4096xf32>
    %59 = arith.mulf %56, %58 : vector<2x4096xf32>
    %c0_29 = arith.constant 0 : index
    %c0_30 = arith.constant 0 : index
    %60 = vector.load %arg8[%c0_29, %c0_30] : memref<1x4096xf32, #tpu.memory_space<vmem>>, vector<1x4096xf32>
    %61 = vector.broadcast %60 : vector<1x4096xf32> to vector<2x4096xf32>
    %62 = arith.addf %59, %61 : vector<2x4096xf32>
    %cst_31 = arith.constant 0.000000e+00 : f32
    %63 = vector.broadcast %cst_31 : f32 to vector<2x4096xf32>
    %64 = arith.maximumf %62, %63 : vector<2x4096xf32>
    %65 = arith.truncf %64 : vector<2x4096xf32> to vector<2x4096xbf16>
    %c0_32 = arith.constant 0 : index
    %c0_33 = arith.constant 0 : index
    %66 = vector.load %arg10[%c0_32, %c0_33] : memref<2x4096xbf16, #tpu.memory_space<vmem>>, vector<2x4096xbf16>
    tpu.vector_store %arg10[%c0_32, %c0_33], %65 {strides = array<i32>} : memref<2x4096xbf16, #tpu.memory_space<vmem>>, vector<2x4096xbf16>,
    return
  }
}

module attributes {stable_mosaic.version = 11 : i64} {
  func.func @_matmul_bias_kernel(%arg0: i32, %arg1: memref<128x576xbf16, #tpu.memory_space<vmem>>, %arg2: memref<576x16xbf16, #tpu.memory_space<vmem>>, %arg3: memref<1x16xf32, #tpu.memory_space<vmem>>, %arg4: memref<128x16xf32, #tpu.memory_space<vmem>>) attributes {dimension_semantics = [#tpu.dimension_semantics<parallel>], iteration_bounds = array<i64: 1>, scalar_prefetch = 0 : i64, scratch_operands = 0 : i64, tpu.core_type = #tpu.core_type<tc>, window_params = [{transform_indices = @transform_0, window_bounds = array<i64: 128, 576>}, {pipeline_mode = #tpu.pipeline_mode<synchronous>, transform_indices = @transform_1, window_bounds = array<i64: 576, 16>}, {pipeline_mode = #tpu.pipeline_mode<synchronous>, transform_indices = @transform_2, window_bounds = array<i64: 1, 16>}, {transform_indices = @transform_3, window_bounds = array<i64: 128, 16>}]} {
    %c0 = arith.constant 0 : index
    %c0_0 = arith.constant 0 : index
    %0 = vector.load %arg1[%c0, %c0_0] : memref<128x576xbf16, #tpu.memory_space<vmem>>, vector<128x576xbf16>
    %c0_1 = arith.constant 0 : index
    %c0_2 = arith.constant 0 : index
    %1 = vector.load %arg2[%c0_1, %c0_2] : memref<576x16xbf16, #tpu.memory_space<vmem>>, vector<576x16xbf16>
    %cst = arith.constant dense<0.000000e+00> : vector<128x16xf32>
    %2 = tpu.matmul %0, %1, %cst {dimension_numbers = #tpu.dot_dimension_numbers<[1], [0], [0], [1], [0, 0, 1, 1], [], []>} : vector<128x576xbf16>, vector<576x16xbf16>, vector<128x16xf32> -> vector<128x16xf32>
    %c0_3 = arith.constant 0 : index
    %c0_4 = arith.constant 0 : index
    %3 = vector.load %arg3[%c0_3, %c0_4] : memref<1x16xf32, #tpu.memory_space<vmem>>, vector<1x16xf32>
    %4 = vector.broadcast %3 : vector<1x16xf32> to vector<128x16xf32>
    %5 = arith.addf %2, %4 : vector<128x16xf32>
    %c0_5 = arith.constant 0 : index
    %c0_6 = arith.constant 0 : index
    %6 = vector.load %arg4[%c0_5, %c0_6] : memref<128x16xf32, #tpu.memory_space<vmem>>, vector<128x16xf32>
    tpu.vector_store %arg4[%c0_5, %c0_6], %5 {strides = array<i32>} : memref<128x16xf32, #tpu.memory_space<vmem>>, vector<128x16xf32>,
    return
  }
  func.func @transform_0(%arg0: i32) -> (i32, i32) {
    %c0_i32 = arith.constant 0 : i32
    %c0_i32_0 = arith.constant 0 : i32
    return %arg0, %c0_i32 : i32, i32
  }
  func.func @transform_1(%arg0: i32) -> (i32, i32) {
    %c0_i32 = arith.constant 0 : i32
    %c0_i32_0 = arith.constant 0 : i32
    %c0_i32_1 = arith.constant 0 : i32
    return %c0_i32, %c0_i32_0 : i32, i32
  }
  func.func @transform_2(%arg0: i32) -> (i32, i32) {
    %c0_i32 = arith.constant 0 : i32
    %c0_i32_0 = arith.constant 0 : i32
    %c0_i32_1 = arith.constant 0 : i32
    return %c0_i32, %c0_i32_0 : i32, i32
  }
  func.func @transform_3(%arg0: i32) -> (i32, i32) {
    %c0_i32 = arith.constant 0 : i32
    %c0_i32_0 = arith.constant 0 : i32
    return %arg0, %c0_i32 : i32, i32
  }
}

</mosaic_0001>

<bundles_post_ra>
// kernel: discriminator_forward.3
= control target key start
LH: loop header
LB: loop body
LE: loop exit
PB: predicated region body
PF: predicated region fallthrough
CT: control target
= control target key end

     0   :  { %vm120_vm0 = vcmask 1041408   ;;  %vm95_vm1 = vcmask 293888   ;;  %vm205_vm2 = vcmask 519168   ;;  %s440_s1 = inlined_call_operand.vmem [shape: bf16[36,64], index: 1, kind: input, shape index: {}]   ;;  %s441_s2 = inlined_call_operand.vmem [shape: f32[1,64], index: 2, kind: input, shape index: {}]   ;;  %s442_s0 = inlined_call_operand.vmem [shape: bf16[128,36], index: 0, kind: input, shape index: {}]   ;;  %s443_s3 = inlined_call_operand.vmem [shape: bf16[128,64], index: 3, kind: output, shape index: {}]  }
   0x1   :  { %v35_v0 = vld [vmem:[%s440_s1 + $0x10] sm:$0x3]  ;;  %v283_v4 = vld [vmem:[%s440_s1 + $0x8] sm:$0xff]  ;;  %v282_v5 = vld [vmem:[%s440_s1] sm:$0xff] }
   0x2   :  { %v89_v1 = vunpack.c.l.b16 %v35_v0  ;;  %v274_v6 = vld [vmem:[%s442_s0] sm:$0xff]  ;;  %v276_v7 = vld [vmem:[%s442_s0 + $0x10] sm:$0xff]  ;;  %v275_v10 = vld [vmem:[%s442_s0 + $0x8] sm:$0xff] }
   0x3   :  { %v278_v8 = vld [vmem:[%s442_s0 + $0x20] sm:$0xff]  ;;  %v280_v9 = vld [vmem:[%s442_s0 + $0x30] sm:$0xff]  ;;  %v277_v11 = vld [vmem:[%s442_s0 + $0x18] sm:$0xff] }
   0x4   :  { %v92_v2 = vpack.c.b16 %v89_v1, %v89_v1  ;;  %v279_v12 = vld [vmem:[%s442_s0 + $0x28] sm:$0xff]  ;;  %v281_v13 = vld [vmem:[%s442_s0 + $0x38] sm:$0xff]  ;;  %v358_v14 = vld [vmem:[%s441_s2] ss:$0 sm:$0xff] }
   0x6   :  { %v122_v3 = vsel %vm120_vm0, %v92_v2, 0 }
   0x7   :  { %129 = vmatpush.bf16.msra.mxu0 %v122_v3  ;;  %284 = vmatpush.bf16.msra.mxu1 %v122_v3 }
   0x8   :  { %285 = vmatpush.bf16.msra.mxu2 %v122_v3  ;;  %286 = vmatpush.bf16.msra.mxu3 %v122_v3 }
   0xb   :  { %130 = vmatpush.bf16.msra.mxu0 %v283_v4  ;;  %287 = vmatpush.bf16.msra.mxu1 %v283_v4 }
   0xc   :  { %288 = vmatpush.bf16.msra.mxu2 %v283_v4  ;;  %289 = vmatpush.bf16.msra.mxu3 %v283_v4 }
   0xf   :  { %131 = vmatpush.bf16.msra.mxu0 %v282_v5  ;;  %290 = vmatpush.bf16.msra.mxu1 %v282_v5 }
  0x10   :  { %291 = vmatpush.bf16.msra.mxu2 %v282_v5  ;;  %292 = vmatpush.bf16.msra.mxu3 %v282_v5 }
  0x12   :  { %266 = vmatmul.msk.bf16.vlgmr.msra.gmra.mxu0 %vm95_vm1, %v274_v6  ;;  %268 = vmatmul.msk.bf16.vlgmr.msra.gmra.mxu1 %vm95_vm1, %v276_v7 }
  0x13   :  { %270 = vmatmul.msk.bf16.vlgmr.msra.gmra.mxu2 %vm95_vm1, %v278_v8  ;;  %272 = vmatmul.msk.bf16.vlgmr.msra.gmra.mxu3 %vm95_vm1, %v280_v9 }
  0x22   :  { %267 = vmatmul.msk.bf16.gmra.mxu0 %vm95_vm1, %v275_v10  ;;  %269 = vmatmul.msk.bf16.gmra.mxu1 %vm95_vm1, %v277_v11 }
  0x23   :  { %271 = vmatmul.msk.bf16.gmra.mxu2 %vm95_vm1, %v279_v12  ;;  %273 = vmatmul.msk.bf16.gmra.mxu3 %vm95_vm1, %v281_v13 }
  0x8f   :  { %v133_v15 = vpop.f32.mrf.mxu0  ;;  %v143_v16 = vpop.f32.mrf.mxu1 }
  0x90   :  { %v134_v17 = vadd.f32 %v358_v14, %v133_v15  ;;  %v144_v18 = vadd.f32 %v358_v14, %v143_v16 }
  0x92   :  { %v173_v19 = vmax.f32 %v134_v17, 0.0  ;;  %v177_v20 = vmax.f32 %v144_v18, 0.0 }
  0x94   :  { %v189_v21 = vpack.c.bf16 %v173_v19, %v173_v19  ;;  %v193_v22 = vpack.c.bf16 %v177_v20, %v177_v20 }
  0x96   :  { %206 = vst.msk [vmem:[%s443_s3] sm:$0xf] %vm205_vm2, %v189_v21  ;;  %v153_v23 = vpop.f32.mrf.mxu2  ;;  %v163_v24 = vpop.f32.mrf.mxu3 }
  0x97   :  { %210 = vst.msk [vmem:[%s443_s3 + $0x10] sm:$0xf] %vm205_vm2, %v193_v22  ;;  %v154_v25 = vadd.f32 %v358_v14, %v153_v23  ;;  %v164_v26 = vadd.f32 %v358_v14, %v163_v24  ;;  %v135_v27 = vpop.f32.mrf.mxu0  ;;  %v145_v28 = vpop.f32.mrf.mxu1 }
  0x98   :  { %v136_v29 = vadd.f32 %v358_v14, %v135_v27  ;;  %v146_v30 = vadd.f32 %v358_v14, %v145_v28 }
  0x99   :  { %v181_v31 = vmax.f32 %v154_v25, 0.0  ;;  %v185_v32 = vmax.f32 %v164_v26, 0.0 }
  0x9a   :  { %v174_v33 = vmax.f32 %v136_v29, 0.0  ;;  %v178_v34 = vmax.f32 %v146_v30, 0.0 }
  0x9b   :  { %v197_v35 = vpack.c.bf16 %v181_v31, %v181_v31  ;;  %v201_v36 = vpack.c.bf16 %v185_v32, %v185_v32 }
  0x9c   :  { %v190_v37 = vpack.c.bf16 %v174_v33, %v174_v33  ;;  %v194_v38 = vpack.c.bf16 %v178_v34, %v178_v34 }
  0x9d   :  { %214 = vst.msk [vmem:[%s443_s3 + $0x20] sm:$0xf] %vm205_vm2, %v197_v35 }
  0x9e   :  { %218 = vst.msk [vmem:[%s443_s3 + $0x30] sm:$0xf] %vm205_vm2, %v201_v36  ;;  %v155_v39 = vpop.f32.mrf.mxu2  ;;  %v165_v40 = vpop.f32.mrf.mxu3 }
  0x9f   :  { %207 = vst.msk [vmem:[%s443_s3 + $0x4] sm:$0xf] %vm205_vm2, %v190_v37  ;;  %v156_v41 = vadd.f32 %v358_v14, %v155_v39  ;;  %v166_v42 = vadd.f32 %v358_v14, %v165_v40  ;;  %v138_v43 = vpop.f32.mrf.mxu0  ;;  %v148_v44 = vpop.f32.mrf.mxu1 }
  0xa0   :  { %211 = vst.msk [vmem:[%s443_s3 + $0x14] sm:$0xf] %vm205_vm2, %v194_v38  ;;  %v139_v45 = vadd.f32 %v358_v14, %v138_v43  ;;  %v149_v46 = vadd.f32 %v358_v14, %v148_v44 }
  0xa1   :  { %v182_v47 = vmax.f32 %v156_v41, 0.0  ;;  %v186_v48 = vmax.f32 %v166_v42, 0.0 }
  0xa2   :  { %v175_v49 = vmax.f32 %v139_v45, 0.0  ;;  %v179_v50 = vmax.f32 %v149_v46, 0.0 }
  0xa3   :  { %v198_v51 = vpack.c.bf16 %v182_v47, %v182_v47  ;;  %v202_v52 = vpack.c.bf16 %v186_v48, %v186_v48 }
  0xa4   :  { %v191_v53 = vpack.c.bf16 %v175_v49, %v175_v49  ;;  %v195_v54 = vpack.c.bf16 %v179_v50, %v179_v50 }
  0xa5   :  { %215 = vst.msk [vmem:[%s443_s3 + $0x24] sm:$0xf] %vm205_vm2, %v198_v51 }
  0xa6   :  { %219 = vst.msk [vmem:[%s443_s3 + $0x34] sm:$0xf] %vm205_vm2, %v202_v52  ;;  %v158_v55 = vpop.f32.mrf.mxu2  ;;  %v168_v56 = vpop.f32.mrf.mxu3 }
  0xa7   :  { %208 = vst.msk [vmem:[%s443_s3 + $0x8] sm:$0xf] %vm205_vm2, %v191_v53  ;;  %v159_v57 = vadd.f32 %v358_v14, %v158_v55  ;;  %v169_v58 = vadd.f32 %v358_v14, %v168_v56  ;;  %v140_v59 = vpop.f32.mrf.mxu0  ;;  %v150_v60 = vpop.f32.mrf.mxu1 }
  0xa8   :  { %212 = vst.msk [vmem:[%s443_s3 + $0x18] sm:$0xf] %vm205_vm2, %v195_v54  ;;  %v141_v61 = vadd.f32 %v358_v14, %v140_v59  ;;  %v151_v62 = vadd.f32 %v358_v14, %v150_v60 }
  0xa9   :  { %v183_v63 = vmax.f32 %v159_v57, 0.0  ;;  %v187_v0 = vmax.f32 %v169_v58, 0.0 }
  0xaa   :  { %v176_v1 = vmax.f32 %v141_v61, 0.0  ;;  %v180_v2 = vmax.f32 %v151_v62, 0.0 }
  0xab   :  { %v199_v3 = vpack.c.bf16 %v183_v63, %v183_v63  ;;  %v203_v4 = vpack.c.bf16 %v187_v0, %v187_v0 }
  0xac   :  { %v192_v5 = vpack.c.bf16 %v176_v1, %v176_v1  ;;  %v196_v6 = vpack.c.bf16 %v180_v2, %v180_v2 }
  0xad   :  { %216 = vst.msk [vmem:[%s443_s3 + $0x28] sm:$0xf] %vm205_vm2, %v199_v3 }
  0xae   :  { %220 = vst.msk [vmem:[%s443_s3 + $0x38] sm:$0xf] %vm205_vm2, %v203_v4  ;;  %v160_v7 = vpop.f32.mrf.mxu2  ;;  %v170_v8 = vpop.f32.mrf.mxu3 }
  0xaf   :  { %209 = vst.msk [vmem:[%s443_s3 + $0xc] sm:$0xf] %vm205_vm2, %v192_v5  ;;  %v161_v9 = vadd.f32 %v358_v14, %v160_v7  ;;  %v171_v10 = vadd.f32 %v358_v14, %v170_v8 }
  0xb0   :  { %213 = vst.msk [vmem:[%s443_s3 + $0x1c] sm:$0xf] %vm205_vm2, %v196_v6 }
  0xb1   :  { %v184_v11 = vmax.f32 %v161_v9, 0.0  ;;  %v188_v12 = vmax.f32 %v171_v10, 0.0 }
  0xb3   :  { %v200_v13 = vpack.c.bf16 %v184_v11, %v184_v11  ;;  %v204_v15 = vpack.c.bf16 %v188_v12, %v188_v12 }
  0xb5   :  { %217 = vst.msk [vmem:[%s443_s3 + $0x2c] sm:$0xf] %vm205_vm2, %v200_v13 }
  0xb6   :  { %221 = vst.msk [vmem:[%s443_s3 + $0x3c] sm:$0xf] %vm205_vm2, %v204_v15 }

// kernel: discriminator_forward.5
= control target key start
LH: loop header
LB: loop body
LE: loop exit
PB: predicated region body
PF: predicated region fallthrough
CT: control target
= control target key end

     0   :  { %vm555_vm0 = vcmask 523264   ;;  %vm825_vm1 = vcmask 130048   ;;  %s1756_s1 = inlined_call_operand.vmem [shape: bf16[576,16], index: 1, kind: input, shape index: {}]   ;;  %s1757_s2 = inlined_call_operand.vmem [shape: f32[1,16], index: 2, kind: input, shape index: {}]   ;;  %s1758_s0 = inlined_call_operand.vmem [shape: bf16[128,576], index: 0, kind: input, shape index: {}]   ;;  %s1759_s3 = inlined_call_operand.vmem [shape: f32[128,16], index: 3, kind: output, shape index: {}]  }
   0x1   :  { %v1205_v0 = vld [vmem:[%s1756_s1 + $0x38] sm:$0xff]  ;;  %v1204_v1 = vld [vmem:[%s1756_s1 + $0x30] sm:$0xff]  ;;  %v1203_v2 = vld [vmem:[%s1756_s1 + $0x28] sm:$0xff] }
   0x2   :  { %1234 = vmatpush.bf16.msra.mxu1 %v1205_v0  ;;  %1235 = vmatpush.bf16.msra.mxu2 %v1205_v0  ;;  %v1202_v3 = vld [vmem:[%s1756_s1 + $0x20] sm:$0xff]  ;;  %v1201_v4 = vld [vmem:[%s1756_s1 + $0x18] sm:$0xff]  ;;  %v1200_v5 = vld [vmem:[%s1756_s1 + $0x10] sm:$0xff] }
   0x3   :  { %1236 = vmatpush.bf16.msra.mxu3 %v1205_v0  ;;  %580 = vmatpush.bf16.msra.mxu0 %v1205_v0  ;;  %v1199_v6 = vld [vmem:[%s1756_s1 + $0x8] sm:$0xff]  ;;  %v1198_v7 = vld [vmem:[%s1756_s1] sm:$0xff]  ;;  %v888_v8 = vld [vmem:[%s1758_s0 + $0x50] sm:$0xf] }
   0x4   :  { %v1170_v9 = vld [vmem:[%s1758_s0 + $0x60] sm:$0xf0]  ;;  %v928_v10 = vld [vmem:[%s1758_s0 + $0xa0] sm:$0xf]  ;;  %v1180_v11 = vld [vmem:[%s1758_s0 + $0xb0] sm:$0xf0] }
   0x5   :  { %v968_v12 = vld [vmem:[%s1758_s0 + $0xf0] sm:$0xf]  ;;  %v1190_v13 = vld [vmem:[%s1758_s0 + $0x100] sm:$0xf0]  ;;  %v848_v14 = vld [vmem:[%s1758_s0] sm:$0xf]  ;;  %v889_v18 = vor.u32 %v1170_v9, %v888_v8  ;;  %v929_v19 = vor.u32 %v1180_v11, %v928_v10 }
   0x6   :  { %1237 = vmatpush.bf16.msra.mxu1 %v1204_v1  ;;  %1238 = vmatpush.bf16.msra.mxu2 %v1204_v1  ;;  %v1160_v15 = vld [vmem:[%s1758_s0 + $0x10] sm:$0xf0]  ;;  %v1221_v16 = vld [vmem:[%s1756_s1 + $0xb8] sm:$0xff]  ;;  %v969_v20 = vor.u32 %v1190_v13, %v968_v12  ;;  %v1219_v28 = vld [vmem:[%s1756_s1 + $0xa8] sm:$0xff] }
   0x7   :  { %1239 = vmatpush.bf16.msra.mxu3 %v1204_v1  ;;  %581 = vmatpush.bf16.msra.mxu0 %v1204_v1  ;;  %v1213_v17 = vld [vmem:[%s1756_s1 + $0x78] sm:$0xff]  ;;  %v849_v21 = vor.u32 %v1160_v15, %v848_v14  ;;  %v1220_v24 = vld [vmem:[%s1756_s1 + $0xb0] sm:$0xff]  ;;  %v1211_v29 = vld [vmem:[%s1756_s1 + $0x68] sm:$0xff] }
   0x8   :  { %v1229_v22 = vld [vmem:[%s1756_s1 + $0xf8] sm:$0xff]  ;;  %v1212_v25 = vld [vmem:[%s1756_s1 + $0x70] sm:$0xff]  ;;  %v1227_v30 = vld [vmem:[%s1756_s1 + $0xe8] sm:$0xff] }
   0x9   :  { %v1233_v23 = vld [vmem:[%s1756_s1 + $0x118] sm:$0xff]  ;;  %v1228_v26 = vld [vmem:[%s1756_s1 + $0xf0] sm:$0xff]  ;;  %v1231_v31 = vld [vmem:[%s1756_s1 + $0x108] sm:$0xff] }
   0xa   :  { %1240 = vmatpush.bf16.msra.mxu1 %v1203_v2  ;;  %1241 = vmatpush.bf16.msra.mxu2 %v1203_v2  ;;  %v1232_v27 = vld [vmem:[%s1756_s1 + $0x110] sm:$0xff]  ;;  %v1218_v32 = vld [vmem:[%s1756_s1 + $0xa0] sm:$0xff]  ;;  %v908_v35 = vld [vmem:[%s1758_s0 + $0x78] sm:$0xf] }
   0xb   :  { %1242 = vmatpush.bf16.msra.mxu3 %v1203_v2  ;;  %582 = vmatpush.bf16.msra.mxu0 %v1203_v2  ;;  %v1210_v33 = vld [vmem:[%s1756_s1 + $0x60] sm:$0xff]  ;;  %v1175_v36 = vld [vmem:[%s1758_s0 + $0x88] sm:$0xf0]  ;;  %v948_v37 = vld [vmem:[%s1758_s0 + $0xc8] sm:$0xf] }
   0xc   :  { %v1226_v34 = vld [vmem:[%s1756_s1 + $0xe0] sm:$0xff]  ;;  %v1185_v38 = vld [vmem:[%s1758_s0 + $0xd8] sm:$0xf0]  ;;  %v988_v39 = vld [vmem:[%s1758_s0 + $0x118] sm:$0xf]  ;;  %v909_v46 = vor.u32 %v1175_v36, %v908_v35 }
   0xd   :  { %v1195_v40 = vld [vmem:[%s1758_s0 + $0x128] sm:$0xf0]  ;;  %v868_v41 = vld [vmem:[%s1758_s0 + $0x28] sm:$0xf]  ;;  %v1165_v42 = vld [vmem:[%s1758_s0 + $0x38] sm:$0xf0]  ;;  %v949_v47 = vor.u32 %v1185_v38, %v948_v37 }
   0xe   :  { %1243 = vmatpush.bf16.msra.mxu1 %v1202_v3  ;;  %1244 = vmatpush.bf16.msra.mxu2 %v1202_v3  ;;  %v1230_v43 = vld [vmem:[%s1756_s1 + $0x100] sm:$0xff]  ;;  %v1217_v44 = vld [vmem:[%s1756_s1 + $0x98] sm:$0xff]  ;;  %v989_v48 = vor.u32 %v1195_v40, %v988_v39  ;;  %v869_v49 = vor.u32 %v1165_v42, %v868_v41  ;;  %v1216_v51 = vld [vmem:[%s1756_s1 + $0x90] sm:$0xff] }
   0xf   :  { %1245 = vmatpush.bf16.msra.mxu3 %v1202_v3  ;;  %583 = vmatpush.bf16.msra.mxu0 %v1202_v3  ;;  %v1209_v45 = vld [vmem:[%s1756_s1 + $0x58] sm:$0xff]  ;;  %v1208_v52 = vld [vmem:[%s1756_s1 + $0x50] sm:$0xff]  ;;  %v1215_v54 = vld [vmem:[%s1756_s1 + $0x88] sm:$0xff] }
  0x10   :  { %v1225_v50 = vld [vmem:[%s1756_s1 + $0xd8] sm:$0xff]  ;;  %v1224_v53 = vld [vmem:[%s1756_s1 + $0xd0] sm:$0xff]  ;;  %v1207_v55 = vld [vmem:[%s1756_s1 + $0x48] sm:$0xff] }
  0x11   :  { %v1223_v56 = vld [vmem:[%s1756_s1 + $0xc8] sm:$0xff]  ;;  %v1214_v57 = vld [vmem:[%s1756_s1 + $0x80] sm:$0xff]  ;;  %v850_v61 = vld [vmem:[%s1758_s0 + $0x14] sm:$0xf0] }
  0x12   :  { %1246 = vmatpush.bf16.msra.mxu1 %v1201_v4  ;;  %1247 = vmatpush.bf16.msra.mxu2 %v1201_v4  ;;  %v1206_v58 = vld [vmem:[%s1756_s1 + $0x40] sm:$0xff]  ;;  %v856_v62 = vld [vmem:[%s1758_s0 + $0x8] sm:$0xf]  ;;  %v1161_v63 = vld [vmem:[%s1758_s0 + $0x18] sm:$0xf0] }
  0x13   :  { %1248 = vmatpush.bf16.msra.mxu3 %v1201_v4  ;;  %584 = vmatpush.bf16.msra.mxu0 %v1201_v4  ;;  %v1222_v59 = vld [vmem:[%s1756_s1 + $0xc0] sm:$0xff]  ;;  %v1159_v0 = vld [vmem:[%s1758_s0 + $0xc] sm:$0xf]  ;;  %v864_v2 = vld [vmem:[%s1758_s0 + $0x10] sm:$0xf] }
  0x14   :  { %v1158_v60 = vld [vmem:[%s1758_s0 + $0x4] sm:$0xf]  ;;  %v858_v1 = vld [vmem:[%s1758_s0 + $0x1c] sm:$0xf0]  ;;  %v1163_v8 = vld [vmem:[%s1758_s0 + $0x2c] sm:$0xf] }
  0x15   :  { %v1162_v3 = vld [vmem:[%s1758_s0 + $0x20] sm:$0xf0]  ;;  %v853_v4 = vor.u32 %v1158_v60, %v850_v61  ;;  %v870_v9 = vld [vmem:[%s1758_s0 + $0x3c] sm:$0xf0]  ;;  %v876_v10 = vld [vmem:[%s1758_s0 + $0x30] sm:$0xf] }
  0x16   :  { %1249 = vmatpush.bf16.msra.mxu1 %v1200_v5  ;;  %1250 = vmatpush.bf16.msra.mxu2 %v1200_v5  ;;  %v1166_v11 = vld [vmem:[%s1758_s0 + $0x40] sm:$0xf0]  ;;  %v1164_v12 = vld [vmem:[%s1758_s0 + $0x34] sm:$0xf]  ;;  %v878_v13 = vld [vmem:[%s1758_s0 + $0x44] sm:$0xf0] }
  0x17   :  { %1251 = vmatpush.bf16.msra.mxu3 %v1200_v5  ;;  %585 = vmatpush.bf16.msra.mxu0 %v1200_v5  ;;  %v857_v5 = vor.u32 %v1161_v63, %v856_v62  ;;  %v884_v14 = vld [vmem:[%s1758_s0 + $0x38] sm:$0xf]  ;;  %v1167_v15 = vld [vmem:[%s1758_s0 + $0x48] sm:$0xf0]  ;;  %v1176_v35 = vld [vmem:[%s1758_s0 + $0x90] sm:$0xf0] }
  0x18   :  { %v1174_v36 = vld [vmem:[%s1758_s0 + $0x84] sm:$0xf]  ;;  %v918_v37 = vld [vmem:[%s1758_s0 + $0x94] sm:$0xf0]  ;;  %v924_v38 = vld [vmem:[%s1758_s0 + $0x88] sm:$0xf] }
  0x19   :  { %v1177_v39 = vld [vmem:[%s1758_s0 + $0x98] sm:$0xf0]  ;;  %v921_v42 = vor.u32 %v1174_v36, %v918_v37  ;;  %v1184_v60 = vld [vmem:[%s1758_s0 + $0xd4] sm:$0xf]  ;;  %v958_v61 = vld [vmem:[%s1758_s0 + $0xe4] sm:$0xf0] }
  0x1a   :  { %1252 = vmatpush.bf16.msra.mxu1 %v1199_v6  ;;  %1253 = vmatpush.bf16.msra.mxu2 %v1199_v6  ;;  %v964_v62 = vld [vmem:[%s1758_s0 + $0xd8] sm:$0xf]  ;;  %v1187_v63 = vld [vmem:[%s1758_s0 + $0xe8] sm:$0xf0] }
  0x1b   :  { %1254 = vmatpush.bf16.msra.mxu3 %v1199_v6  ;;  %586 = vmatpush.bf16.msra.mxu0 %v1199_v6  ;;  %v861_v6 = vor.u32 %v1159_v0, %v858_v1 }
  0x1e   :  { %1255 = vmatpush.bf16.msra.mxu1 %v1198_v7  ;;  %1256 = vmatpush.bf16.msra.mxu2 %v1198_v7 }
  0x1f   :  { %1257 = vmatpush.bf16.msra.mxu3 %v1198_v7  ;;  %587 = vmatpush.bf16.msra.mxu0 %v1198_v7  ;;  %v865_v7 = vor.u32 %v1162_v3, %v864_v2  ;;  %v961_v2 = vor.u32 %v1184_v60, %v958_v61  ;;  %v965_v3 = vor.u32 %v1187_v63, %v964_v62 }
  0x21   :  { %598 = vmatmul.bf16.vlgmr.msra.gmra.mxu1 %v889_v18  ;;  %608 = vmatmul.bf16.vlgmr.msra.gmra.mxu2 %v929_v19  ;;  %v881_v18 = vor.u32 %v1164_v12, %v878_v13  ;;  %v885_v19 = vor.u32 %v1167_v15, %v884_v14 }
  0x22   :  { %678 = vmatpush.bf16.msrb.mxu2 %v1221_v16  ;;  %629 = vmatpush.bf16.msrb.mxu1 %v1213_v17  ;;  %v873_v16 = vor.u32 %v1163_v8, %v870_v9  ;;  %v877_v17 = vor.u32 %v1166_v11, %v876_v10  ;;  %v1189_v8 = vld [vmem:[%s1758_s0 + $0xfc] sm:$0xf]  ;;  %v978_v9 = vld [vmem:[%s1758_s0 + $0x10c] sm:$0xf0]  ;;  %v984_v10 = vld [vmem:[%s1758_s0 + $0x100] sm:$0xf] }
  0x23   :  { %618 = vmatmul.bf16.vlgmr.msra.gmra.mxu3 %v969_v20  ;;  %588 = vmatmul.bf16.vlgmr.msra.gmra.mxu0 %v849_v21  ;;  %v1168_v20 = vld [vmem:[%s1758_s0 + $0x54] sm:$0xf]  ;;  %v890_v21 = vld [vmem:[%s1758_s0 + $0x64] sm:$0xf0]  ;;  %v981_v15 = vor.u32 %v1189_v8, %v978_v9 }
  0x24   :  { %727 = vmatpush.bf16.msrb.mxu3 %v1229_v22  ;;  %780 = vmatpush.bf16.msrb.mxu0 %v1233_v23  ;;  %v896_v22 = vld [vmem:[%s1758_s0 + $0x58] sm:$0xf]  ;;  %v1171_v23 = vld [vmem:[%s1758_s0 + $0x68] sm:$0xf0]  ;;  %v1192_v11 = vld [vmem:[%s1758_s0 + $0x110] sm:$0xf0] }
  0x26   :  { %679 = vmatpush.bf16.msrb.mxu2 %v1220_v24  ;;  %630 = vmatpush.bf16.msrb.mxu1 %v1212_v25  ;;  %v1169_v24 = vld [vmem:[%s1758_s0 + $0x5c] sm:$0xf]  ;;  %v898_v25 = vld [vmem:[%s1758_s0 + $0x6c] sm:$0xf0] }
  0x28   :  { %728 = vmatpush.bf16.msrb.mxu3 %v1228_v26  ;;  %781 = vmatpush.bf16.msrb.mxu0 %v1232_v27  ;;  %v904_v26 = vld [vmem:[%s1758_s0 + $0x60] sm:$0xf]  ;;  %v1172_v27 = vld [vmem:[%s1758_s0 + $0x70] sm:$0xf0] }
  0x2a   :  { %680 = vmatpush.bf16.msrb.mxu2 %v1219_v28  ;;  %631 = vmatpush.bf16.msrb.mxu1 %v1211_v29  ;;  %v893_v28 = vor.u32 %v1168_v20, %v890_v21  ;;  %v897_v29 = vor.u32 %v1171_v23, %v896_v22 }
  0x2c   :  { %729 = vmatpush.bf16.msrb.mxu3 %v1227_v30  ;;  %782 = vmatpush.bf16.msrb.mxu0 %v1231_v31  ;;  %v901_v30 = vor.u32 %v1169_v24, %v898_v25  ;;  %v905_v31 = vor.u32 %v1172_v27, %v904_v26  ;;  %v1193_v25 = vld [vmem:[%s1758_s0 + $0x11c] sm:$0xf]  ;;  %v990_v26 = vld [vmem:[%s1758_s0 + $0x12c] sm:$0xf0]  ;;  %v996_v27 = vld [vmem:[%s1758_s0 + $0x120] sm:$0xf] }
  0x2d   :  { %v993_v36 = vor.u32 %v1193_v25, %v990_v26 }
  0x2e   :  { %681 = vmatpush.bf16.msrb.mxu2 %v1218_v32  ;;  %632 = vmatpush.bf16.msrb.mxu1 %v1210_v33  ;;  %v1173_v32 = vld [vmem:[%s1758_s0 + $0x7c] sm:$0xf]  ;;  %v910_v33 = vld [vmem:[%s1758_s0 + $0x8c] sm:$0xf0] }
  0x2f   :  { %v913_v40 = vor.u32 %v1173_v32, %v910_v33  ;;  %v1197_v32 = vld [vmem:[%s1758_s0 + $0x138] sm:$0xf0] }
  0x30   :  { %730 = vmatpush.bf16.msrb.mxu3 %v1226_v34  ;;  %783 = vmatpush.bf16.msrb.mxu0 %v1230_v43  ;;  %v916_v34 = vld [vmem:[%s1758_s0 + $0x80] sm:$0xf]  ;;  %v925_v43 = vor.u32 %v1177_v39, %v924_v38 }
  0x31   :  { %603 = vmatmul.bf16.gmra.mxu1 %v909_v46  ;;  %613 = vmatmul.bf16.gmra.mxu2 %v949_v47  ;;  %v917_v41 = vor.u32 %v1176_v35, %v916_v34  ;;  %v936_v46 = vld [vmem:[%s1758_s0 + $0xa8] sm:$0xf]  ;;  %v1181_v47 = vld [vmem:[%s1758_s0 + $0xb8] sm:$0xf0] }
  0x32   :  { %682 = vmatpush.bf16.msrb.mxu2 %v1217_v44  ;;  %633 = vmatpush.bf16.msrb.mxu1 %v1209_v45  ;;  %v1178_v44 = vld [vmem:[%s1758_s0 + $0xa4] sm:$0xf]  ;;  %v930_v45 = vld [vmem:[%s1758_s0 + $0xb4] sm:$0xf0] }
  0x33   :  { %623 = vmatmul.bf16.gmra.mxu3 %v989_v48  ;;  %593 = vmatmul.bf16.gmra.mxu0 %v869_v49  ;;  %v1179_v48 = vld [vmem:[%s1758_s0 + $0xac] sm:$0xf]  ;;  %v938_v49 = vld [vmem:[%s1758_s0 + $0xbc] sm:$0xf0] }
  0x34   :  { %731 = vmatpush.bf16.msrb.mxu3 %v1225_v50  ;;  %v944_v50 = vld [vmem:[%s1758_s0 + $0xb0] sm:$0xf] }
  0x36   :  { %683 = vmatpush.bf16.msrb.mxu2 %v1216_v51  ;;  %634 = vmatpush.bf16.msrb.mxu1 %v1208_v52  ;;  %v1182_v51 = vld [vmem:[%s1758_s0 + $0xc0] sm:$0xf0]  ;;  %v933_v52 = vor.u32 %v1178_v44, %v930_v45 }
  0x38   :  { %732 = vmatpush.bf16.msrb.mxu3 %v1224_v53  ;;  %v937_v53 = vor.u32 %v1181_v47, %v936_v46 }
  0x3a   :  { %684 = vmatpush.bf16.msrb.mxu2 %v1215_v54  ;;  %635 = vmatpush.bf16.msrb.mxu1 %v1207_v55  ;;  %v941_v54 = vor.u32 %v1179_v48, %v938_v49  ;;  %v945_v55 = vor.u32 %v1182_v51, %v944_v50 }
  0x3c   :  { %733 = vmatpush.bf16.msrb.mxu3 %v1223_v56  ;;  %v1183_v56 = vld [vmem:[%s1758_s0 + $0xcc] sm:$0xf] }
  0x3e   :  { %685 = vmatpush.bf16.msrb.mxu2 %v1214_v57  ;;  %636 = vmatpush.bf16.msrb.mxu1 %v1206_v58  ;;  %v950_v57 = vld [vmem:[%s1758_s0 + $0xdc] sm:$0xf0]  ;;  %v956_v58 = vld [vmem:[%s1758_s0 + $0xd0] sm:$0xf] }
  0x3f   :  { %v953_v0 = vor.u32 %v1183_v56, %v950_v57 }
  0x40   :  { %734 = vmatpush.bf16.msrb.mxu3 %v1222_v59  ;;  %v1186_v59 = vld [vmem:[%s1758_s0 + $0xe0] sm:$0xf0] }
  0x41   :  { %637 = vmatmul.bf16.vlgmr.msrb.gmra.mxu1 %v853_v4  ;;  %686 = vmatmul.bf16.vlgmr.msrb.gmra.mxu2 %v857_v5  ;;  %v957_v1 = vor.u32 %v1186_v59, %v956_v58  ;;  %v1188_v4 = vld [vmem:[%s1758_s0 + $0xf4] sm:$0xf]  ;;  %v970_v5 = vld [vmem:[%s1758_s0 + $0x104] sm:$0xf0] }
  0x42   :  { %v973_v12 = vor.u32 %v1188_v4, %v970_v5 }
  0x43   :  { %735 = vmatmul.bf16.vlgmr.msrb.gmra.mxu3 %v861_v6  ;;  %1150 = vmatmul.msk.bf16.vlgmr.msrb.gmra.mxu0 %vm555_vm0, %v865_v7  ;;  %v976_v6 = vld [vmem:[%s1758_s0 + $0xf8] sm:$0xf]  ;;  %v1191_v7 = vld [vmem:[%s1758_s0 + $0x108] sm:$0xf0] }
  0x44   :  { %v977_v13 = vor.u32 %v1191_v7, %v976_v6 }
  0x51   :  { %642 = vmatmul.bf16.gmra.mxu1 %v873_v16  ;;  %691 = vmatmul.bf16.gmra.mxu2 %v877_v17  ;;  %v985_v16 = vor.u32 %v1192_v11, %v984_v10 }
  0x53   :  { %740 = vmatmul.bf16.gmra.mxu3 %v881_v18  ;;  %1151 = vmatmul.msk.bf16.gmra.mxu0 %vm555_vm0, %v885_v19  ;;  %v1615_v18 = vld [vmem:[%s1757_s2] ss:$0 sm:$0xff] }
  0x61   :  { %647 = vmatmul.bf16.gmra.mxu1 %v893_v28  ;;  %696 = vmatmul.bf16.gmra.mxu2 %v897_v29  ;;  %v1196_v28 = vld [vmem:[%s1758_s0 + $0x130] sm:$0xf0]  ;;  %v1194_v29 = vld [vmem:[%s1758_s0 + $0x124] sm:$0xf] }
  0x62   :  { %v997_v37 = vor.u32 %v1196_v28, %v996_v27 }
  0x63   :  { %745 = vmatmul.bf16.gmra.mxu3 %v901_v30  ;;  %1152 = vmatmul.msk.bf16.gmra.mxu0 %vm555_vm0, %v905_v31  ;;  %v998_v30 = vld [vmem:[%s1758_s0 + $0x134] sm:$0xf0]  ;;  %v1004_v31 = vld [vmem:[%s1758_s0 + $0x128] sm:$0xf] }
  0x71   :  { %652 = vmatmul.bf16.gmra.mxu1 %v913_v40  ;;  %701 = vmatmul.bf16.gmra.mxu2 %v917_v41  ;;  %v1001_v40 = vor.u32 %v1194_v29, %v998_v30  ;;  %v1005_v41 = vor.u32 %v1197_v32, %v1004_v31 }
  0x73   :  { %750 = vmatmul.bf16.gmra.mxu3 %v921_v42  ;;  %1153 = vmatmul.msk.bf16.gmra.mxu0 %vm555_vm0, %v925_v43 }
  0x81   :  { %657 = vmatmul.bf16.gmra.mxu1 %v933_v52  ;;  %706 = vmatmul.bf16.gmra.mxu2 %v937_v53 }
  0x83   :  { %755 = vmatmul.bf16.gmra.mxu3 %v941_v54  ;;  %1154 = vmatmul.msk.bf16.gmra.mxu0 %vm555_vm0, %v945_v55 }
  0x91   :  { %662 = vmatmul.bf16.gmra.mxu1 %v953_v0  ;;  %711 = vmatmul.bf16.gmra.mxu2 %v957_v1 }
  0x93   :  { %760 = vmatmul.bf16.gmra.mxu3 %v961_v2  ;;  %1155 = vmatmul.msk.bf16.gmra.mxu0 %vm555_vm0, %v965_v3 }
  0x9e   :  { %v1609_v14 = vpop.f32.mrf.mxu1 }
  0x9f   :  { %v600_v31 = vadd.f32 %v1615_v18, %v1609_v14 }
  0xa0   :  { %v589_v17 = vpop.f32.mrf.mxu0 }
  0xa1   :  { %667 = vmatmul.bf16.gmra.mxu1 %v973_v12  ;;  %716 = vmatmul.bf16.gmra.mxu2 %v977_v13  ;;  %v590_v55 = vadd.f32 %v1615_v18, %v589_v17 }
  0xa3   :  { %765 = vmatmul.bf16.gmra.mxu3 %v981_v15  ;;  %1156 = vmatmul.msk.bf16.gmra.mxu0 %vm555_vm0, %v985_v16 }
  0xa4   :  { %v609_v19 = vpop.f32.mrf.mxu2 }
  0xa5   :  { %v1618_v20 = vadd.f32 %v1615_v18, %v609_v19 }
  0xa6   :  { %v619_v21 = vpop.f32.mrf.mxu3  ;;  %v1623_v23 = vpop.f32.mrf.mxu1 }
  0xa7   :  { %v1621_v22 = vadd.f32 %v1615_v18, %v619_v21 }
  0xa8   :  { %v591_v24 = vpop.f32.mrf.mxu0 }
  0xa9   :  { %v592_v63 = vadd.f32 %v1615_v18, %v591_v24 }
  0xac   :  { %v611_v33 = vpop.f32.mrf.mxu2 }
  0xad   :  { %v1650_v34 = vadd.f32 %v1615_v18, %v611_v33 }
  0xae   :  { %v621_v35 = vpop.f32.mrf.mxu3  ;;  %v1655_v39 = vpop.f32.mrf.mxu1 }
  0xaf   :  { %v1653_v38 = vadd.f32 %v1615_v18, %v621_v35 }
  0xb0   :  { %v594_v42 = vpop.f32.mrf.mxu0 }
  0xb1   :  { %672 = vmatmul.bf16.gmra.mxu1 %v993_v36  ;;  %721 = vmatmul.bf16.gmra.mxu2 %v997_v37  ;;  %v595_v8 = vadd.f32 %v1615_v18, %v594_v42 }
  0xb3   :  { %770 = vmatmul.bf16.gmra.mxu3 %v1001_v40  ;;  %1157 = vmatmul.msk.bf16.gmra.mxu0 %vm555_vm0, %v1005_v41 }
  0xb4   :  { %v614_v43 = vpop.f32.mrf.mxu2 }
  0xb5   :  { %v1659_v44 = vadd.f32 %v1615_v18, %v614_v43  ;;  %v602_v43 = vadd.f32 %v1615_v18, %v1623_v23 }
  0xb6   :  { %v624_v45 = vpop.f32.mrf.mxu3  ;;  %v1664_v47 = vpop.f32.mrf.mxu1 }
  0xb7   :  { %v1662_v46 = vadd.f32 %v1615_v18, %v624_v45 }
  0xb8   :  { %v596_v48 = vpop.f32.mrf.mxu0 }
  0xb9   :  { %v597_v19 = vadd.f32 %v1615_v18, %v596_v48 }
  0xbc   :  { %v616_v49 = vpop.f32.mrf.mxu2 }
  0xbd   :  { %v1667_v50 = vadd.f32 %v1615_v18, %v616_v49 }
  0xbe   :  { %v626_v51 = vpop.f32.mrf.mxu3  ;;  %v638_v53 = vpop.f32.mrf.mxu1 }
  0xbf   :  { %v1670_v52 = vadd.f32 %v1615_v18, %v626_v51  ;;  %v639_v56 = vadd.f32 %v638_v53, %v590_v55 }
  0xc0   :  { %v785_v54 = vpop.f32.mrf.mxu0 }
  0xc4   :  { %v687_v57 = vpop.f32.mrf.mxu2 }
  0xc5   :  { %v688_v58 = vadd.f32 %v687_v57, %v639_v56  ;;  %v605_v56 = vadd.f32 %v1615_v18, %v1655_v39 }
  0xc6   :  { %v736_v59 = vpop.f32.mrf.mxu3  ;;  %v640_v60 = vpop.f32.mrf.mxu1 }
  0xc7   :  { %v737_v61 = vadd.f32 %v736_v59, %v688_v58  ;;  %v641_v1 = vadd.f32 %v640_v60, %v592_v63 }
  0xc8   :  { %v787_v62 = vpop.f32.mrf.mxu0 }
  0xc9   :  { %v786_v0 = vadd.f32 %v785_v54, %v737_v61 }
  0xcb   :  { %826 = vst.msk [vmem:[%s1759_s3] sm:$0xff] %vm825_vm1, %v786_v0  ;;  %v607_v0 = vadd.f32 %v1615_v18, %v1664_v47 }
  0xcc   :  { %v689_v2 = vpop.f32.mrf.mxu2 }
  0xcd   :  { %v690_v3 = vadd.f32 %v689_v2, %v641_v1 }
  0xce   :  { %v738_v4 = vpop.f32.mrf.mxu3  ;;  %v643_v5 = vpop.f32.mrf.mxu1 }
  0xcf   :  { %v739_v6 = vadd.f32 %v738_v4, %v690_v3  ;;  %v644_v10 = vadd.f32 %v643_v5, %v595_v8 }
  0xd0   :  { %v790_v7 = vpop.f32.mrf.mxu0 }
  0xd1   :  { %v788_v9 = vadd.f32 %v787_v62, %v739_v6 }
  0xd3   :  { %827 = vst.msk [vmem:[%s1759_s3 + $0x8] sm:$0xff] %vm825_vm1, %v788_v9 }
  0xd4   :  { %v692_v11 = vpop.f32.mrf.mxu2 }
  0xd5   :  { %v693_v12 = vadd.f32 %v692_v11, %v644_v10 }
  0xd6   :  { %v741_v13 = vpop.f32.mrf.mxu3  ;;  %v645_v15 = vpop.f32.mrf.mxu1 }
  0xd7   :  { %v742_v16 = vadd.f32 %v741_v13, %v693_v12  ;;  %v646_v24 = vadd.f32 %v645_v15, %v597_v19 }
  0xd8   :  { %v792_v17 = vpop.f32.mrf.mxu0 }
  0xd9   :  { %v791_v21 = vadd.f32 %v790_v7, %v742_v16 }
  0xdb   :  { %828 = vst.msk [vmem:[%s1759_s3 + $0x10] sm:$0xff] %vm825_vm1, %v791_v21 }
  0xdc   :  { %v694_v25 = vpop.f32.mrf.mxu2 }
  0xdd   :  { %v695_v26 = vadd.f32 %v694_v25, %v646_v24 }
  0xde   :  { %v743_v27 = vpop.f32.mrf.mxu3  ;;  %v648_v28 = vpop.f32.mrf.mxu1 }
  0xdf   :  { %v744_v29 = vadd.f32 %v743_v27, %v695_v26  ;;  %v649_v33 = vadd.f32 %v648_v28, %v600_v31 }
  0xe0   :  { %v795_v30 = vpop.f32.mrf.mxu0 }
  0xe1   :  { %v793_v32 = vadd.f32 %v792_v17, %v744_v29 }
  0xe3   :  { %829 = vst.msk [vmem:[%s1759_s3 + $0x18] sm:$0xff] %vm825_vm1, %v793_v32 }
  0xe4   :  { %v697_v35 = vpop.f32.mrf.mxu2 }
  0xe5   :  { %v698_v36 = vadd.f32 %v697_v35, %v649_v33 }
  0xe6   :  { %v746_v37 = vpop.f32.mrf.mxu3  ;;  %v650_v40 = vpop.f32.mrf.mxu1 }
  0xe7   :  { %v747_v41 = vadd.f32 %v746_v37, %v698_v36  ;;  %v651_v14 = vadd.f32 %v650_v40, %v602_v43 }
  0xe8   :  { %v797_v42 = vpop.f32.mrf.mxu0 }
  0xe9   :  { %v796_v45 = vadd.f32 %v795_v30, %v747_v41 }
  0xeb   :  { %830 = vst.msk [vmem:[%s1759_s3 + $0x20] sm:$0xff] %vm825_vm1, %v796_v45 }
  0xec   :  { %v699_v48 = vpop.f32.mrf.mxu2 }
  0xed   :  { %v700_v49 = vadd.f32 %v699_v48, %v651_v14 }
  0xee   :  { %v748_v51 = vpop.f32.mrf.mxu3  ;;  %v653_v53 = vpop.f32.mrf.mxu1 }
  0xef   :  { %v749_v54 = vadd.f32 %v748_v51, %v700_v49  ;;  %v654_v23 = vadd.f32 %v653_v53, %v605_v56 }
  0xf0   :  { %v800_v55 = vpop.f32.mrf.mxu0 }
  0xf1   :  { %v798_v57 = vadd.f32 %v797_v42, %v749_v54 }
  0xf3   :  { %831 = vst.msk [vmem:[%s1759_s3 + $0x28] sm:$0xff] %vm825_vm1, %v798_v57 }
  0xf4   :  { %v702_v58 = vpop.f32.mrf.mxu2 }
  0xf5   :  { %v703_v59 = vadd.f32 %v702_v58, %v654_v23 }
  0xf6   :  { %v751_v60 = vpop.f32.mrf.mxu3  ;;  %v655_v61 = vpop.f32.mrf.mxu1 }
  0xf7   :  { %v752_v62 = vadd.f32 %v751_v60, %v703_v59  ;;  %v656_v39 = vadd.f32 %v655_v61, %v607_v0 }
  0xf8   :  { %v802_v63 = vpop.f32.mrf.mxu0 }
  0xf9   :  { %v801_v1 = vadd.f32 %v800_v55, %v752_v62 }
  0xfb   :  { %832 = vst.msk [vmem:[%s1759_s3 + $0x30] sm:$0xff] %vm825_vm1, %v801_v1 }
  0xfc   :  { %v704_v2 = vpop.f32.mrf.mxu2 }
  0xfd   :  { %v705_v3 = vadd.f32 %v704_v2, %v656_v39 }
  0xfe   :  { %v753_v4 = vpop.f32.mrf.mxu3  ;;  %v658_v5 = vpop.f32.mrf.mxu1 }
  0xff   :  { %v754_v6 = vadd.f32 %v753_v4, %v705_v3  ;;  %v659_v18 = vadd.f32 %v658_v5, %v1618_v20 }
 0x100   :  { %v805_v7 = vpop.f32.mrf.mxu0 }
 0x101   :  { %v803_v8 = vadd.f32 %v802_v63, %v754_v6 }
 0x103   :  { %833 = vst.msk [vmem:[%s1759_s3 + $0x38] sm:$0xff] %vm825_vm1, %v803_v8 }
 0x104   :  { %v707_v47 = vpop.f32.mrf.mxu2 }
 0x105   :  { %v708_v9 = vadd.f32 %v707_v47, %v659_v18 }
 0x106   :  { %v756_v10 = vpop.f32.mrf.mxu3  ;;  %v660_v11 = vpop.f32.mrf.mxu1 }
 0x107   :  { %v757_v12 = vadd.f32 %v756_v10, %v708_v9  ;;  %v661_v16 = vadd.f32 %v660_v11, %v1650_v34 }
 0x108   :  { %v807_v13 = vpop.f32.mrf.mxu0 }
 0x109   :  { %v806_v15 = vadd.f32 %v805_v7, %v757_v12 }
 0x10b   :  { %834 = vst.msk [vmem:[%s1759_s3 + $0x40] sm:$0xff] %vm825_vm1, %v806_v15 }
 0x10c   :  { %v709_v17 = vpop.f32.mrf.mxu2 }
 0x10d   :  { %v710_v19 = vadd.f32 %v709_v17, %v661_v16 }
 0x10e   :  { %v758_v21 = vpop.f32.mrf.mxu3  ;;  %v663_v24 = vpop.f32.mrf.mxu1 }
 0x10f   :  { %v759_v25 = vadd.f32 %v758_v21, %v710_v19  ;;  %v664_v27 = vadd.f32 %v663_v24, %v1659_v44 }
 0x110   :  { %v810_v20 = vpop.f32.mrf.mxu0 }
 0x111   :  { %v808_v26 = vadd.f32 %v807_v13, %v759_v25 }
 0x113   :  { %835 = vst.msk [vmem:[%s1759_s3 + $0x48] sm:$0xff] %vm825_vm1, %v808_v26 }
 0x114   :  { %v712_v28 = vpop.f32.mrf.mxu2 }
 0x115   :  { %v713_v29 = vadd.f32 %v712_v28, %v664_v27 }
 0x116   :  { %v761_v30 = vpop.f32.mrf.mxu3  ;;  %v665_v31 = vpop.f32.mrf.mxu1 }
 0x117   :  { %v762_v32 = vadd.f32 %v761_v30, %v713_v29  ;;  %v666_v35 = vadd.f32 %v665_v31, %v1667_v50 }
 0x118   :  { %v812_v34 = vpop.f32.mrf.mxu0 }
 0x119   :  { %v811_v33 = vadd.f32 %v810_v20, %v762_v32 }
 0x11b   :  { %836 = vst.msk [vmem:[%s1759_s3 + $0x50] sm:$0xff] %vm825_vm1, %v811_v33 }
 0x11c   :  { %v714_v36 = vpop.f32.mrf.mxu2 }
 0x11d   :  { %v715_v37 = vadd.f32 %v714_v36, %v666_v35 }
 0x11e   :  { %v763_v40 = vpop.f32.mrf.mxu3  ;;  %v668_v41 = vpop.f32.mrf.mxu1 }
 0x11f   :  { %v764_v42 = vadd.f32 %v763_v40, %v715_v37  ;;  %v669_v45 = vadd.f32 %v668_v41, %v1621_v22 }
 0x120   :  { %v815_v43 = vpop.f32.mrf.mxu0 }
 0x121   :  { %v813_v44 = vadd.f32 %v812_v34, %v764_v42 }
 0x123   :  { %837 = vst.msk [vmem:[%s1759_s3 + $0x58] sm:$0xff] %vm825_vm1, %v813_v44 }
 0x124   :  { %v717_v14 = vpop.f32.mrf.mxu2 }
 0x125   :  { %v718_v48 = vadd.f32 %v717_v14, %v669_v45 }
 0x126   :  { %v766_v49 = vpop.f32.mrf.mxu3  ;;  %v670_v51 = vpop.f32.mrf.mxu1 }
 0x127   :  { %v767_v53 = vadd.f32 %v766_v49, %v718_v48  ;;  %v671_v54 = vadd.f32 %v670_v51, %v1653_v38 }
 0x128   :  { %v817_v55 = vpop.f32.mrf.mxu0 }
 0x129   :  { %v816_v50 = vadd.f32 %v815_v43, %v767_v53 }
 0x12b   :  { %838 = vst.msk [vmem:[%s1759_s3 + $0x60] sm:$0xff] %vm825_vm1, %v816_v50 }
 0x12c   :  { %v719_v56 = vpop.f32.mrf.mxu2 }
 0x12d   :  { %v720_v57 = vadd.f32 %v719_v56, %v671_v54 }
 0x12e   :  { %v768_v23 = vpop.f32.mrf.mxu3  ;;  %v673_v58 = vpop.f32.mrf.mxu1 }
 0x12f   :  { %v769_v59 = vadd.f32 %v768_v23, %v720_v57  ;;  %v674_v60 = vadd.f32 %v673_v58, %v1662_v46 }
 0x130   :  { %v820_v0 = vpop.f32.mrf.mxu0 }
 0x131   :  { %v818_v22 = vadd.f32 %v817_v55, %v769_v59 }
 0x133   :  { %839 = vst.msk [vmem:[%s1759_s3 + $0x68] sm:$0xff] %vm825_vm1, %v818_v22 }
 0x134   :  { %v722_v61 = vpop.f32.mrf.mxu2 }
 0x135   :  { %v723_v62 = vadd.f32 %v722_v61, %v674_v60 }
 0x136   :  { %v771_v63 = vpop.f32.mrf.mxu3  ;;  %v675_v38 = vpop.f32.mrf.mxu1 }
 0x137   :  { %v772_v1 = vadd.f32 %v771_v63, %v723_v62  ;;  %v676_v2 = vadd.f32 %v675_v38, %v1670_v52 }
 0x138   :  { %v822_v7 = vpop.f32.mrf.mxu0 }
 0x139   :  { %v821_v39 = vadd.f32 %v820_v0, %v772_v1 }
 0x13b   :  { %840 = vst.msk [vmem:[%s1759_s3 + $0x70] sm:$0xff] %vm825_vm1, %v821_v39 }
 0x13c   :  { %v724_v3 = vpop.f32.mrf.mxu2 }
 0x13d   :  { %v725_v4 = vadd.f32 %v724_v3, %v676_v2 }
 0x13e   :  { %v773_v5 = vpop.f32.mrf.mxu3 }
 0x13f   :  { %v774_v6 = vadd.f32 %v773_v5, %v725_v4 }
 0x141   :  { %v823_v46 = vadd.f32 %v822_v7, %v774_v6 }
 0x143   :  { %841 = vst.msk [vmem:[%s1759_s3 + $0x78] sm:$0xff] %vm825_vm1, %v823_v46 }

// kernel: discriminator_forward.4
= control target key start
LH: loop header
LB: loop body
LE: loop exit
PB: predicated region body
PF: predicated region fallthrough
CT: control target
= control target key end

     0   :  { %s8942_s0 = inlined_call_operand.vmem [shape: bf16[2,4096], index: 0, kind: input, shape index: {}]   ;;  %s8943_s1 = inlined_call_operand.vmem [shape: bf16[4096,32], index: 1, kind: input, shape index: {}]   ;;  %s8944_s2 = inlined_call_operand.vmem [shape: f32[1,32], index: 2, kind: input, shape index: {}]   ;;  %s8945_s3 = inlined_call_operand.vmem [shape: f32[1,32], index: 3, kind: input, shape index: {}]   ;;  %s8946_s4 = inlined_call_operand.vmem [shape: f32[1,32], index: 4, kind: input, shape index: {}]   ;;  %s8947_s5 = inlined_call_operand.vmem [shape: bf16[32,4096], index: 5, kind: input, shape index: {}]   ;;  %s8948_s6 = inlined_call_operand.vmem [shape: f32[1,4096], index: 6, kind: input, shape index: {}]   ;;  %s8949_s7 = inlined_call_operand.vmem [shape: f32[1,4096], index: 7, kind: input, shape index: {}]   ;;  %s8950_s8 = inlined_call_operand.vmem [shape: f32[1,4096], index: 8, kind: input, shape index: {}]   ;;  %s8951_s9 = inlined_call_operand.hbm [shape: f32[2,32], index: 9, kind: output, shape index: {0}]   ;;  %s8952_s10 = inlined_call_operand.vmem [shape: bf16[2,4096], index: 10, kind: output, shape index: {1}]  }
   0x1   :  { %v6181_v0 = vld [vmem:[%s8943_s1 + $0x38] sm:$0xff]  ;;  %v6180_v4 = vld [vmem:[%s8943_s1 + $0x30] sm:$0xff]  ;;  %v6179_v8 = vld [vmem:[%s8943_s1 + $0x28] sm:$0xff] }
   0x2   :  { %v6189_v1 = vld [vmem:[%s8943_s1 + $0x78] sm:$0xff]  ;;  %2164 = vmatpush.bf16.msra.mxu0 %v6181_v0  ;;  %v6188_v5 = vld [vmem:[%s8943_s1 + $0x70] sm:$0xff]  ;;  %v6187_v9 = vld [vmem:[%s8943_s1 + $0x68] sm:$0xff] }
   0x3   :  { %v6197_v2 = vld [vmem:[%s8943_s1 + $0xb8] sm:$0xff]  ;;  %2177 = vmatpush.bf16.msra.mxu1 %v6189_v1  ;;  %v6196_v6 = vld [vmem:[%s8943_s1 + $0xb0] sm:$0xff]  ;;  %v6195_v10 = vld [vmem:[%s8943_s1 + $0xa8] sm:$0xff] }
   0x4   :  { %v6205_v3 = vld [vmem:[%s8943_s1 + $0xf8] sm:$0xff]  ;;  %2190 = vmatpush.bf16.msra.mxu2 %v6197_v2  ;;  %v6204_v7 = vld [vmem:[%s8943_s1 + $0xf0] sm:$0xff]  ;;  %v6203_v11 = vld [vmem:[%s8943_s1 + $0xe8] sm:$0xff] }
   0x5   :  { %2203 = vmatpush.bf16.msra.mxu3 %v6205_v3  ;;  %v6178_v12 = vld [vmem:[%s8943_s1 + $0x20] sm:$0xff]  ;;  %v6177_v16 = vld [vmem:[%s8943_s1 + $0x18] sm:$0xff]  ;;  %v6176_v20 = vld [vmem:[%s8943_s1 + $0x10] sm:$0xff] }
   0x6   :  { %2165 = vmatpush.bf16.msra.mxu0 %v6180_v4  ;;  %v6186_v13 = vld [vmem:[%s8943_s1 + $0x60] sm:$0xff]  ;;  %v6185_v17 = vld [vmem:[%s8943_s1 + $0x58] sm:$0xff]  ;;  %v6184_v21 = vld [vmem:[%s8943_s1 + $0x50] sm:$0xff] }
   0x7   :  { %2178 = vmatpush.bf16.msra.mxu1 %v6188_v5  ;;  %v6194_v14 = vld [vmem:[%s8943_s1 + $0xa0] sm:$0xff]  ;;  %v6193_v18 = vld [vmem:[%s8943_s1 + $0x98] sm:$0xff]  ;;  %v6192_v23 = vld [vmem:[%s8943_s1 + $0x90] sm:$0xff] }
   0x8   :  { %2191 = vmatpush.bf16.msra.mxu2 %v6196_v6  ;;  %v6202_v15 = vld [vmem:[%s8943_s1 + $0xe0] sm:$0xff]  ;;  %v6201_v19 = vld [vmem:[%s8943_s1 + $0xd8] sm:$0xff]  ;;  %v6200_v24 = vld [vmem:[%s8943_s1 + $0xd0] sm:$0xff] }
   0x9   :  { %2204 = vmatpush.bf16.msra.mxu3 %v6204_v7  ;;  %v36_v22 = vld [vmem:[%s8942_s0] sm:$0xff] }
   0xa   :  { %2166 = vmatpush.bf16.msra.mxu0 %v6179_v8  ;;  %557 = vst [vmem:[#allocation1] ss:$9 sm:$0xff] %v36_v22 }
   0xb   :  { %2179 = vmatpush.bf16.msra.mxu1 %v6187_v9 }
   0xc   :  { %2192 = vmatpush.bf16.msra.mxu2 %v6195_v10 }
   0xd   :  { %2205 = vmatpush.bf16.msra.mxu3 %v6203_v11 }
   0xe   :  { %2167 = vmatpush.bf16.msra.mxu0 %v6178_v12 }
   0xf   :  { %2180 = vmatpush.bf16.msra.mxu1 %v6186_v13 }
  0x10   :  { %2193 = vmatpush.bf16.msra.mxu2 %v6194_v14 }
  0x11   :  { %2206 = vmatpush.bf16.msra.mxu3 %v6202_v15 }
  0x12   :  { %2168 = vmatpush.bf16.msra.mxu0 %v6177_v16 }
  0x13   :  { %2181 = vmatpush.bf16.msra.mxu1 %v6185_v17 }
  0x14   :  { %2194 = vmatpush.bf16.msra.mxu2 %v6193_v18 }
  0x15   :  { %2207 = vmatpush.bf16.msra.mxu3 %v6201_v19 }
  0x16   :  { %16 = vsyncpa [#allocation3], 0  ;;  %2169 = vmatpush.bf16.msra.mxu0 %v6176_v20  ;;  %v6175_v25 = vld [vmem:[%s8943_s1 + $0x8] sm:$0xff]  ;;  %v6174_v29 = vld [vmem:[%s8943_s1] sm:$0xff]  ;;  %vm2580_vm0 = vcmask 254976   ;;  %vm3087_vm5 = vcmask 261120  }
  0x17   :  { %2182 = vmatpush.bf16.msra.mxu1 %v6184_v21  ;;  %v6183_v26 = vld [vmem:[%s8943_s1 + $0x48] sm:$0xff]  ;;  %v6182_v30 = vld [vmem:[%s8943_s1 + $0x40] sm:$0xff]  ;;  %v6213_v33 = vld [vmem:[%s8943_s1 + $0x138] sm:$0xff]  ;;  %vm3507_vm6 = vcmask 1041408   ;;  %s4849_s12 = sshll.u32 %s8951_s9, 4  ;;  %s4850_s12 = int_to_ptr.hbm [resolvable:$true] %s4849_s12 }
  0x18   :  { %2195 = vmatpush.bf16.msra.mxu2 %v6192_v23  ;;  %v6191_v27 = vld [vmem:[%s8943_s1 + $0x88] sm:$0xff]  ;;  %v6190_v31 = vld [vmem:[%s8943_s1 + $0x80] sm:$0xff]  ;;  %v6221_v34 = vld [vmem:[%s8943_s1 + $0x178] sm:$0xff] }
  0x19   :  { %2208 = vmatpush.bf16.msra.mxu3 %v6200_v24  ;;  %v6199_v28 = vld [vmem:[%s8943_s1 + $0xc8] sm:$0xff]  ;;  %v6198_v32 = vld [vmem:[%s8943_s1 + $0xc0] sm:$0xff]  ;;  %v6229_v35 = vld [vmem:[%s8943_s1 + $0x1b8] sm:$0xff] }
  0x1a   :  { %2170 = vmatpush.bf16.msra.mxu0 %v6175_v25  ;;  %v6237_v36 = vld [vmem:[%s8943_s1 + $0x1f8] sm:$0xff]  ;;  %v6212_v37 = vld [vmem:[%s8943_s1 + $0x130] sm:$0xff]  ;;  %v558_v39 = vld [vmem:[#allocation1] sm:$0xff] }
  0x1b   :  { %2183 = vmatpush.bf16.msra.mxu1 %v6183_v26  ;;  %v560_v38 = vld [vmem:[#allocation1 + $0x12] sm:$0xff]  ;;  %v561_v41 = vld [vmem:[#allocation1 + $0x1b] sm:$0xff]  ;;  %v559_v42 = vld [vmem:[#allocation1 + $0x9] sm:$0xff] }
  0x1c   :  { %2196 = vmatpush.bf16.msra.mxu2 %v6191_v27  ;;  %v6220_v40 = vld [vmem:[%s8943_s1 + $0x170] sm:$0xff]  ;;  %v6211_v45 = vld [vmem:[%s8943_s1 + $0x128] sm:$0xff]  ;;  %v6210_v49 = vld [vmem:[%s8943_s1 + $0x120] sm:$0xff] }
  0x1d   :  { %2209 = vmatpush.bf16.msra.mxu3 %v6199_v28  ;;  %v6228_v43 = vld [vmem:[%s8943_s1 + $0x1b0] sm:$0xff]  ;;  %v6219_v46 = vld [vmem:[%s8943_s1 + $0x168] sm:$0xff]  ;;  %v6218_v50 = vld [vmem:[%s8943_s1 + $0x160] sm:$0xff] }
  0x1e   :  { %2171 = vmatpush.bf16.msra.mxu0 %v6174_v29  ;;  %v6236_v44 = vld [vmem:[%s8943_s1 + $0x1f0] sm:$0xff]  ;;  %v6227_v47 = vld [vmem:[%s8943_s1 + $0x1a8] sm:$0xff]  ;;  %v565_v54 = vld [vmem:[#allocation1 + $0x3f] sm:$0xff] }
  0x1f   :  { %2184 = vmatpush.bf16.msra.mxu1 %v6182_v30  ;;  %v6235_v48 = vld [vmem:[%s8943_s1 + $0x1e8] sm:$0xff]  ;;  %v564_v51 = vld [vmem:[#allocation1 + $0x36] sm:$0xff]  ;;  %v6226_v56 = vld [vmem:[%s8943_s1 + $0x1a0] sm:$0xff] }
  0x20   :  { %2197 = vmatpush.bf16.msra.mxu2 %v6190_v31  ;;  %v37_v52 = vld [vmem:[%s8942_s0 + $0x8] sm:$0xff]  ;;  %v6234_v57 = vld [vmem:[%s8943_s1 + $0x1e0] sm:$0xff]  ;;  %v6209_v58 = vld [vmem:[%s8943_s1 + $0x118] sm:$0xff] }
  0x21   :  { %2210 = vmatpush.bf16.msra.mxu3 %v6198_v32  ;;  %2172 = vmatmul.bf16.vlgmr.msra.gmra.mxu0 %v558_v39  ;;  %v562_v53 = vld [vmem:[#allocation1 + $0x24] sm:$0xff]  ;;  %v563_v55 = vld [vmem:[#allocation1 + $0x2d] sm:$0xff]  ;;  %v6217_v59 = vld [vmem:[%s8943_s1 + $0x158] sm:$0xff] }
  0x22   :  { %2216 = vmatpush.bf16.msrb.mxu0 %v6213_v33  ;;  %2185 = vmatmul.bf16.vlgmr.msra.gmra.mxu1 %v559_v42  ;;  %567 = vst [vmem:[#allocation1] ss:$9 sm:$0xff] %v37_v52  ;;  %v6225_v60 = vld [vmem:[%s8943_s1 + $0x198] sm:$0xff]  ;;  %v6208_v62 = vld [vmem:[%s8943_s1 + $0x110] sm:$0xff]  ;;  %v6207_v2 = vld [vmem:[%s8943_s1 + $0x108] sm:$0xff] }
  0x23   :  { %2229 = vmatpush.bf16.msrb.mxu1 %v6221_v34  ;;  %2198 = vmatmul.bf16.vlgmr.msra.gmra.mxu2 %v560_v38  ;;  %v6233_v61 = vld [vmem:[%s8943_s1 + $0x1d8] sm:$0xff]  ;;  %v6216_v63 = vld [vmem:[%s8943_s1 + $0x150] sm:$0xff]  ;;  %v6215_v3 = vld [vmem:[%s8943_s1 + $0x148] sm:$0xff] }
  0x24   :  { %2242 = vmatpush.bf16.msrb.mxu2 %v6229_v35  ;;  %2211 = vmatmul.bf16.vlgmr.msra.gmra.mxu3 %v561_v41  ;;  %v6224_v0 = vld [vmem:[%s8943_s1 + $0x190] sm:$0xff]  ;;  %v6223_v4 = vld [vmem:[%s8943_s1 + $0x188] sm:$0xff]  ;;  %v6206_v6 = vld [vmem:[%s8943_s1 + $0x100] sm:$0xff] }
  0x25   :  { %2255 = vmatpush.bf16.msrb.mxu3 %v6237_v36  ;;  %v6232_v1 = vld [vmem:[%s8943_s1 + $0x1d0] sm:$0xff]  ;;  %v6231_v5 = vld [vmem:[%s8943_s1 + $0x1c8] sm:$0xff]  ;;  %v6214_v7 = vld [vmem:[%s8943_s1 + $0x140] sm:$0xff] }
  0x26   :  { %2217 = vmatpush.bf16.msrb.mxu0 %v6212_v37  ;;  %v6222_v8 = vld [vmem:[%s8943_s1 + $0x180] sm:$0xff]  ;;  %v6245_v10 = vld [vmem:[%s8943_s1 + $0x238] sm:$0xff]  ;;  %v6244_v14 = vld [vmem:[%s8943_s1 + $0x230] sm:$0xff] }
  0x27   :  { %2230 = vmatpush.bf16.msrb.mxu1 %v6220_v40  ;;  %v6230_v9 = vld [vmem:[%s8943_s1 + $0x1c0] sm:$0xff]  ;;  %v6253_v11 = vld [vmem:[%s8943_s1 + $0x278] sm:$0xff]  ;;  %v6252_v15 = vld [vmem:[%s8943_s1 + $0x270] sm:$0xff] }
  0x28   :  { %2243 = vmatpush.bf16.msrb.mxu2 %v6228_v43  ;;  %v6261_v12 = vld [vmem:[%s8943_s1 + $0x2b8] sm:$0xff]  ;;  %v6260_v16 = vld [vmem:[%s8943_s1 + $0x2b0] sm:$0xff]  ;;  %v6243_v18 = vld [vmem:[%s8943_s1 + $0x228] sm:$0xff] }
  0x29   :  { %2256 = vmatpush.bf16.msrb.mxu3 %v6236_v44  ;;  %v6269_v13 = vld [vmem:[%s8943_s1 + $0x2f8] sm:$0xff]  ;;  %v6268_v17 = vld [vmem:[%s8943_s1 + $0x2f0] sm:$0xff]  ;;  %v6251_v19 = vld [vmem:[%s8943_s1 + $0x268] sm:$0xff] }
  0x2a   :  { %2218 = vmatpush.bf16.msrb.mxu0 %v6211_v45  ;;  %v6259_v20 = vld [vmem:[%s8943_s1 + $0x2a8] sm:$0xff]  ;;  %v6242_v22 = vld [vmem:[%s8943_s1 + $0x220] sm:$0xff]  ;;  %v6241_v26 = vld [vmem:[%s8943_s1 + $0x218] sm:$0xff] }
  0x2b   :  { %2231 = vmatpush.bf16.msrb.mxu1 %v6219_v46  ;;  %v6267_v21 = vld [vmem:[%s8943_s1 + $0x2e8] sm:$0xff]  ;;  %v6250_v23 = vld [vmem:[%s8943_s1 + $0x260] sm:$0xff]  ;;  %v6249_v27 = vld [vmem:[%s8943_s1 + $0x258] sm:$0xff] }
  0x2c   :  { %2244 = vmatpush.bf16.msrb.mxu2 %v6227_v47  ;;  %v6258_v24 = vld [vmem:[%s8943_s1 + $0x2a0] sm:$0xff]  ;;  %v6257_v28 = vld [vmem:[%s8943_s1 + $0x298] sm:$0xff]  ;;  %v6240_v30 = vld [vmem:[%s8943_s1 + $0x210] sm:$0xff] }
  0x2d   :  { %2257 = vmatpush.bf16.msrb.mxu3 %v6235_v48  ;;  %v6266_v25 = vld [vmem:[%s8943_s1 + $0x2e0] sm:$0xff]  ;;  %v6265_v29 = vld [vmem:[%s8943_s1 + $0x2d8] sm:$0xff]  ;;  %v6248_v31 = vld [vmem:[%s8943_s1 + $0x250] sm:$0xff] }
  0x2e   :  { %2219 = vmatpush.bf16.msrb.mxu0 %v6210_v49  ;;  %v6256_v32 = vld [vmem:[%s8943_s1 + $0x290] sm:$0xff]  ;;  %v6239_v34 = vld [vmem:[%s8943_s1 + $0x208] sm:$0xff]  ;;  %v6238_v38 = vld [vmem:[%s8943_s1 + $0x200] sm:$0xff] }
  0x2f   :  { %2232 = vmatpush.bf16.msrb.mxu1 %v6218_v50  ;;  %v6264_v33 = vld [vmem:[%s8943_s1 + $0x2d0] sm:$0xff]  ;;  %v6247_v35 = vld [vmem:[%s8943_s1 + $0x248] sm:$0xff]  ;;  %v6246_v39 = vld [vmem:[%s8943_s1 + $0x240] sm:$0xff] }
  0x30   :  { %2245 = vmatpush.bf16.msrb.mxu2 %v6226_v56  ;;  %v6255_v36 = vld [vmem:[%s8943_s1 + $0x288] sm:$0xff]  ;;  %v6254_v40 = vld [vmem:[%s8943_s1 + $0x280] sm:$0xff]  ;;  %v6277_v42 = vld [vmem:[%s8943_s1 + $0x338] sm:$0xff] }
  0x31   :  { %2258 = vmatpush.bf16.msrb.mxu3 %v6234_v57  ;;  %v6263_v37 = vld [vmem:[%s8943_s1 + $0x2c8] sm:$0xff]  ;;  %v6262_v41 = vld [vmem:[%s8943_s1 + $0x2c0] sm:$0xff]  ;;  %v6285_v43 = vld [vmem:[%s8943_s1 + $0x378] sm:$0xff] }
  0x32   :  { %2220 = vmatpush.bf16.msrb.mxu0 %v6209_v58  ;;  %v6293_v44 = vld [vmem:[%s8943_s1 + $0x3b8] sm:$0xff]  ;;  %v568_v46 = vld [vmem:[#allocation1] sm:$0xff]  ;;  %v569_v48 = vld [vmem:[#allocation1 + $0x9] sm:$0xff] }
  0x33   :  { %2233 = vmatpush.bf16.msrb.mxu1 %v6217_v59  ;;  %v6301_v45 = vld [vmem:[%s8943_s1 + $0x3f8] sm:$0xff]  ;;  %v6276_v50 = vld [vmem:[%s8943_s1 + $0x330] sm:$0xff]  ;;  %v6291_v56 = vld [vmem:[%s8943_s1 + $0x3a8] sm:$0xff] }
  0x34   :  { %2246 = vmatpush.bf16.msrb.mxu2 %v6225_v60  ;;  %v570_v47 = vld [vmem:[#allocation1 + $0x12] sm:$0xff]  ;;  %v571_v49 = vld [vmem:[#allocation1 + $0x1b] sm:$0xff]  ;;  %v6299_v57 = vld [vmem:[%s8943_s1 + $0x3e8] sm:$0xff] }
  0x35   :  { %2259 = vmatpush.bf16.msrb.mxu3 %v6233_v61  ;;  %v6292_v52 = vld [vmem:[%s8943_s1 + $0x3b0] sm:$0xff]  ;;  %v6274_v58 = vld [vmem:[%s8943_s1 + $0x320] sm:$0xff] }
  0x36   :  { %2221 = vmatpush.bf16.msrb.mxu0 %v6208_v62  ;;  %v6282_v59 = vld [vmem:[%s8943_s1 + $0x360] sm:$0xff]  ;;  %v6273_v62 = vld [vmem:[%s8943_s1 + $0x318] sm:$0xff] }
  0x37   :  { %2234 = vmatpush.bf16.msrb.mxu1 %v6216_v63  ;;  %v6290_v60 = vld [vmem:[%s8943_s1 + $0x3a0] sm:$0xff]  ;;  %v6281_v63 = vld [vmem:[%s8943_s1 + $0x358] sm:$0xff] }
  0x38   :  { %2247 = vmatpush.bf16.msrb.mxu2 %v6224_v0  ;;  %v6298_v61 = vld [vmem:[%s8943_s1 + $0x3e0] sm:$0xff]  ;;  %v6289_v0 = vld [vmem:[%s8943_s1 + $0x398] sm:$0xff] }
  0x39   :  { %2260 = vmatpush.bf16.msrb.mxu3 %v6232_v1  ;;  %v6297_v1 = vld [vmem:[%s8943_s1 + $0x3d8] sm:$0xff] }
  0x3a   :  { %2222 = vmatpush.bf16.msrb.mxu0 %v6207_v2  ;;  %v6272_v2 = vld [vmem:[%s8943_s1 + $0x310] sm:$0xff] }
  0x3b   :  { %2235 = vmatpush.bf16.msrb.mxu1 %v6215_v3  ;;  %v6280_v3 = vld [vmem:[%s8943_s1 + $0x350] sm:$0xff] }
  0x3c   :  { %2248 = vmatpush.bf16.msrb.mxu2 %v6223_v4  ;;  %v6288_v4 = vld [vmem:[%s8943_s1 + $0x390] sm:$0xff] }
  0x3d   :  { %2261 = vmatpush.bf16.msrb.mxu3 %v6231_v5  ;;  %v6296_v5 = vld [vmem:[%s8943_s1 + $0x3d0] sm:$0xff] }
  0x3e   :  { %2223 = vmatpush.bf16.msrb.mxu0 %v6206_v6  ;;  %v6271_v6 = vld [vmem:[%s8943_s1 + $0x308] sm:$0xff] }
  0x3f   :  { %2236 = vmatpush.bf16.msrb.mxu1 %v6214_v7  ;;  %v6279_v7 = vld [vmem:[%s8943_s1 + $0x348] sm:$0xff] }
  0x40   :  { %2249 = vmatpush.bf16.msrb.mxu2 %v6222_v8  ;;  %v6287_v8 = vld [vmem:[%s8943_s1 + $0x388] sm:$0xff] }
  0x41   :  { %2262 = vmatpush.bf16.msrb.mxu3 %v6230_v9  ;;  %2224 = vmatmul.bf16.vlgmr.msrb.gmra.mxu0 %v562_v53  ;;  %v6300_v53 = vld [vmem:[%s8943_s1 + $0x3f0] sm:$0xff]  ;;  %v6295_v9 = vld [vmem:[%s8943_s1 + $0x3c8] sm:$0xff] }
  0x42   :  { %2268 = vmatpush.bf16.msra.mxu0 %v6245_v10  ;;  %2237 = vmatmul.bf16.vlgmr.msrb.gmra.mxu1 %v563_v55  ;;  %v6283_v55 = vld [vmem:[%s8943_s1 + $0x368] sm:$0xff] }
  0x43   :  { %2281 = vmatpush.bf16.msra.mxu1 %v6253_v11  ;;  %2250 = vmatmul.bf16.vlgmr.msrb.gmra.mxu2 %v564_v51  ;;  %v6284_v51 = vld [vmem:[%s8943_s1 + $0x370] sm:$0xff]  ;;  %v572_v10 = vld [vmem:[#allocation1 + $0x24] sm:$0xff] }
  0x44   :  { %2294 = vmatpush.bf16.msra.mxu2 %v6261_v12  ;;  %2263 = vmatmul.bf16.vlgmr.msrb.gmra.mxu3 %v565_v54  ;;  %v6275_v54 = vld [vmem:[%s8943_s1 + $0x328] sm:$0xff]  ;;  %v574_v11 = vld [vmem:[#allocation1 + $0x36] sm:$0xff] }
  0x45   :  { %2307 = vmatpush.bf16.msra.mxu3 %v6269_v13  ;;  %v573_v12 = vld [vmem:[#allocation1 + $0x2d] sm:$0xff]  ;;  %v575_v13 = vld [vmem:[#allocation1 + $0x3f] sm:$0xff] }
  0x46   :  { %2269 = vmatpush.bf16.msra.mxu0 %v6244_v14  ;;  %v38_v14 = vld [vmem:[%s8942_s0 + $0x10] sm:$0xff] }
  0x47   :  { %2282 = vmatpush.bf16.msra.mxu1 %v6252_v15  ;;  %577 = vst [vmem:[#allocation1] ss:$9 sm:$0xff] %v38_v14  ;;  %v6270_v15 = vld [vmem:[%s8943_s1 + $0x300] sm:$0xff]  ;;  %v6353_v14 = vld [vmem:[%s8943_s1 + $0x598] sm:$0xff] }
  0x48   :  { %2295 = vmatpush.bf16.msra.mxu2 %v6260_v16  ;;  %v6278_v16 = vld [vmem:[%s8943_s1 + $0x340] sm:$0xff] }
  0x49   :  { %2308 = vmatpush.bf16.msra.mxu3 %v6268_v17  ;;  %v6286_v17 = vld [vmem:[%s8943_s1 + $0x380] sm:$0xff] }
  0x4a   :  { %2270 = vmatpush.bf16.msra.mxu0 %v6243_v18  ;;  %v6294_v18 = vld [vmem:[%s8943_s1 + $0x3c0] sm:$0xff] }
  0x4b   :  { %2283 = vmatpush.bf16.msra.mxu1 %v6251_v19  ;;  %v6309_v19 = vld [vmem:[%s8943_s1 + $0x438] sm:$0xff] }
  0x4c   :  { %2296 = vmatpush.bf16.msra.mxu2 %v6259_v20  ;;  %v6317_v20 = vld [vmem:[%s8943_s1 + $0x478] sm:$0xff] }
  0x4d   :  { %2309 = vmatpush.bf16.msra.mxu3 %v6267_v21  ;;  %v6325_v21 = vld [vmem:[%s8943_s1 + $0x4b8] sm:$0xff] }
  0x4e   :  { %2271 = vmatpush.bf16.msra.mxu0 %v6242_v22  ;;  %v6333_v22 = vld [vmem:[%s8943_s1 + $0x4f8] sm:$0xff] }
  0x4f   :  { %2284 = vmatpush.bf16.msra.mxu1 %v6250_v23  ;;  %v6308_v23 = vld [vmem:[%s8943_s1 + $0x430] sm:$0xff] }
  0x50   :  { %2297 = vmatpush.bf16.msra.mxu2 %v6258_v24  ;;  %v6316_v24 = vld [vmem:[%s8943_s1 + $0x470] sm:$0xff] }
  0x51   :  { %2310 = vmatpush.bf16.msra.mxu3 %v6266_v25  ;;  %v6324_v25 = vld [vmem:[%s8943_s1 + $0x4b0] sm:$0xff] }
  0x52   :  { %2272 = vmatpush.bf16.msra.mxu0 %v6241_v26  ;;  %v6332_v26 = vld [vmem:[%s8943_s1 + $0x4f0] sm:$0xff] }
  0x53   :  { %2285 = vmatpush.bf16.msra.mxu1 %v6249_v27  ;;  %v6307_v27 = vld [vmem:[%s8943_s1 + $0x428] sm:$0xff] }
  0x54   :  { %2298 = vmatpush.bf16.msra.mxu2 %v6257_v28  ;;  %v6315_v28 = vld [vmem:[%s8943_s1 + $0x468] sm:$0xff] }
  0x55   :  { %2311 = vmatpush.bf16.msra.mxu3 %v6265_v29  ;;  %v6323_v29 = vld [vmem:[%s8943_s1 + $0x4a8] sm:$0xff] }
  0x56   :  { %2273 = vmatpush.bf16.msra.mxu0 %v6240_v30  ;;  %v6331_v30 = vld [vmem:[%s8943_s1 + $0x4e8] sm:$0xff] }
  0x57   :  { %2286 = vmatpush.bf16.msra.mxu1 %v6248_v31  ;;  %v6306_v31 = vld [vmem:[%s8943_s1 + $0x420] sm:$0xff] }
  0x58   :  { %2299 = vmatpush.bf16.msra.mxu2 %v6256_v32  ;;  %v6314_v32 = vld [vmem:[%s8943_s1 + $0x460] sm:$0xff] }
  0x59   :  { %2312 = vmatpush.bf16.msra.mxu3 %v6264_v33  ;;  %v6322_v33 = vld [vmem:[%s8943_s1 + $0x4a0] sm:$0xff] }
  0x5a   :  { %2274 = vmatpush.bf16.msra.mxu0 %v6239_v34  ;;  %v6330_v34 = vld [vmem:[%s8943_s1 + $0x4e0] sm:$0xff] }
  0x5b   :  { %2287 = vmatpush.bf16.msra.mxu1 %v6247_v35  ;;  %v6305_v35 = vld [vmem:[%s8943_s1 + $0x418] sm:$0xff] }
  0x5c   :  { %2300 = vmatpush.bf16.msra.mxu2 %v6255_v36  ;;  %v6313_v36 = vld [vmem:[%s8943_s1 + $0x458] sm:$0xff] }
  0x5d   :  { %2313 = vmatpush.bf16.msra.mxu3 %v6263_v37  ;;  %v6321_v37 = vld [vmem:[%s8943_s1 + $0x498] sm:$0xff] }
  0x5e   :  { %2275 = vmatpush.bf16.msra.mxu0 %v6238_v38  ;;  %v6329_v38 = vld [vmem:[%s8943_s1 + $0x4d8] sm:$0xff] }
  0x5f   :  { %2288 = vmatpush.bf16.msra.mxu1 %v6246_v39  ;;  %v6304_v39 = vld [vmem:[%s8943_s1 + $0x410] sm:$0xff] }
  0x60   :  { %2301 = vmatpush.bf16.msra.mxu2 %v6254_v40  ;;  %v6312_v40 = vld [vmem:[%s8943_s1 + $0x450] sm:$0xff] }
  0x61   :  { %2314 = vmatpush.bf16.msra.mxu3 %v6262_v41  ;;  %2276 = vmatmul.bf16.vlgmr.msra.gmra.mxu0 %v568_v46  ;;  %v6320_v41 = vld [vmem:[%s8943_s1 + $0x490] sm:$0xff]  ;;  %v6327_v46 = vld [vmem:[%s8943_s1 + $0x4c8] sm:$0xff] }
  0x62   :  { %2320 = vmatpush.bf16.msrb.mxu0 %v6277_v42  ;;  %2289 = vmatmul.bf16.vlgmr.msra.gmra.mxu1 %v569_v48  ;;  %v6328_v42 = vld [vmem:[%s8943_s1 + $0x4d0] sm:$0xff]  ;;  %v6310_v48 = vld [vmem:[%s8943_s1 + $0x440] sm:$0xff] }
  0x63   :  { %2333 = vmatpush.bf16.msrb.mxu1 %v6285_v43  ;;  %2302 = vmatmul.bf16.vlgmr.msra.gmra.mxu2 %v570_v47  ;;  %v6303_v43 = vld [vmem:[%s8943_s1 + $0x408] sm:$0xff]  ;;  %v6302_v47 = vld [vmem:[%s8943_s1 + $0x400] sm:$0xff] }
  0x64   :  { %2346 = vmatpush.bf16.msrb.mxu2 %v6293_v44  ;;  %2315 = vmatmul.bf16.vlgmr.msra.gmra.mxu3 %v571_v49  ;;  %v6311_v44 = vld [vmem:[%s8943_s1 + $0x448] sm:$0xff]  ;;  %v6318_v49 = vld [vmem:[%s8943_s1 + $0x480] sm:$0xff] }
  0x65   :  { %2359 = vmatpush.bf16.msrb.mxu3 %v6301_v45  ;;  %v6319_v45 = vld [vmem:[%s8943_s1 + $0x488] sm:$0xff] }
  0x66   :  { %2321 = vmatpush.bf16.msrb.mxu0 %v6276_v50  ;;  %v6326_v50 = vld [vmem:[%s8943_s1 + $0x4c0] sm:$0xff] }
  0x67   :  { %2334 = vmatpush.bf16.msrb.mxu1 %v6284_v51  ;;  %v6341_v51 = vld [vmem:[%s8943_s1 + $0x538] sm:$0xff] }
  0x68   :  { %2347 = vmatpush.bf16.msrb.mxu2 %v6292_v52  ;;  %v6349_v52 = vld [vmem:[%s8943_s1 + $0x578] sm:$0xff] }
  0x69   :  { %2360 = vmatpush.bf16.msrb.mxu3 %v6300_v53  ;;  %v6357_v53 = vld [vmem:[%s8943_s1 + $0x5b8] sm:$0xff] }
  0x6a   :  { %2322 = vmatpush.bf16.msrb.mxu0 %v6275_v54  ;;  %v6365_v54 = vld [vmem:[%s8943_s1 + $0x5f8] sm:$0xff] }
  0x6b   :  { %2335 = vmatpush.bf16.msrb.mxu1 %v6283_v55  ;;  %v578_v55 = vld [vmem:[#allocation1] sm:$0xff] }
  0x6c   :  { %2348 = vmatpush.bf16.msrb.mxu2 %v6291_v56  ;;  %v580_v56 = vld [vmem:[#allocation1 + $0x12] sm:$0xff] }
  0x6d   :  { %2361 = vmatpush.bf16.msrb.mxu3 %v6299_v57  ;;  %v579_v57 = vld [vmem:[#allocation1 + $0x9] sm:$0xff] }
  0x6e   :  { %2323 = vmatpush.bf16.msrb.mxu0 %v6274_v58  ;;  %v581_v58 = vld [vmem:[#allocation1 + $0x1b] sm:$0xff] }
  0x6f   :  { %2336 = vmatpush.bf16.msrb.mxu1 %v6282_v59  ;;  %v6340_v59 = vld [vmem:[%s8943_s1 + $0x530] sm:$0xff] }
  0x70   :  { %2349 = vmatpush.bf16.msrb.mxu2 %v6290_v60  ;;  %v6348_v60 = vld [vmem:[%s8943_s1 + $0x570] sm:$0xff] }
  0x71   :  { %2362 = vmatpush.bf16.msrb.mxu3 %v6298_v61  ;;  %v6356_v61 = vld [vmem:[%s8943_s1 + $0x5b0] sm:$0xff] }
  0x72   :  { %2324 = vmatpush.bf16.msrb.mxu0 %v6273_v62  ;;  %v6364_v62 = vld [vmem:[%s8943_s1 + $0x5f0] sm:$0xff] }
  0x73   :  { %2337 = vmatpush.bf16.msrb.mxu1 %v6281_v63  ;;  %v6339_v63 = vld [vmem:[%s8943_s1 + $0x528] sm:$0xff] }
  0x74   :  { %2350 = vmatpush.bf16.msrb.mxu2 %v6289_v0  ;;  %v6347_v0 = vld [vmem:[%s8943_s1 + $0x568] sm:$0xff] }
  0x75   :  { %2363 = vmatpush.bf16.msrb.mxu3 %v6297_v1  ;;  %v6496_v1 = vld [vmem:[%s8944_s2] ss:$0 sm:$0xff] }
  0x76   :  { %2325 = vmatpush.bf16.msrb.mxu0 %v6272_v2  ;;  %v6355_v2 = vld [vmem:[%s8943_s1 + $0x5a8] sm:$0xff] }
  0x77   :  { %2338 = vmatpush.bf16.msrb.mxu1 %v6280_v3  ;;  %v6363_v3 = vld [vmem:[%s8943_s1 + $0x5e8] sm:$0xff] }
  0x78   :  { %2351 = vmatpush.bf16.msrb.mxu2 %v6288_v4 }
  0x79   :  { %2364 = vmatpush.bf16.msrb.mxu3 %v6296_v5  ;;  %v6338_v5 = vld [vmem:[%s8943_s1 + $0x520] sm:$0xff] }
  0x7a   :  { %2326 = vmatpush.bf16.msrb.mxu0 %v6271_v6  ;;  %v6346_v6 = vld [vmem:[%s8943_s1 + $0x560] sm:$0xff] }
  0x7b   :  { %2339 = vmatpush.bf16.msrb.mxu1 %v6279_v7 }
  0x7c   :  { %2352 = vmatpush.bf16.msrb.mxu2 %v6287_v8 }
  0x7d   :  { %2365 = vmatpush.bf16.msrb.mxu3 %v6295_v9  ;;  %v6354_v9 = vld [vmem:[%s8943_s1 + $0x5a0] sm:$0xff] }
  0x7e   :  { %2327 = vmatpush.bf16.msrb.mxu0 %v6270_v15  ;;  %v6361_v15 = vld [vmem:[%s8943_s1 + $0x5d8] sm:$0xff] }
  0x7f   :  { %2340 = vmatpush.bf16.msrb.mxu1 %v6278_v16 }
  0x80   :  { %2353 = vmatpush.bf16.msrb.mxu2 %v6286_v17 }
  0x81   :  { %2366 = vmatpush.bf16.msrb.mxu3 %v6294_v18  ;;  %2328 = vmatmul.bf16.vlgmr.msrb.gmra.mxu0 %v572_v10  ;;  %v6362_v10 = vld [vmem:[%s8943_s1 + $0x5e0] sm:$0xff] }
  0x82   :  { %2372 = vmatpush.bf16.msra.mxu0 %v6309_v19  ;;  %2341 = vmatmul.bf16.vlgmr.msrb.gmra.mxu1 %v573_v12  ;;  %v6337_v12 = vld [vmem:[%s8943_s1 + $0x518] sm:$0xff] }
  0x83   :  { %2385 = vmatpush.bf16.msra.mxu1 %v6317_v20  ;;  %2354 = vmatmul.bf16.vlgmr.msrb.gmra.mxu2 %v574_v11  ;;  %v6336_v20 = vld [vmem:[%s8943_s1 + $0x510] sm:$0xff] }
  0x84   :  { %2398 = vmatpush.bf16.msra.mxu2 %v6325_v21  ;;  %2367 = vmatmul.bf16.vlgmr.msrb.gmra.mxu3 %v575_v13  ;;  %v6345_v13 = vld [vmem:[%s8943_s1 + $0x558] sm:$0xff]  ;;  %v6344_v21 = vld [vmem:[%s8943_s1 + $0x550] sm:$0xff] }
  0x85   :  { %2411 = vmatpush.bf16.msra.mxu3 %v6333_v22 }
  0x86   :  { %2373 = vmatpush.bf16.msra.mxu0 %v6308_v23 }
  0x87   :  { %2386 = vmatpush.bf16.msra.mxu1 %v6316_v24  ;;  %v6352_v24 = vld [vmem:[%s8943_s1 + $0x590] sm:$0xff] }
  0x88   :  { %2399 = vmatpush.bf16.msra.mxu2 %v6324_v25  ;;  %v6360_v25 = vld [vmem:[%s8943_s1 + $0x5d0] sm:$0xff] }
  0x89   :  { %2412 = vmatpush.bf16.msra.mxu3 %v6332_v26  ;;  %v6335_v26 = vld [vmem:[%s8943_s1 + $0x508] sm:$0xff] }
  0x8a   :  { %2374 = vmatpush.bf16.msra.mxu0 %v6307_v27  ;;  %v6343_v27 = vld [vmem:[%s8943_s1 + $0x548] sm:$0xff] }
  0x8b   :  { %2387 = vmatpush.bf16.msra.mxu1 %v6315_v28  ;;  %v6351_v28 = vld [vmem:[%s8943_s1 + $0x588] sm:$0xff] }
  0x8c   :  { %2400 = vmatpush.bf16.msra.mxu2 %v6323_v29  ;;  %v6359_v29 = vld [vmem:[%s8943_s1 + $0x5c8] sm:$0xff] }
  0x8d   :  { %2413 = vmatpush.bf16.msra.mxu3 %v6331_v30  ;;  %v582_v30 = vld [vmem:[#allocation1 + $0x24] sm:$0xff] }
  0x8e   :  { %2375 = vmatpush.bf16.msra.mxu0 %v6306_v31  ;;  %v584_v31 = vld [vmem:[#allocation1 + $0x36] sm:$0xff] }
  0x8f   :  { %2388 = vmatpush.bf16.msra.mxu1 %v6314_v32 }
  0x90   :  { %2401 = vmatpush.bf16.msra.mxu2 %v6322_v33  ;;  %v583_v33 = vld [vmem:[#allocation1 + $0x2d] sm:$0xff] }
  0x91   :  { %2414 = vmatpush.bf16.msra.mxu3 %v6330_v34  ;;  %v585_v34 = vld [vmem:[#allocation1 + $0x3f] sm:$0xff] }
  0x92   :  { %2376 = vmatpush.bf16.msra.mxu0 %v6305_v35 }
  0x93   :  { %2389 = vmatpush.bf16.msra.mxu1 %v6313_v36  ;;  %v39_v36 = vld [vmem:[%s8942_s0 + $0x18] sm:$0xff] }
  0x94   :  { %2402 = vmatpush.bf16.msra.mxu2 %v6321_v37  ;;  %587 = vst [vmem:[#allocation1] ss:$9 sm:$0xff] %v39_v36  ;;  %v6334_v37 = vld [vmem:[%s8943_s1 + $0x500] sm:$0xff]  ;;  %v6427_v36 = vld [vmem:[%s8943_s1 + $0x7e8] sm:$0xff] }
  0x95   :  { %2415 = vmatpush.bf16.msra.mxu3 %v6329_v38  ;;  %v6342_v38 = vld [vmem:[%s8943_s1 + $0x540] sm:$0xff] }
  0x96   :  { %2377 = vmatpush.bf16.msra.mxu0 %v6304_v39  ;;  %v6350_v39 = vld [vmem:[%s8943_s1 + $0x580] sm:$0xff] }
  0x97   :  { %2390 = vmatpush.bf16.msra.mxu1 %v6312_v40  ;;  %v6358_v40 = vld [vmem:[%s8943_s1 + $0x5c0] sm:$0xff] }
  0x98   :  { %2403 = vmatpush.bf16.msra.mxu2 %v6320_v41  ;;  %v6373_v41 = vld [vmem:[%s8943_s1 + $0x638] sm:$0xff] }
  0x99   :  { %2416 = vmatpush.bf16.msra.mxu3 %v6328_v42  ;;  %v6381_v42 = vld [vmem:[%s8943_s1 + $0x678] sm:$0xff] }
  0x9a   :  { %2378 = vmatpush.bf16.msra.mxu0 %v6303_v43  ;;  %v6389_v43 = vld [vmem:[%s8943_s1 + $0x6b8] sm:$0xff] }
  0x9b   :  { %2391 = vmatpush.bf16.msra.mxu1 %v6311_v44  ;;  %v6397_v44 = vld [vmem:[%s8943_s1 + $0x6f8] sm:$0xff] }
  0x9c   :  { %2404 = vmatpush.bf16.msra.mxu2 %v6319_v45  ;;  %v6372_v45 = vld [vmem:[%s8943_s1 + $0x630] sm:$0xff] }
  0x9d   :  { %2417 = vmatpush.bf16.msra.mxu3 %v6327_v46  ;;  %v6380_v46 = vld [vmem:[%s8943_s1 + $0x670] sm:$0xff] }
  0x9e   :  { %2379 = vmatpush.bf16.msra.mxu0 %v6302_v47  ;;  %v2173_v4 = vpop.f32.mrf.mxu0  ;;  %v6388_v47 = vld [vmem:[%s8943_s1 + $0x6b0] sm:$0xff] }
  0x9f   :  { %2392 = vmatpush.bf16.msra.mxu1 %v6310_v48  ;;  %v2174_v7 = vadd.f32 %v6496_v1, %v2173_v4  ;;  %v2186_v8 = vpop.f32.mrf.mxu1  ;;  %v6396_v48 = vld [vmem:[%s8943_s1 + $0x6f0] sm:$0xff] }
  0xa0   :  { %2405 = vmatpush.bf16.msra.mxu2 %v6318_v49  ;;  %v6371_v49 = vld [vmem:[%s8943_s1 + $0x628] sm:$0xff] }
  0xa1   :  { %2418 = vmatpush.bf16.msra.mxu3 %v6326_v50  ;;  %2380 = vmatmul.bf16.vlgmr.msra.gmra.mxu0 %v578_v55  ;;  %v2187_v11 = vadd.f32 %v2186_v8, %v2174_v7  ;;  %v6379_v50 = vld [vmem:[%s8943_s1 + $0x668] sm:$0xff]  ;;  %v6378_v55 = vld [vmem:[%s8943_s1 + $0x660] sm:$0xff] }
  0xa2   :  { %2424 = vmatpush.bf16.msrb.mxu0 %v6341_v51  ;;  %2393 = vmatmul.bf16.vlgmr.msra.gmra.mxu1 %v579_v57  ;;  %v6387_v51 = vld [vmem:[%s8943_s1 + $0x6a8] sm:$0xff] }
  0xa3   :  { %2437 = vmatpush.bf16.msrb.mxu1 %v6349_v52  ;;  %2406 = vmatmul.bf16.vlgmr.msra.gmra.mxu2 %v580_v56  ;;  %v6395_v52 = vld [vmem:[%s8943_s1 + $0x6e8] sm:$0xff] }
  0xa4   :  { %2450 = vmatpush.bf16.msrb.mxu2 %v6357_v53  ;;  %2419 = vmatmul.bf16.vlgmr.msra.gmra.mxu3 %v581_v58  ;;  %v6386_v58 = vld [vmem:[%s8943_s1 + $0x6a0] sm:$0xff] }
  0xa5   :  { %2463 = vmatpush.bf16.msrb.mxu3 %v6365_v54  ;;  %v6370_v54 = vld [vmem:[%s8943_s1 + $0x620] sm:$0xff] }
  0xa6   :  { %2425 = vmatpush.bf16.msrb.mxu0 %v6340_v59  ;;  %v2199_v16 = vpop.f32.mrf.mxu2  ;;  %v2175_v19 = vpop.f32.mrf.mxu0  ;;  %v6394_v59 = vld [vmem:[%s8943_s1 + $0x6e0] sm:$0xff] }
  0xa7   :  { %2438 = vmatpush.bf16.msrb.mxu1 %v6348_v60  ;;  %v2200_v17 = vadd.f32 %v2199_v16, %v2187_v11  ;;  %v2212_v18 = vpop.f32.mrf.mxu3  ;;  %v2188_v23 = vpop.f32.mrf.mxu1  ;;  %v6367_v11 = vld [vmem:[%s8943_s1 + $0x608] sm:$0xff]  ;;  %v6382_v19 = vld [vmem:[%s8943_s1 + $0x680] sm:$0xff] }
  0xa8   :  { %2451 = vmatpush.bf16.msrb.mxu2 %v6356_v61  ;;  %v6369_v61 = vld [vmem:[%s8943_s1 + $0x618] sm:$0xff] }
  0xa9   :  { %2464 = vmatpush.bf16.msrb.mxu3 %v6364_v62  ;;  %v7208_v22 = vadd.f32 %v2212_v18, %v2200_v17  ;;  %v6377_v62 = vld [vmem:[%s8943_s1 + $0x658] sm:$0xff]  ;;  %v6366_v17 = vld [vmem:[%s8943_s1 + $0x600] sm:$0xff] }
  0xaa   :  { %2426 = vmatpush.bf16.msrb.mxu0 %v6339_v63  ;;  %v6385_v63 = vld [vmem:[%s8943_s1 + $0x698] sm:$0xff]  ;;  %v6374_v18 = vld [vmem:[%s8943_s1 + $0x640] sm:$0xff] }
  0xab   :  { %2439 = vmatpush.bf16.msrb.mxu1 %v6347_v0  ;;  %v6393_v0 = vld [vmem:[%s8943_s1 + $0x6d8] sm:$0xff] }
  0xac   :  { %2452 = vmatpush.bf16.msrb.mxu2 %v6355_v2  ;;  %v6421_v23 = vld [vmem:[%s8943_s1 + $0x7b8] sm:$0xff] }
  0xad   :  { %2465 = vmatpush.bf16.msrb.mxu3 %v6363_v3 }
  0xae   :  { %2427 = vmatpush.bf16.msrb.mxu0 %v6338_v5  ;;  %v2201_v32 = vpop.f32.mrf.mxu2  ;;  %v6368_v5 = vld [vmem:[%s8943_s1 + $0x610] sm:$0xff] }
  0xaf   :  { %2440 = vmatpush.bf16.msrb.mxu1 %v6346_v6  ;;  %v2214_v35 = vpop.f32.mrf.mxu3  ;;  %v6376_v6 = vld [vmem:[%s8943_s1 + $0x650] sm:$0xff] }
  0xb0   :  { %2453 = vmatpush.bf16.msrb.mxu2 %v6354_v9  ;;  %v6384_v9 = vld [vmem:[%s8943_s1 + $0x690] sm:$0xff]  ;;  %v6419_v35 = vld [vmem:[%s8943_s1 + $0x7a8] sm:$0xff] }
  0xb1   :  { %2466 = vmatpush.bf16.msrb.mxu3 %v6362_v10  ;;  %v6392_v10 = vld [vmem:[%s8943_s1 + $0x6d0] sm:$0xff] }
  0xb2   :  { %2428 = vmatpush.bf16.msrb.mxu0 %v6337_v12  ;;  %v6375_v12 = vld [vmem:[%s8943_s1 + $0x648] sm:$0xff]  ;;  %v6428_v32 = vld [vmem:[%s8943_s1 + $0x7f0] sm:$0xff] }
  0xb3   :  { %2441 = vmatpush.bf16.msrb.mxu1 %v6345_v13  ;;  %v6383_v13 = vld [vmem:[%s8943_s1 + $0x688] sm:$0xff] }
  0xb4   :  { %2454 = vmatpush.bf16.msrb.mxu2 %v6353_v14  ;;  %v6391_v14 = vld [vmem:[%s8943_s1 + $0x6c8] sm:$0xff] }
  0xb5   :  { %2467 = vmatpush.bf16.msrb.mxu3 %v6361_v15 }
  0xb6   :  { %2429 = vmatpush.bf16.msrb.mxu0 %v6336_v20  ;;  %v6390_v20 = vld [vmem:[%s8943_s1 + $0x6c0] sm:$0xff] }
  0xb7   :  { %2442 = vmatpush.bf16.msrb.mxu1 %v6344_v21  ;;  %v6405_v21 = vld [vmem:[%s8943_s1 + $0x738] sm:$0xff] }
  0xb8   :  { %2455 = vmatpush.bf16.msrb.mxu2 %v6352_v24  ;;  %v6429_v24 = vld [vmem:[%s8943_s1 + $0x7f8] sm:$0xff] }
  0xb9   :  { %2468 = vmatpush.bf16.msrb.mxu3 %v6360_v25  ;;  %v588_v25 = vld [vmem:[#allocation1] sm:$0xff] }
  0xba   :  { %2430 = vmatpush.bf16.msrb.mxu0 %v6335_v26  ;;  %v590_v26 = vld [vmem:[#allocation1 + $0x12] sm:$0xff] }
  0xbb   :  { %2443 = vmatpush.bf16.msrb.mxu1 %v6343_v27  ;;  %v589_v27 = vld [vmem:[#allocation1 + $0x9] sm:$0xff] }
  0xbc   :  { %2456 = vmatpush.bf16.msrb.mxu2 %v6351_v28  ;;  %v591_v28 = vld [vmem:[#allocation1 + $0x1b] sm:$0xff] }
  0xbd   :  { %2469 = vmatpush.bf16.msrb.mxu3 %v6359_v29  ;;  %v6404_v29 = vld [vmem:[%s8943_s1 + $0x730] sm:$0xff] }
  0xbe   :  { %2431 = vmatpush.bf16.msrb.mxu0 %v6334_v37  ;;  %v2225_v53 = vpop.f32.mrf.mxu0 }
  0xbf   :  { %2444 = vmatpush.bf16.msrb.mxu1 %v6342_v38  ;;  %v2226_v56 = vadd.f32 %v2225_v53, %v7208_v22  ;;  %v2238_v57 = vpop.f32.mrf.mxu1  ;;  %v6413_v22 = vld [vmem:[%s8943_s1 + $0x778] sm:$0xff] }
  0xc0   :  { %2457 = vmatpush.bf16.msrb.mxu2 %v6350_v39  ;;  %v6402_v39 = vld [vmem:[%s8943_s1 + $0x720] sm:$0xff] }
  0xc1   :  { %2470 = vmatpush.bf16.msrb.mxu3 %v6358_v40  ;;  %2432 = vmatmul.bf16.vlgmr.msrb.gmra.mxu0 %v582_v30  ;;  %v2239_v60 = vadd.f32 %v2238_v57, %v2226_v56  ;;  %v6412_v30 = vld [vmem:[%s8943_s1 + $0x770] sm:$0xff]  ;;  %v6410_v40 = vld [vmem:[%s8943_s1 + $0x760] sm:$0xff] }
  0xc2   :  { %2476 = vmatpush.bf16.msra.mxu0 %v6373_v41  ;;  %2445 = vmatmul.bf16.vlgmr.msrb.gmra.mxu1 %v583_v33  ;;  %v6403_v33 = vld [vmem:[%s8943_s1 + $0x728] sm:$0xff]  ;;  %v6416_v57 = vld [vmem:[%s8943_s1 + $0x790] sm:$0xff] }
  0xc3   :  { %2489 = vmatpush.bf16.msra.mxu1 %v6381_v42  ;;  %2458 = vmatmul.bf16.vlgmr.msrb.gmra.mxu2 %v584_v31  ;;  %v6420_v31 = vld [vmem:[%s8943_s1 + $0x7b0] sm:$0xff]  ;;  %v6418_v42 = vld [vmem:[%s8943_s1 + $0x7a0] sm:$0xff] }
  0xc4   :  { %2502 = vmatpush.bf16.msra.mxu2 %v6389_v43  ;;  %2471 = vmatmul.bf16.vlgmr.msrb.gmra.mxu3 %v585_v34  ;;  %v6411_v34 = vld [vmem:[%s8943_s1 + $0x768] sm:$0xff]  ;;  %v6426_v43 = vld [vmem:[%s8943_s1 + $0x7e0] sm:$0xff] }
  0xc5   :  { %2515 = vmatpush.bf16.msra.mxu3 %v6397_v44 }
  0xc6   :  { %2477 = vmatpush.bf16.msra.mxu0 %v6372_v45  ;;  %v2251_v1 = vpop.f32.mrf.mxu2  ;;  %v2227_v4 = vpop.f32.mrf.mxu0  ;;  %v6401_v45 = vld [vmem:[%s8943_s1 + $0x718] sm:$0xff] }
  0xc7   :  { %2490 = vmatpush.bf16.msra.mxu1 %v6380_v46  ;;  %v2252_v2 = vadd.f32 %v2251_v1, %v2239_v60  ;;  %v2264_v3 = vpop.f32.mrf.mxu3  ;;  %v2240_v8 = vpop.f32.mrf.mxu1  ;;  %v6409_v46 = vld [vmem:[%s8943_s1 + $0x758] sm:$0xff]  ;;  %v6407_v60 = vld [vmem:[%s8943_s1 + $0x748] sm:$0xff]  ;;  %v6398_v1 = vld [vmem:[%s8943_s1 + $0x700] sm:$0xff] }
  0xc8   :  { %2503 = vmatpush.bf16.msra.mxu2 %v6388_v47  ;;  %v6417_v47 = vld [vmem:[%s8943_s1 + $0x798] sm:$0xff]  ;;  %v6422_v4 = vld [vmem:[%s8943_s1 + $0x7c0] sm:$0xff] }
  0xc9   :  { %2516 = vmatpush.bf16.msra.mxu3 %v6396_v48  ;;  %v2265_v7 = vadd.f32 %v2264_v3, %v2252_v2  ;;  %v6425_v48 = vld [vmem:[%s8943_s1 + $0x7d8] sm:$0xff]  ;;  %v6406_v2 = vld [vmem:[%s8943_s1 + $0x740] sm:$0xff] }
  0xca   :  { %2478 = vmatpush.bf16.msra.mxu0 %v6371_v49  ;;  %v6414_v3 = vld [vmem:[%s8943_s1 + $0x780] sm:$0xff] }
  0xcb   :  { %2491 = vmatpush.bf16.msra.mxu1 %v6379_v50  ;;  %v595_v8 = vld [vmem:[#allocation1 + $0x3f] sm:$0xff] }
  0xcc   :  { %2504 = vmatpush.bf16.msra.mxu2 %v6387_v51 }
  0xcd   :  { %2517 = vmatpush.bf16.msra.mxu3 %v6395_v52 }
  0xce   :  { %2479 = vmatpush.bf16.msra.mxu0 %v6370_v54  ;;  %v2253_v15 = vpop.f32.mrf.mxu2  ;;  %v6400_v54 = vld [vmem:[%s8943_s1 + $0x710] sm:$0xff] }
  0xcf   :  { %2492 = vmatpush.bf16.msra.mxu1 %v6378_v55  ;;  %v2266_v16 = vpop.f32.mrf.mxu3  ;;  %v6408_v55 = vld [vmem:[%s8943_s1 + $0x750] sm:$0xff] }
  0xd0   :  { %2505 = vmatpush.bf16.msra.mxu2 %v6386_v58  ;;  %v6424_v58 = vld [vmem:[%s8943_s1 + $0x7d0] sm:$0xff] }
  0xd1   :  { %2518 = vmatpush.bf16.msra.mxu3 %v6394_v59  ;;  %v6399_v59 = vld [vmem:[%s8943_s1 + $0x708] sm:$0xff] }
  0xd2   :  { %2480 = vmatpush.bf16.msra.mxu0 %v6369_v61  ;;  %v6415_v61 = vld [vmem:[%s8943_s1 + $0x788] sm:$0xff] }
  0xd3   :  { %2493 = vmatpush.bf16.msra.mxu1 %v6377_v62  ;;  %v6423_v62 = vld [vmem:[%s8943_s1 + $0x7c8] sm:$0xff] }
  0xd4   :  { %2506 = vmatpush.bf16.msra.mxu2 %v6385_v63 }
  0xd5   :  { %2519 = vmatpush.bf16.msra.mxu3 %v6393_v0 }
  0xd6   :  { %2481 = vmatpush.bf16.msra.mxu0 %v6368_v5  ;;  %v592_v5 = vld [vmem:[#allocation1 + $0x24] sm:$0xff] }
  0xd7   :  { %2494 = vmatpush.bf16.msra.mxu1 %v6376_v6  ;;  %v593_v6 = vld [vmem:[#allocation1 + $0x2d] sm:$0xff] }
  0xd8   :  { %2507 = vmatpush.bf16.msra.mxu2 %v6384_v9 }
  0xd9   :  { %2520 = vmatpush.bf16.msra.mxu3 %v6392_v10 }
  0xda   :  { %2482 = vmatpush.bf16.msra.mxu0 %v6367_v11 }
  0xdb   :  { %2495 = vmatpush.bf16.msra.mxu1 %v6375_v12 }
  0xdc   :  { %2508 = vmatpush.bf16.msra.mxu2 %v6383_v13 }
  0xdd   :  { %2521 = vmatpush.bf16.msra.mxu3 %v6391_v14 }
  0xde   :  { %2483 = vmatpush.bf16.msra.mxu0 %v6366_v17  ;;  %v2277_v37 = vpop.f32.mrf.mxu0 }
  0xdf   :  { %2496 = vmatpush.bf16.msra.mxu1 %v6374_v18  ;;  %v2278_v38 = vadd.f32 %v2277_v37, %v2265_v7  ;;  %v2290_v41 = vpop.f32.mrf.mxu1  ;;  %v594_v7 = vld [vmem:[#allocation1 + $0x36] sm:$0xff] }
  0xe0   :  { %2509 = vmatpush.bf16.msra.mxu2 %v6382_v19 }
  0xe1   :  { %2522 = vmatpush.bf16.msra.mxu3 %v6390_v20  ;;  %2484 = vmatmul.bf16.vlgmr.msra.gmra.mxu0 %v588_v25  ;;  %v2291_v44 = vadd.f32 %v2290_v41, %v2278_v38 }
  0xe2   :  { %2528 = vmatpush.bf16.msrb.mxu0 %v6405_v21  ;;  %2497 = vmatmul.bf16.vlgmr.msra.gmra.mxu1 %v589_v27 }
  0xe3   :  { %2541 = vmatpush.bf16.msrb.mxu1 %v6413_v22  ;;  %2510 = vmatmul.bf16.vlgmr.msra.gmra.mxu2 %v590_v26 }
  0xe4   :  { %2554 = vmatpush.bf16.msrb.mxu2 %v6421_v23  ;;  %2523 = vmatmul.bf16.vlgmr.msra.gmra.mxu3 %v591_v28 }
  0xe5   :  { %2567 = vmatpush.bf16.msrb.mxu3 %v6429_v24 }
  0xe6   :  { %2529 = vmatpush.bf16.msrb.mxu0 %v6404_v29  ;;  %v2303_v49 = vpop.f32.mrf.mxu2  ;;  %v2279_v52 = vpop.f32.mrf.mxu0 }
  0xe7   :  { %2542 = vmatpush.bf16.msrb.mxu1 %v6412_v30  ;;  %v2304_v50 = vadd.f32 %v2303_v49, %v2291_v44  ;;  %v2316_v51 = vpop.f32.mrf.mxu3  ;;  %v2292_v56 = vpop.f32.mrf.mxu1 }
  0xe8   :  { %2555 = vmatpush.bf16.msrb.mxu2 %v6420_v31  ;;  %v6593_v56 = vmov 2.0  }
  0xe9   :  { %2568 = vmatpush.bf16.msrb.mxu3 %v6428_v32  ;;  %v2317_v53 = vadd.f32 %v2316_v51, %v2304_v50  ;;  %6499 = vrcp.f32 %v6593_v56  ;;  %v6465_v56 = vld [vmem:[%s8947_s5 + $0x11c] sm:$0xf] }
  0xea   :  { %2530 = vmatpush.bf16.msrb.mxu0 %v6403_v33 }
  0xeb   :  { %2543 = vmatpush.bf16.msrb.mxu1 %v6411_v34 }
  0xec   :  { %2556 = vmatpush.bf16.msrb.mxu2 %v6419_v35 }
  0xed   :  { %2569 = vmatpush.bf16.msrb.mxu3 %v6427_v36 }
  0xee   :  { %2531 = vmatpush.bf16.msrb.mxu0 %v6402_v39  ;;  %v2305_v63 = vpop.f32.mrf.mxu2 }
  0xef   :  { %2544 = vmatpush.bf16.msrb.mxu1 %v6410_v40  ;;  %v2318_v0 = vpop.f32.mrf.mxu3 }
  0xf0   :  { %2557 = vmatpush.bf16.msrb.mxu2 %v6418_v42 }
  0xf1   :  { %2570 = vmatpush.bf16.msrb.mxu3 %v6426_v43 }
  0xf2   :  { %2532 = vmatpush.bf16.msrb.mxu0 %v6401_v45 }
  0xf3   :  { %2545 = vmatpush.bf16.msrb.mxu1 %v6409_v46 }
  0xf4   :  { %2558 = vmatpush.bf16.msrb.mxu2 %v6417_v47 }
  0xf5   :  { %2571 = vmatpush.bf16.msrb.mxu3 %v6425_v48 }
  0xf6   :  { %2533 = vmatpush.bf16.msrb.mxu0 %v6400_v54 }
  0xf7   :  { %2546 = vmatpush.bf16.msrb.mxu1 %v6408_v55 }
  0xf8   :  { %2559 = vmatpush.bf16.msrb.mxu2 %v6416_v57 }
  0xf9   :  { %2572 = vmatpush.bf16.msrb.mxu3 %v6424_v58 }
  0xfa   :  { %2534 = vmatpush.bf16.msrb.mxu0 %v6399_v59 }
  0xfb   :  { %2547 = vmatpush.bf16.msrb.mxu1 %v6407_v60 }
  0xfc   :  { %2560 = vmatpush.bf16.msrb.mxu2 %v6415_v61  ;;  %v6500_v61 = vpop.eup %6499 }
  0xfd   :  { %2573 = vmatpush.bf16.msrb.mxu3 %v6423_v62  ;;  %v2590_v63 = vmul.f32 2.0, %v6500_v61  ;;  %vm2594_vm1 = vweird.f32 %v6500_v61 }
  0xfe   :  { %2535 = vmatpush.bf16.msrb.mxu0 %v6398_v1  ;;  %v2329_v9 = vpop.f32.mrf.mxu0 }
  0xff   :  { %2548 = vmatpush.bf16.msrb.mxu1 %v6406_v2  ;;  %v2330_v10 = vadd.f32 %v2329_v9, %v2317_v53  ;;  %v2342_v11 = vpop.f32.mrf.mxu1 }
 0x100   :  { %2561 = vmatpush.bf16.msrb.mxu2 %v6414_v3 }
 0x101   :  { %2574 = vmatpush.bf16.msrb.mxu3 %v6422_v4  ;;  %2536 = vmatmul.bf16.vlgmr.msrb.gmra.mxu0 %v592_v5  ;;  %v2343_v12 = vadd.f32 %v2342_v11, %v2330_v10 }
 0x102   :  { %2549 = vmatmul.bf16.vlgmr.msrb.gmra.mxu1 %v593_v6  ;;  %v2591_v6 = vsub.f32 1.0, %v2590_v63  ;;  %v6464_v63 = vld [vmem:[%s8947_s5 + $0x114] sm:$0xf] }
 0x103   :  { %2562 = vmatmul.bf16.vlgmr.msrb.gmra.mxu2 %v594_v7 }
 0x104   :  { %2575 = vmatmul.bf16.vlgmr.msrb.gmra.mxu3 %v595_v8  ;;  %v2592_v9 = vmul.f32 %v6500_v61, %v2591_v6 }
 0x106   :  { %v2355_v13 = vpop.f32.mrf.mxu2  ;;  %v2331_v16 = vpop.f32.mrf.mxu0 }
 0x107   :  { %v2356_v14 = vadd.f32 %v2355_v13, %v2343_v12  ;;  %v2368_v15 = vpop.f32.mrf.mxu3  ;;  %v2344_v18 = vpop.f32.mrf.mxu1 }
 0x109   :  { %v2369_v17 = vadd.f32 %v2368_v15, %v2356_v14  ;;  %v2593_v14 = vadd.f32 %v6500_v61, %v2592_v9  ;;  %v6448_v9 = vld [vmem:[%s8947_s5 + $0x8c] sm:$0xf0] }
 0x10e   :  { %v2357_v19 = vpop.f32.mrf.mxu2 }
 0x10f   :  { %v2370_v20 = vpop.f32.mrf.mxu3 }
 0x11e   :  { %v2381_v21 = vpop.f32.mrf.mxu0 }
 0x11f   :  { %v2382_v22 = vadd.f32 %v2381_v21, %v2369_v17  ;;  %v2394_v23 = vpop.f32.mrf.mxu1  ;;  %v7438_v17 = vsel %vm2594_vm1, %v6500_v61, %v2593_v14 }
 0x121   :  { %v2395_v24 = vadd.f32 %v2394_v23, %v2382_v22 }
 0x126   :  { %v2407_v25 = vpop.f32.mrf.mxu2  ;;  %v2383_v28 = vpop.f32.mrf.mxu0 }
 0x127   :  { %v2408_v26 = vadd.f32 %v2407_v25, %v2395_v24  ;;  %v2420_v27 = vpop.f32.mrf.mxu3  ;;  %v2396_v30 = vpop.f32.mrf.mxu1  ;;  %v6024_v25 = vld [vmem:[%s8947_s5 + $0x108] sm:$0xf]  ;;  %v6463_v28 = vld [vmem:[%s8947_s5 + $0x10c] sm:$0xf] }
 0x128   :  { %v6016_v30 = vld [vmem:[%s8947_s5 + $0x100] sm:$0xf] }
 0x129   :  { %v2421_v29 = vadd.f32 %v2420_v27, %v2408_v26  ;;  %v6479_v26 = vld [vmem:[%s8947_s5 + $0x184] sm:$0xf0] }
 0x12a   :  { %v6025_v27 = vor.u32 %v6479_v26, %v6024_v25  ;;  %v6498_v26 = vld [vmem:[%s8946_s4] ss:$0 sm:$0xff] }
 0x12c   :  { %3123 = vmatpush.bf16.msra.mxu2 %v6025_v27 }
 0x12e   :  { %v2409_v31 = vpop.f32.mrf.mxu2 }
 0x12f   :  { %v2422_v32 = vpop.f32.mrf.mxu3 }
 0x13e   :  { %v2433_v33 = vpop.f32.mrf.mxu0 }
 0x13f   :  { %v2446_v34 = vpop.f32.mrf.mxu1  ;;  %v2434_v44 = vadd.f32 %v2433_v33, %v2421_v29  ;;  %v6026_v29 = vld [vmem:[%s8947_s5 + $0x188] sm:$0xf0]  ;;  %v6478_v33 = vld [vmem:[%s8947_s5 + $0x17c] sm:$0xf0] }
 0x140   :  { %v6029_v32 = vor.u32 %v6463_v28, %v6026_v29  ;;  %v6056_v29 = vld [vmem:[%s8947_s5 + $0x128] sm:$0xf] }
 0x141   :  { %v2447_v48 = vadd.f32 %v2446_v34, %v2434_v44  ;;  %v6017_v34 = vor.u32 %v6478_v33, %v6016_v30  ;;  %v5888_v44 = vld [vmem:[%s8947_s5] sm:$0xf]  ;;  %v6483_v30 = vld [vmem:[%s8947_s5 + $0x1a4] sm:$0xf0] }
 0x142   :  { %3136 = vmatpush.bf16.msra.mxu3 %v6029_v32  ;;  %v6048_v32 = vld [vmem:[%s8947_s5 + $0x120] sm:$0xf] }
 0x143   :  { %3097 = vmatpush.bf16.msra.mxu0 %v6017_v34  ;;  %v6482_v33 = vld [vmem:[%s8947_s5 + $0x19c] sm:$0xf0] }
 0x146   :  { %v2459_v35 = vpop.f32.mrf.mxu2  ;;  %v2435_v37 = vpop.f32.mrf.mxu0 }
 0x147   :  { %v2472_v36 = vpop.f32.mrf.mxu3  ;;  %v2448_v38 = vpop.f32.mrf.mxu1  ;;  %v2460_v49 = vadd.f32 %v2459_v35, %v2447_v48  ;;  %v6462_v35 = vld [vmem:[%s8947_s5 + $0x104] sm:$0xf] }
 0x149   :  { %v2473_v52 = vadd.f32 %v2472_v36, %v2460_v49  ;;  %v6018_v36 = vld [vmem:[%s8947_s5 + $0x180] sm:$0xf0] }
 0x14a   :  { %v6021_v38 = vor.u32 %v6462_v35, %v6018_v36  ;;  %v6430_v49 = vld [vmem:[%s8947_s5 + $0x4] sm:$0xf] }
 0x14b   :  { %v6466_v35 = vld [vmem:[%s8947_s5 + $0x124] sm:$0xf] }
 0x14c   :  { %3110 = vmatpush.bf16.msra.mxu1 %v6021_v38  ;;  %v6050_v36 = vld [vmem:[%s8947_s5 + $0x1a0] sm:$0xf0]  ;;  %v6057_v38 = vor.u32 %v6483_v30, %v6056_v29  ;;  %v6439_v30 = vld [vmem:[%s8947_s5 + $0x4c] sm:$0xf] }
 0x14e   :  { %v2461_v39 = vpop.f32.mrf.mxu2 }
 0x14f   :  { %v2474_v40 = vpop.f32.mrf.mxu3  ;;  %v5896_v39 = vld [vmem:[%s8947_s5 + $0x8] sm:$0xf] }
 0x150   :  { %v6447_v40 = vld [vmem:[%s8947_s5 + $0x84] sm:$0xf0] }
 0x15e   :  { %v2485_v41 = vpop.f32.mrf.mxu0 }
 0x15f   :  { %v2498_v42 = vpop.f32.mrf.mxu1  ;;  %v2486_v53 = vadd.f32 %v2485_v41, %v2473_v52  ;;  %v6431_v41 = vld [vmem:[%s8947_s5 + $0xc] sm:$0xf] }
 0x161   :  { %v2499_v54 = vadd.f32 %v2498_v42, %v2486_v53  ;;  %v5897_v42 = vor.u32 %v6447_v40, %v5896_v39  ;;  %v5928_v40 = vld [vmem:[%s8947_s5 + $0x28] sm:$0xf] }
 0x163   :  { %3124 = vmatpush.bf16.msra.mxu2 %v5897_v42  ;;  %v6049_v42 = vor.u32 %v6482_v33, %v6048_v32  ;;  %v6454_v32 = vld [vmem:[%s8947_s5 + $0xbc] sm:$0xf0]  ;;  %v6438_v33 = vld [vmem:[%s8947_s5 + $0x44] sm:$0xf] }
 0x166   :  { %v2511_v43 = vpop.f32.mrf.mxu2  ;;  %v2487_v46 = vpop.f32.mrf.mxu0 }
 0x167   :  { %v2524_v45 = vpop.f32.mrf.mxu3  ;;  %v2500_v47 = vpop.f32.mrf.mxu1  ;;  %v2512_v55 = vadd.f32 %v2511_v43, %v2499_v54  ;;  %v5898_v43 = vld [vmem:[%s8947_s5 + $0x88] sm:$0xf0]  ;;  %v6040_v54 = vld [vmem:[%s8947_s5 + $0x118] sm:$0xf] }
 0x168   :  { %v5901_v47 = vor.u32 %v6431_v41, %v5898_v43  ;;  %v6451_v41 = vld [vmem:[%s8947_s5 + $0xa4] sm:$0xf0]  ;;  %v6053_v43 = vor.u32 %v6466_v35, %v6050_v36 }
 0x169   :  { %v2525_v57 = vadd.f32 %v2524_v45, %v2512_v55  ;;  %v6446_v45 = vld [vmem:[%s8947_s5 + $0x7c] sm:$0xf0]  ;;  %v6481_v55 = vld [vmem:[%s8947_s5 + $0x194] sm:$0xf0] }
 0x16a   :  { %v5889_v48 = vor.u32 %v6446_v45, %v5888_v44  ;;  %3137 = vmatpush.bf16.msra.mxu3 %v5901_v47  ;;  %v6435_v44 = vld [vmem:[%s8947_s5 + $0x2c] sm:$0xf]  ;;  %v6450_v47 = vld [vmem:[%s8947_s5 + $0x9c] sm:$0xf0] }
 0x16b   :  { %v5930_v45 = vld [vmem:[%s8947_s5 + $0xa8] sm:$0xf0] }
 0x16c   :  { %3098 = vmatpush.bf16.msra.mxu0 %v5889_v48  ;;  %v6434_v48 = vld [vmem:[%s8947_s5 + $0x24] sm:$0xf] }
 0x16e   :  { %v2513_v50 = vpop.f32.mrf.mxu2 }
 0x16f   :  { %v2526_v51 = vpop.f32.mrf.mxu3  ;;  %v5890_v50 = vld [vmem:[%s8947_s5 + $0x80] sm:$0xf0] }
 0x170   :  { %v5893_v51 = vor.u32 %v6430_v49, %v5890_v50  ;;  %v5922_v49 = vld [vmem:[%s8947_s5 + $0xa0] sm:$0xf0]  ;;  %v5929_v50 = vor.u32 %v6451_v41, %v5928_v40  ;;  %v6104_v40 = vld [vmem:[%s8947_s5 + $0x158] sm:$0xf] }
 0x171   :  { %v6489_v41 = vld [vmem:[%s8947_s5 + $0x1d4] sm:$0xf0] }
 0x172   :  { %3111 = vmatpush.bf16.msra.mxu1 %v5893_v51  ;;  %v5933_v51 = vor.u32 %v6435_v44, %v5930_v45  ;;  %v6096_v44 = vld [vmem:[%s8947_s5 + $0x150] sm:$0xf] }
 0x173   :  { %v6488_v45 = vld [vmem:[%s8947_s5 + $0x1cc] sm:$0xf0] }
 0x17e   :  { %v2537_v58 = vpop.f32.mrf.mxu0 }
 0x17f   :  { %v2550_v59 = vpop.f32.mrf.mxu1  ;;  %v2538_v60 = vadd.f32 %v2537_v58, %v2525_v57  ;;  %v6041_v58 = vor.u32 %v6481_v55, %v6040_v54  ;;  %v6072_v54 = vld [vmem:[%s8947_s5 + $0x138] sm:$0xf] }
 0x180   :  { %v6485_v55 = vld [vmem:[%s8947_s5 + $0x1b4] sm:$0xf0] }
 0x181   :  { %v2551_v62 = vadd.f32 %v2550_v59, %v2538_v60  ;;  %v6042_v59 = vld [vmem:[%s8947_s5 + $0x198] sm:$0xf0]  ;;  %v6032_v60 = vld [vmem:[%s8947_s5 + $0x110] sm:$0xf]  ;;  %3175 = vmatpush.bf16.msrb.mxu2 %v6041_v58 }
 0x182   :  { %v6045_v61 = vor.u32 %v6465_v56, %v6042_v59  ;;  %v6469_v56 = vld [vmem:[%s8947_s5 + $0x13c] sm:$0xf]  ;;  %v6064_v58 = vld [vmem:[%s8947_s5 + $0x130] sm:$0xf] }
 0x183   :  { %v6484_v59 = vld [vmem:[%s8947_s5 + $0x1ac] sm:$0xf0] }
 0x184   :  { %3188 = vmatpush.bf16.msrb.mxu3 %v6045_v61  ;;  %v6066_v61 = vld [vmem:[%s8947_s5 + $0x1b0] sm:$0xf0] }
 0x186   :  { %v2563_v0 = vpop.f32.mrf.mxu2  ;;  %v2539_v3 = vpop.f32.mrf.mxu0 }
 0x187   :  { %v2576_v1 = vpop.f32.mrf.mxu3  ;;  %v2564_v2 = vadd.f32 %v2563_v0, %v2551_v62  ;;  %v2552_v4 = vpop.f32.mrf.mxu1  ;;  %v6480_v62 = vld [vmem:[%s8947_s5 + $0x18c] sm:$0xf0]  ;;  %v6034_v0 = vld [vmem:[%s8947_s5 + $0x190] sm:$0xf0]  ;;  %v5912_v3 = vld [vmem:[%s8947_s5 + $0x18] sm:$0xf] }
 0x188   :  { %v6449_v4 = vld [vmem:[%s8947_s5 + $0x94] sm:$0xf0] }
 0x189   :  { %v2577_v5 = vadd.f32 %v2576_v1, %v2564_v2  ;;  %v6033_v1 = vor.u32 %v6480_v62, %v6032_v60  ;;  %v6037_v2 = vor.u32 %v6464_v63, %v6034_v0  ;;  %v5913_v6 = vor.u32 %v6449_v4, %v5912_v3  ;;  %v6468_v60 = vld [vmem:[%s8947_s5 + $0x134] sm:$0xf]  ;;  %v5944_v0 = vld [vmem:[%s8947_s5 + $0x38] sm:$0xf]  ;;  %v6437_v4 = vld [vmem:[%s8947_s5 + $0x3c] sm:$0xf] }
 0x18a   :  { %v6073_v62 = vor.u32 %v6485_v55, %v6072_v54  ;;  %v6069_v3 = vor.u32 %v6468_v60, %v6066_v61  ;;  %v6441_v54 = vld [vmem:[%s8947_s5 + $0x5c] sm:$0xf] }
 0x18b   :  { %v2582_v7 = vsel %vm2580_vm0, %v2577_v5, 0.0  ;;  %2581 = vst.msk [vmem:[#allocation2] sm:$0x3] %vm2580_vm0, %v2577_v5  ;;  %3149 = vmatpush.bf16.msrb.mxu0 %v6033_v1  ;;  %3162 = vmatpush.bf16.msrb.mxu1 %v6037_v2  ;;  %v6453_v1 = vld [vmem:[%s8947_s5 + $0xb4] sm:$0xf0]  ;;  %v6065_v2 = vor.u32 %v6484_v59, %v6064_v58 }
 0x18c   :  { %v2583_v8 = vrot.slane %v2582_v7, 4  ;;  %3176 = vmatpush.bf16.msrb.mxu2 %v5913_v6  ;;  %v5936_v6 = vld [vmem:[%s8947_s5 + $0x30] sm:$0xf]  ;;  %v5978_v55 = vld [vmem:[%s8947_s5 + $0xd8] sm:$0xf0] }
 0x18d   :  { %v6440_v58 = vld [vmem:[%s8947_s5 + $0x54] sm:$0xf]  ;;  %v5981_v61 = vor.u32 %v6441_v54, %v5978_v55 }
 0x18e   :  { %v2584_v10 = vadd.f32 %v2583_v8, %v2582_v7  ;;  %v2565_v11 = vpop.f32.mrf.mxu2  ;;  %v5914_v7 = vld [vmem:[%s8947_s5 + $0x98] sm:$0xf0]  ;;  %v5904_v8 = vld [vmem:[%s8947_s5 + $0x10] sm:$0xf]  ;;  %v5970_v59 = vld [vmem:[%s8947_s5 + $0xd0] sm:$0xf0] }
 0x18f   :  { %v2578_v12 = vpop.f32.mrf.mxu3  ;;  %v5905_v11 = vor.u32 %v6448_v9, %v5904_v8  ;;  %v6436_v8 = vld [vmem:[%s8947_s5 + $0x34] sm:$0xf] }
 0x190   :  { %v2585_v13 = vrot.slane %v2584_v10, 2  ;;  %v6432_v12 = vld [vmem:[%s8947_s5 + $0x14] sm:$0xf] }
 0x191   :  { %3150 = vmatpush.bf16.msrb.mxu0 %v5905_v11  ;;  %v5938_v9 = vld [vmem:[%s8947_s5 + $0xb0] sm:$0xf0] }
 0x192   :  { %v2586_v15 = vadd.f32 %v2585_v13, %v2584_v10  ;;  %v5906_v13 = vld [vmem:[%s8947_s5 + $0x90] sm:$0xf0] }
 0x193   :  { %v5909_v14 = vor.u32 %v6432_v12, %v5906_v13  ;;  %v5941_v13 = vor.u32 %v6436_v8, %v5938_v9 }
 0x194   :  { %v2587_v16 = vrot.slane %v2586_v15, 1 }
 0x195   :  { %3163 = vmatpush.bf16.msrb.mxu1 %v5909_v14  ;;  %v6088_v14 = vld [vmem:[%s8947_s5 + $0x148] sm:$0xf] }
 0x196   :  { %v2588_v18 = vadd.f32 %v2587_v16, %v2586_v15 }
 0x198   :  { %v2596_v19 = vmul.f32 %v7438_v17, %v2588_v18 }
 0x19a   :  { %v7441_v20 = vsub.f32 %v2577_v5, %v2596_v19  ;;  %v6433_v5 = vld [vmem:[%s8947_s5 + $0x1c] sm:$0xf] }
 0x19b   :  { %v5917_v10 = vor.u32 %v6433_v5, %v5914_v7  ;;  %v5946_v5 = vld [vmem:[%s8947_s5 + $0xb8] sm:$0xf0]  ;;  %v6452_v7 = vld [vmem:[%s8947_s5 + $0xac] sm:$0xf0] }
 0x19c   :  { %v2598_v21 = vmul.f32 %v7441_v20, %v7441_v20  ;;  %v5949_v11 = vor.u32 %v6437_v4, %v5946_v5  ;;  %v5937_v12 = vor.u32 %v6452_v7, %v5936_v6  ;;  %v6112_v4 = vld [vmem:[%s8947_s5 + $0x160] sm:$0xf]  ;;  %v6474_v6 = vld [vmem:[%s8947_s5 + $0x164] sm:$0xf] }
 0x19d   :  { %3189 = vmatpush.bf16.msrb.mxu3 %v5917_v10  ;;  %v5945_v10 = vor.u32 %v6453_v1, %v5944_v0  ;;  %v6120_v0 = vld [vmem:[%s8947_s5 + $0x168] sm:$0xf]  ;;  %v6490_v5 = vld [vmem:[%s8947_s5 + $0x1dc] sm:$0xf0]  ;;  %v6114_v7 = vld [vmem:[%s8947_s5 + $0x1e0] sm:$0xf0] }
 0x19e   :  { %v2599_v22 = vsel %vm2580_vm0, %v2598_v21, 0.0  ;;  %v6491_v1 = vld [vmem:[%s8947_s5 + $0x1e4] sm:$0xf0] }
 0x19f   :  { %v2600_v23 = vrot.slane %v2599_v22, 4  ;;  %v6121_v8 = vor.u32 %v6491_v1, %v6120_v0 }
 0x1a1   :  { %v2601_v24 = vadd.f32 %v2600_v23, %v2599_v22  ;;  %v6497_v23 = vld [vmem:[%s8945_s3] ss:$0 sm:$0xff] }
 0x1a3   :  { %v2602_v31 = vrot.slane %v2601_v24, 2 }
 0x1a5   :  { %v2603_v37 = vadd.f32 %v2602_v31, %v2601_v24  ;;  %v6467_v31 = vld [vmem:[%s8947_s5 + $0x12c] sm:$0xf] }
 0x1a7   :  { %v2604_v46 = vrot.slane %v2603_v37, 1 }
 0x1a9   :  { %v2605_v52 = vadd.f32 %v2604_v46, %v2603_v37  ;;  %v5920_v46 = vld [vmem:[%s8947_s5 + $0x20] sm:$0xf] }
 0x1ab   :  { %v2606_v53 = vmul.f32 %v2605_v52, %v7438_v17  ;;  %v5921_v52 = vor.u32 %v6450_v47, %v5920_v46  ;;  %v6472_v46 = vld [vmem:[%s8947_s5 + $0x154] sm:$0xf] }
 0x1ac   :  { %v6098_v47 = vld [vmem:[%s8947_s5 + $0x1d0] sm:$0xf0] }
 0x1ad   :  { %v2607_v57 = vadd.f32 0.8, %v2606_v53  ;;  %v5925_v53 = vor.u32 %v6434_v48, %v5922_v49  ;;  %v6105_v48 = vor.u32 %v6489_v41, %v6104_v40  ;;  %v6445_v40 = vld [vmem:[%s8947_s5 + $0x7c] sm:$0xf] }
 0x1ae   :  { %v6010_v41 = vld [vmem:[%s8947_s5 + $0xf8] sm:$0xf0] }
 0x1af   :  { %6501 = vrsqrt.f32 %v2607_v57  ;;  %vm2614_vm3 = vweird.f32 %v2607_v57 }
 0x1b5   :  { %v6502_v15 = vpop.eup %6501 }
 0x1b6   :  { %v2609_v16 = vmul.f32 %v6502_v15, %v2607_v57  ;;  %vm2615_vm2 = vweird.f32 %v6502_v15  ;;  %v6074_v57 = vld [vmem:[%s8947_s5 + $0x1b8] sm:$0xf0] }
 0x1b7   :  { %vm2616_vm4 = vmor %vm2614_vm3, %vm2615_vm2  ;;  %v6077_v63 = vor.u32 %v6469_v56, %v6074_v57  ;;  %v5968_v56 = vld [vmem:[%s8947_s5 + $0x50] sm:$0xf] }
 0x1b8   :  { %v2610_v18 = vmul.f32 %v6502_v15, %v2609_v16  ;;  %v6471_v16 = vld [vmem:[%s8947_s5 + $0x14c] sm:$0xf]  ;;  %v6456_v57 = vld [vmem:[%s8947_s5 + $0xcc] sm:$0xf0] }
 0x1ba   :  { %v2611_v19 = vmul.f32 0.5, %v2610_v18  ;;  %v6090_v18 = vld [vmem:[%s8947_s5 + $0x1c8] sm:$0xf0] }
 0x1bc   :  { %v2612_v21 = vsub.f32 1.5, %v2611_v19  ;;  %v6080_v19 = vld [vmem:[%s8947_s5 + $0x140] sm:$0xf] }
 0x1be   :  { %v2613_v22 = vmul.f32 %v6502_v15, %v2612_v21  ;;  %v6486_v21 = vld [vmem:[%s8947_s5 + $0x1bc] sm:$0xf0] }
 0x1c0   :  { %v2617_v24 = vsel %vm2616_vm4, %v6502_v15, %v2613_v22  ;;  %v6487_v15 = vld [vmem:[%s8947_s5 + $0x1c4] sm:$0xf0]  ;;  %v6470_v22 = vld [vmem:[%s8947_s5 + $0x144] sm:$0xf] }
 0x1c1   :  { %v2618_v25 = vmul.f32 %v2617_v24, %v7441_v20  ;;  %v6058_v20 = vld [vmem:[%s8947_s5 + $0x1a8] sm:$0xf0]  ;;  %v6089_v24 = vor.u32 %v6487_v15, %v6088_v14 }
 0x1c2   :  { %v6061_v39 = vor.u32 %v6467_v31, %v6058_v20  ;;  %v5962_v31 = vld [vmem:[%s8947_s5 + $0xc8] sm:$0xf0]  ;;  %v5952_v20 = vld [vmem:[%s8947_s5 + $0x40] sm:$0xf] }
 0x1c3   :  { %v2623_v27 = vmul.f32 %v6497_v23, %v2618_v25  ;;  %v6082_v23 = vld [vmem:[%s8947_s5 + $0x1c0] sm:$0xf0]  ;;  %v6093_v25 = vor.u32 %v6471_v16, %v6090_v18  ;;  %v5965_v36 = vor.u32 %v6439_v30, %v5962_v31  ;;  %v6443_v14 = vld [vmem:[%s8947_s5 + $0x6c] sm:$0xf]  ;;  %v5984_v16 = vld [vmem:[%s8947_s5 + $0x60] sm:$0xf] }
 0x1c4   :  { %v6085_v29 = vor.u32 %v6470_v22, %v6082_v23  ;;  %v5994_v15 = vld [vmem:[%s8947_s5 + $0xe8] sm:$0xf0]  ;;  %v6458_v18 = vld [vmem:[%s8947_s5 + $0xdc] sm:$0xf0]  ;;  %v6128_v30 = vld [vmem:[%s8947_s5 + $0x170] sm:$0xf] }
 0x1c5   :  { %v2628_v28 = vadd.f32 %v6498_v26, %v2623_v27  ;;  %v5960_v26 = vld [vmem:[%s8947_s5 + $0x48] sm:$0xf]  ;;  %v5997_v23 = vor.u32 %v6443_v14, %v5994_v15  ;;  %v6492_v31 = vld [vmem:[%s8947_s5 + $0x1ec] sm:$0xf0] }
 0x1c6   :  { %v6455_v27 = vld [vmem:[%s8947_s5 + $0xc4] sm:$0xf0] }
 0x1c7   :  { %v2629_v34 = vmax.f32 %v2628_v28, 0.0  ;;  %v6081_v28 = vor.u32 %v6486_v21, %v6080_v19  ;;  %v5961_v35 = vor.u32 %v6455_v27, %v5960_v26  ;;  %v6442_v19 = vld [vmem:[%s8947_s5 + $0x64] sm:$0xf]  ;;  %v6136_v26 = vld [vmem:[%s8947_s5 + $0x178] sm:$0xf] }
 0x1c8   :  { %v5986_v21 = vld [vmem:[%s8947_s5 + $0xe0] sm:$0xf0]  ;;  %v6493_v27 = vld [vmem:[%s8947_s5 + $0x1f4] sm:$0xf0] }
 0x1c9   :  { %v7574_v37 = vpack.c.bf16 %v2629_v34, %v2629_v34  ;;  %v5954_v34 = vld [vmem:[%s8947_s5 + $0xc0] sm:$0xf0] }
 0x1cb   :  { %6142 = vmatmul.msk.bf16.vlgmr.msra.gmra.mxu0 %vm3087_vm5, %v7574_v37  ;;  %6143 = vmatmul.msk.bf16.vlgmr.msra.gmra.mxu1 %vm3087_vm5, %v7574_v37 }
 0x1cc   :  { %6144 = vmatmul.msk.bf16.vlgmr.msra.gmra.mxu2 %vm3087_vm5, %v7574_v37  ;;  %6145 = vmatmul.msk.bf16.vlgmr.msra.gmra.mxu3 %vm3087_vm5, %v7574_v37 }
 0x1cd   :  { %3227 = vmatpush.bf16.msra.mxu2 %v6057_v38  ;;  %3240 = vmatpush.bf16.msra.mxu3 %v6061_v39  ;;  %v5953_v38 = vor.u32 %v6454_v32, %v5952_v20  ;;  %v5957_v39 = vor.u32 %v6438_v33, %v5954_v34  ;;  %v6476_v20 = vld [vmem:[%s8947_s5 + $0x174] sm:$0xf]  ;;  %v6137_v33 = vor.u32 %v6493_v27, %v6136_v26 }
 0x1ce   :  { %3201 = vmatpush.bf16.msra.mxu0 %v6049_v42  ;;  %3214 = vmatpush.bf16.msra.mxu1 %v6053_v43  ;;  %v6473_v42 = vld [vmem:[%s8947_s5 + $0x15c] sm:$0xf]  ;;  %v6130_v32 = vld [vmem:[%s8947_s5 + $0x1f0] sm:$0xf0] }
 0x1cf   :  { %v6106_v43 = vld [vmem:[%s8947_s5 + $0x1d8] sm:$0xf0] }
 0x1d0   :  { %v6109_v49 = vor.u32 %v6473_v42, %v6106_v43  ;;  %v6000_v42 = vld [vmem:[%s8947_s5 + $0x70] sm:$0xf] }
 0x1d1   :  { %3228 = vmatpush.bf16.msra.mxu2 %v5929_v50  ;;  %3241 = vmatpush.bf16.msra.mxu3 %v5933_v51  ;;  %v5976_v50 = vld [vmem:[%s8947_s5 + $0x58] sm:$0xf]  ;;  %v6460_v43 = vld [vmem:[%s8947_s5 + $0xec] sm:$0xf0] }
 0x1d2   :  { %3202 = vmatpush.bf16.msra.mxu0 %v5921_v52  ;;  %3215 = vmatpush.bf16.msra.mxu1 %v5925_v53  ;;  %v6457_v51 = vld [vmem:[%s8947_s5 + $0xd4] sm:$0xf0]  ;;  %v6097_v52 = vor.u32 %v6488_v45, %v6096_v44  ;;  %v6101_v53 = vor.u32 %v6472_v46, %v6098_v47  ;;  %v6444_v44 = vld [vmem:[%s8947_s5 + $0x74] sm:$0xf]  ;;  %v6013_v47 = vor.u32 %v6445_v40, %v6010_v41 }
 0x1d3   :  { %v5977_v60 = vor.u32 %v6457_v51, %v5976_v50  ;;  %v6002_v45 = vld [vmem:[%s8947_s5 + $0xf0] sm:$0xf0]  ;;  %v7907_v50 = vld [vmem:[%s8948_s6] sm:$0xff] }
 0x1d4   :  { %v2703_v51 = vperm.slane %v7907_v50, 0 }
 0x1db   :  { %6146 = vmatmul.msk.bf16.vlgmr.msrb.gmra.mxu0 %vm3087_vm5, %v7574_v37  ;;  %6147 = vmatmul.msk.bf16.vlgmr.msrb.gmra.mxu1 %vm3087_vm5, %v7574_v37 }
 0x1dc   :  { %6148 = vmatmul.msk.bf16.vlgmr.msrb.gmra.mxu2 %vm3087_vm5, %v7574_v37  ;;  %6149 = vmatmul.msk.bf16.vlgmr.msrb.gmra.mxu3 %vm3087_vm5, %v7574_v37 }
 0x1dd   :  { %3279 = vmatpush.bf16.msrb.mxu2 %v6073_v62  ;;  %3292 = vmatpush.bf16.msrb.mxu3 %v6077_v63  ;;  %v5969_v62 = vor.u32 %v6456_v57, %v5968_v56  ;;  %v5973_v63 = vor.u32 %v6440_v58, %v5970_v59 }
 0x1de   :  { %3253 = vmatpush.bf16.msrb.mxu0 %v6065_v2  ;;  %3266 = vmatpush.bf16.msrb.mxu1 %v6069_v3  ;;  %v6475_v2 = vld [vmem:[%s8947_s5 + $0x16c] sm:$0xf] }
 0x1df   :  { %v6122_v3 = vld [vmem:[%s8947_s5 + $0x1e8] sm:$0xf0] }
 0x1e0   :  { %v6125_v9 = vor.u32 %v6475_v2, %v6122_v3 }
 0x1e1   :  { %3280 = vmatpush.bf16.msrb.mxu2 %v5945_v10  ;;  %3293 = vmatpush.bf16.msrb.mxu3 %v5949_v11  ;;  %v5992_v10 = vld [vmem:[%s8947_s5 + $0x68] sm:$0xf] }
 0x1e2   :  { %3254 = vmatpush.bf16.msrb.mxu0 %v5937_v12  ;;  %3267 = vmatpush.bf16.msrb.mxu1 %v5941_v13  ;;  %v6459_v11 = vld [vmem:[%s8947_s5 + $0xe4] sm:$0xf0]  ;;  %v6113_v12 = vor.u32 %v6490_v5, %v6112_v4  ;;  %v6117_v13 = vor.u32 %v6474_v6, %v6114_v7 }
 0x1e3   :  { %v5993_v22 = vor.u32 %v6459_v11, %v5992_v10 }
 0x1eb   :  { %6150 = vmatmul.msk.bf16.vlgmr.msra.gmra.mxu0 %vm3087_vm5, %v7574_v37  ;;  %6151 = vmatmul.msk.bf16.vlgmr.msra.gmra.mxu1 %vm3087_vm5, %v7574_v37 }
 0x1ec   :  { %6152 = vmatmul.msk.bf16.vlgmr.msra.gmra.mxu2 %vm3087_vm5, %v7574_v37  ;;  %6153 = vmatmul.msk.bf16.vlgmr.msra.gmra.mxu3 %vm3087_vm5, %v7574_v37 }
 0x1ed   :  { %3331 = vmatpush.bf16.msra.mxu2 %v6089_v24  ;;  %3344 = vmatpush.bf16.msra.mxu3 %v6093_v25  ;;  %v5985_v24 = vor.u32 %v6458_v18, %v5984_v16  ;;  %v5989_v25 = vor.u32 %v6442_v19, %v5986_v21  ;;  %v2707_v19 = vperm.slane %v7907_v50, 4  ;;  %v2708_v21 = vperm.slane %v7907_v50, 5 }
 0x1ee   :  { %3305 = vmatpush.bf16.msra.mxu0 %v6081_v28  ;;  %3318 = vmatpush.bf16.msra.mxu1 %v6085_v29  ;;  %v6477_v28 = vld [vmem:[%s8947_s5 + $0x17c] sm:$0xf] }
 0x1ef   :  { %v6138_v29 = vld [vmem:[%s8947_s5 + $0x1f8] sm:$0xf0] }
 0x1f0   :  { %v6141_v34 = vor.u32 %v6477_v28, %v6138_v29 }
 0x1f1   :  { %3332 = vmatpush.bf16.msra.mxu2 %v5961_v35  ;;  %3345 = vmatpush.bf16.msra.mxu3 %v5965_v36  ;;  %v6008_v35 = vld [vmem:[%s8947_s5 + $0x78] sm:$0xf] }
 0x1f2   :  { %3306 = vmatpush.bf16.msra.mxu0 %v5953_v38  ;;  %3319 = vmatpush.bf16.msra.mxu1 %v5957_v39  ;;  %v6461_v36 = vld [vmem:[%s8947_s5 + $0xf4] sm:$0xf0]  ;;  %v6129_v38 = vor.u32 %v6492_v31, %v6128_v30  ;;  %v6133_v39 = vor.u32 %v6476_v20, %v6130_v32 }
 0x1f3   :  { %v6009_v46 = vor.u32 %v6461_v36, %v6008_v35 }
 0x1fb   :  { %6154 = vmatmul.msk.bf16.vlgmr.msrb.gmra.mxu0 %vm3087_vm5, %v7574_v37  ;;  %6155 = vmatmul.msk.bf16.vlgmr.msrb.gmra.mxu1 %vm3087_vm5, %v7574_v37 }
 0x1fc   :  { %6156 = vmatmul.msk.bf16.vlgmr.msrb.gmra.mxu2 %vm3087_vm5, %v7574_v37  ;;  %6157 = vmatmul.msk.bf16.vlgmr.msrb.gmra.mxu3 %vm3087_vm5, %v7574_v37 }
 0x1fd   :  { %3383 = vmatpush.bf16.msrb.mxu2 %v6105_v48  ;;  %3396 = vmatpush.bf16.msrb.mxu3 %v6109_v49  ;;  %v6001_v48 = vor.u32 %v6460_v43, %v6000_v42  ;;  %v6005_v49 = vor.u32 %v6444_v44, %v6002_v45 }
 0x1fe   :  { %3357 = vmatpush.bf16.msrb.mxu0 %v6097_v52  ;;  %3370 = vmatpush.bf16.msrb.mxu1 %v6101_v53  ;;  %v2704_v52 = vperm.slane %v7907_v50, 1 }
 0x201   :  { %3384 = vmatpush.bf16.msrb.mxu2 %v5977_v60  ;;  %3397 = vmatpush.bf16.msrb.mxu3 %v5981_v61  ;;  %v2705_v60 = vperm.slane %v7907_v50, 2  ;;  %v2706_v61 = vperm.slane %v7907_v50, 3 }
 0x202   :  { %3358 = vmatpush.bf16.msrb.mxu0 %v5969_v62  ;;  %3371 = vmatpush.bf16.msrb.mxu1 %v5973_v63 }
 0x20b   :  { %6158 = vmatmul.msk.bf16.vlgmr.msra.gmra.mxu0 %vm3087_vm5, %v7574_v37  ;;  %6159 = vmatmul.msk.bf16.vlgmr.msra.gmra.mxu1 %vm3087_vm5, %v7574_v37 }
 0x20c   :  { %6160 = vmatmul.msk.bf16.vlgmr.msra.gmra.mxu2 %vm3087_vm5, %v7574_v37  ;;  %6161 = vmatmul.msk.bf16.vlgmr.msra.gmra.mxu3 %vm3087_vm5, %v7574_v37 }
 0x20d   :  { %3435 = vmatpush.bf16.msra.mxu2 %v6121_v8  ;;  %3448 = vmatpush.bf16.msra.mxu3 %v6125_v9 }
 0x20e   :  { %3409 = vmatpush.bf16.msra.mxu0 %v6113_v12  ;;  %3422 = vmatpush.bf16.msra.mxu1 %v6117_v13 }
 0x211   :  { %3436 = vmatpush.bf16.msra.mxu2 %v5993_v22  ;;  %3449 = vmatpush.bf16.msra.mxu3 %v5997_v23 }
 0x212   :  { %3410 = vmatpush.bf16.msra.mxu0 %v5985_v24  ;;  %3423 = vmatpush.bf16.msra.mxu1 %v5989_v25 }
 0x21b   :  { %6162 = vmatmul.msk.bf16.vlgmr.msrb.gmra.mxu0 %vm3087_vm5, %v7574_v37  ;;  %6163 = vmatmul.msk.bf16.vlgmr.msrb.gmra.mxu1 %vm3087_vm5, %v7574_v37 }
 0x21c   :  { %6164 = vmatmul.msk.bf16.vlgmr.msrb.gmra.mxu2 %vm3087_vm5, %v7574_v37  ;;  %6165 = vmatmul.msk.bf16.vlgmr.msrb.gmra.mxu3 %vm3087_vm5, %v7574_v37 }
 0x21d   :  { %3487 = vmatpush.bf16.msrb.mxu2 %v6137_v33  ;;  %3500 = vmatpush.bf16.msrb.mxu3 %v6141_v34 }
 0x21e   :  { %3461 = vmatpush.bf16.msrb.mxu0 %v6129_v38  ;;  %3474 = vmatpush.bf16.msrb.mxu1 %v6133_v39 }
 0x221   :  { %3488 = vmatpush.bf16.msrb.mxu2 %v6009_v46  ;;  %3501 = vmatpush.bf16.msrb.mxu3 %v6013_v47 }
 0x222   :  { %3462 = vmatpush.bf16.msrb.mxu0 %v6001_v48  ;;  %3475 = vmatpush.bf16.msrb.mxu1 %v6005_v49 }
 0x22b   :  { %6166 = vmatmul.msk.bf16.vlgmr.msra.gmra.mxu0 %vm3087_vm5, %v7574_v37  ;;  %6167 = vmatmul.msk.bf16.vlgmr.msra.gmra.mxu1 %vm3087_vm5, %v7574_v37 }
 0x22c   :  { %6168 = vmatmul.msk.bf16.vlgmr.msra.gmra.mxu2 %vm3087_vm5, %v7574_v37  ;;  %6169 = vmatmul.msk.bf16.vlgmr.msra.gmra.mxu3 %vm3087_vm5, %v7574_v37 }
 0x23b   :  { %6170 = vmatmul.msk.bf16.vlgmr.msrb.gmra.mxu0 %vm3087_vm5, %v7574_v37  ;;  %6171 = vmatmul.msk.bf16.vlgmr.msrb.gmra.mxu1 %vm3087_vm5, %v7574_v37 }
 0x23c   :  { %6172 = vmatmul.msk.bf16.vlgmr.msrb.gmra.mxu2 %vm3087_vm5, %v7574_v37  ;;  %6173 = vmatmul.msk.bf16.vlgmr.msrb.gmra.mxu3 %vm3087_vm5, %v7574_v37 }
 0x248   :  { %v3100_v53 = vpop.f32.mrf.mxu0  ;;  %v3113_v54 = vpop.f32.mrf.mxu1 }
 0x249   :  { %v3101_v55 = vadd.f32 %v3100_v53, %v2703_v51  ;;  %v3114_v56 = vadd.f32 %v3113_v54, %v2704_v52 }
 0x24b   :  { %v3508_v57 = vsel %vm3507_vm6, %v3101_v55, 0.0  ;;  %v3515_v58 = vsel %vm3507_vm6, %v3114_v56, 0.0 }
 0x24c   :  { %v3509_v59 = vrot.slane %v3508_v57, 4  ;;  %v3516_v37 = vrot.slane %v3515_v58, 4 }
 0x24e   :  { %v3510_v62 = vadd.f32 %v3509_v59, %v3508_v57  ;;  %v3517_v63 = vadd.f32 %v3516_v37, %v3515_v58 }
 0x24f   :  { %v3126_v0 = vpop.f32.mrf.mxu2  ;;  %v3139_v1 = vpop.f32.mrf.mxu3 }
 0x250   :  { %v3511_v2 = vrot.slane %v3510_v62, 2  ;;  %v3518_v3 = vrot.slane %v3517_v63, 2  ;;  %v3127_v4 = vadd.f32 %v3126_v0, %v2705_v60  ;;  %v3140_v5 = vadd.f32 %v3139_v1, %v2706_v61  ;;  %v3102_v6 = vpop.f32.mrf.mxu0  ;;  %v3115_v7 = vpop.f32.mrf.mxu1 }
 0x251   :  { %v2709_v60 = vperm.slane %v7907_v50, 6  ;;  %v2710_v7 = vperm.slane %v7907_v50, 7 }
 0x252   :  { %v3512_v8 = vadd.f32 %v3511_v2, %v3510_v62  ;;  %v3519_v9 = vadd.f32 %v3518_v3, %v3517_v63  ;;  %v3522_v10 = vsel %vm3507_vm6, %v3127_v4, 0.0  ;;  %v3529_v11 = vsel %vm3507_vm6, %v3140_v5, 0.0 }
 0x253   :  { %v3523_v12 = vrot.slane %v3522_v10, 4  ;;  %v3530_v13 = vrot.slane %v3529_v11, 4 }
 0x254   :  { %v3513_v14 = vrot.slane %v3512_v8, 1  ;;  %v3520_v15 = vrot.slane %v3519_v9, 1 }
 0x255   :  { %v3524_v16 = vadd.f32 %v3523_v12, %v3522_v10  ;;  %v3531_v18 = vadd.f32 %v3530_v13, %v3529_v11 }
 0x256   :  { %v3514_v22 = vadd.f32 %v3513_v14, %v3512_v8  ;;  %v3521_v23 = vadd.f32 %v3520_v15, %v3519_v9 }
 0x257   :  { %v3525_v24 = vrot.slane %v3524_v16, 2  ;;  %v3532_v25 = vrot.slane %v3531_v18, 2  ;;  %v3128_v26 = vpop.f32.mrf.mxu2  ;;  %v3141_v27 = vpop.f32.mrf.mxu3 }
 0x258   :  { %v3732_v28 = vmul.f32 %v3514_v22, %v7438_v17  ;;  %v3733_v29 = vmul.f32 %v3521_v23, %v7438_v17  ;;  %v3152_v30 = vpop.f32.mrf.mxu0  ;;  %v3165_v31 = vpop.f32.mrf.mxu1 }
 0x259   :  { %v3526_v20 = vadd.f32 %v3525_v24, %v3524_v16  ;;  %v3533_v32 = vadd.f32 %v3532_v25, %v3531_v18  ;;  %v7921_v33 = vadd.f32 %v3152_v30, %v2707_v19  ;;  %v7923_v34 = vadd.f32 %v3165_v31, %v2708_v21 }
 0x25a   :  { %v7925_v35 = vsub.f32 %v3101_v55, %v3732_v28  ;;  %v7927_v36 = vsub.f32 %v3114_v56, %v3733_v29 }
 0x25b   :  { %v3527_v38 = vrot.slane %v3526_v20, 1  ;;  %v3534_v39 = vrot.slane %v3533_v32, 1  ;;  %v3536_v40 = vsel %vm3507_vm6, %v7921_v33, 0.0  ;;  %v3543_v41 = vsel %vm3507_vm6, %v7923_v34, 0.0 }
 0x25c   :  { %v3796_v42 = vmul.f32 %v7925_v35, %v7925_v35  ;;  %v3797_v43 = vmul.f32 %v7927_v36, %v7927_v36  ;;  %v3537_v44 = vrot.slane %v3536_v40, 4  ;;  %v3544_v45 = vrot.slane %v3543_v41, 4 }
 0x25d   :  { %v3528_v46 = vadd.f32 %v3527_v38, %v3526_v20  ;;  %v3535_v47 = vadd.f32 %v3534_v39, %v3533_v32 }
 0x25e   :  { %v3828_v48 = vsel %vm3507_vm6, %v3796_v42, 0.0  ;;  %v3835_v49 = vsel %vm3507_vm6, %v3797_v43, 0.0  ;;  %v3538_v51 = vadd.f32 %v3537_v44, %v3536_v40  ;;  %v3545_v52 = vadd.f32 %v3544_v45, %v3543_v41 }
 0x25f   :  { %v3829_v53 = vrot.slane %v3828_v48, 4  ;;  %v3836_v54 = vrot.slane %v3835_v49, 4  ;;  %v3734_v55 = vmul.f32 %v3528_v46, %v7438_v17  ;;  %v3735_v56 = vmul.f32 %v3535_v47, %v7438_v17  ;;  %v3178_v57 = vpop.f32.mrf.mxu2  ;;  %v3191_v58 = vpop.f32.mrf.mxu3 }
 0x260   :  { %v3539_v59 = vrot.slane %v3538_v51, 2  ;;  %v3546_v37 = vrot.slane %v3545_v52, 2  ;;  %v3154_v61 = vpop.f32.mrf.mxu0  ;;  %v3167_v62 = vpop.f32.mrf.mxu1  ;;  %v7951_v14 = vadd.f32 %v3178_v57, %v2709_v60  ;;  %v7955_v24 = vadd.f32 %v3191_v58, %v2710_v7  ;;  %v7988_v58 = vld [vmem:[%s8949_s7] sm:$0xff] }
 0x261   :  { %v3830_v63 = vadd.f32 %v3829_v53, %v3828_v48  ;;  %v3837_v0 = vadd.f32 %v3836_v54, %v3835_v49  ;;  %v7942_v1 = vsub.f32 %v3127_v4, %v3734_v55  ;;  %v7944_v2 = vsub.f32 %v3140_v5, %v3735_v56 }
 0x262   :  { %v3540_v3 = vadd.f32 %v3539_v59, %v3538_v51  ;;  %v3547_v6 = vadd.f32 %v3546_v37, %v3545_v52  ;;  %v3550_v42 = vsel %vm3507_vm6, %v7951_v14, 0.0  ;;  %v3557_v46 = vsel %vm3507_vm6, %v7955_v24, 0.0 }
 0x263   :  { %v3831_v8 = vrot.slane %v3830_v63, 2  ;;  %v3838_v9 = vrot.slane %v3837_v0, 2  ;;  %v3798_v10 = vmul.f32 %v7942_v1, %v7942_v1  ;;  %v3799_v11 = vmul.f32 %v7944_v2, %v7944_v2 }
 0x264   :  { %v3541_v12 = vrot.slane %v3540_v3, 1  ;;  %v3548_v13 = vrot.slane %v3547_v6, 1  ;;  %v3551_v53 = vrot.slane %v3550_v42, 4  ;;  %v3558_v56 = vrot.slane %v3557_v46, 4 }
 0x265   :  { %v3832_v4 = vadd.f32 %v3831_v8, %v3830_v63  ;;  %v3839_v15 = vadd.f32 %v3838_v9, %v3837_v0  ;;  %v3842_v5 = vsel %vm3507_vm6, %v3798_v10, 0.0  ;;  %v3849_v16 = vsel %vm3507_vm6, %v3799_v11, 0.0  ;;  %v7995_v63 = vld [vmem:[%s8950_s8] sm:$0xff] }
 0x266   :  { %v3843_v18 = vrot.slane %v3842_v5, 4  ;;  %v3850_v50 = vrot.slane %v3849_v16, 4  ;;  %v3542_v19 = vadd.f32 %v3541_v12, %v3540_v3  ;;  %v3549_v21 = vadd.f32 %v3548_v13, %v3547_v6 }
 0x267   :  { %v3833_v22 = vrot.slane %v3832_v4, 1  ;;  %v3840_v23 = vrot.slane %v3839_v15, 1  ;;  %v3180_v25 = vpop.f32.mrf.mxu2  ;;  %v3193_v26 = vpop.f32.mrf.mxu3  ;;  %v3552_v6 = vadd.f32 %v3551_v53, %v3550_v42  ;;  %v3559_v7 = vadd.f32 %v3558_v56, %v3557_v46 }
 0x268   :  { %v3844_v27 = vadd.f32 %v3843_v18, %v3842_v5  ;;  %v3851_v28 = vadd.f32 %v3850_v50, %v3849_v16  ;;  %v3736_v29 = vmul.f32 %v3542_v19, %v7438_v17  ;;  %v7958_v30 = vpop.f32.mrf.mxu0  ;;  %v7960_v31 = vpop.f32.mrf.mxu1  ;;  %v3737_v38 = vmul.f32 %v3549_v21, %v7438_v17 }
 0x269   :  { %v3834_v20 = vadd.f32 %v3833_v22, %v3832_v4  ;;  %v3841_v32 = vadd.f32 %v3840_v23, %v3839_v15  ;;  %v4476_v10 = vperm.slane %v7988_v58, 0  ;;  %v4580_v13 = vperm.slane %v7995_v63, 0 }
 0x26a   :  { %v3845_v39 = vrot.slane %v3844_v27, 2  ;;  %v3852_v40 = vrot.slane %v3851_v28, 2  ;;  %v7964_v41 = vsub.f32 %v7921_v33, %v3736_v29  ;;  %v7971_v45 = vsub.f32 %v7923_v34, %v3737_v38 }
 0x26b   :  { %v4052_v43 = vmul.f32 %v3834_v20, %v7438_v17  ;;  %v4053_v44 = vmul.f32 %v3841_v32, %v7438_v17  ;;  %v4477_v4 = vperm.slane %v7988_v58, 1  ;;  %v3553_v19 = vrot.slane %v3552_v6, 2 }
 0x26c   :  { %v3846_v47 = vadd.f32 %v3845_v39, %v3844_v27  ;;  %v3853_v48 = vadd.f32 %v3852_v40, %v3851_v28  ;;  %v3800_v49 = vmul.f32 %v7964_v41, %v7964_v41  ;;  %v3801_v52 = vmul.f32 %v7971_v45, %v7971_v45  ;;  %v8021_v40 = vld [vmem:[%s8948_s6 + $0x8] sm:$0xff] }
 0x26d   :  { %v7977_v33 = vadd.f32 1e-05, %v4052_v43  ;;  %v7979_v51 = vadd.f32 1e-05, %v4053_v44  ;;  %v3560_v21 = vrot.slane %v3559_v7, 2  ;;  %v4581_v25 = vperm.slane %v7995_v63, 1 }
 0x26e   :  { %v3847_v54 = vrot.slane %v3846_v47, 1  ;;  %v3854_v55 = vrot.slane %v3853_v48, 1  ;;  %v3856_v34 = vsel %vm3507_vm6, %v3800_v49, 0.0  ;;  %v3863_v60 = vsel %vm3507_vm6, %v3801_v52, 0.0 }
 0x26f   :  { %6503 = vrsqrt.f32 %v7977_v33  ;;  %v3857_v57 = vrot.slane %v3856_v34, 4  ;;  %v3864_v3 = vrot.slane %v3863_v60, 4  ;;  %v4478_v26 = vperm.slane %v7988_v58, 2  ;;  %v8023_v42 = vpop.f32.mrf.mxu2 }
 0x270   :  { %6505 = vrsqrt.f32 %v7979_v51  ;;  %v3848_v59 = vadd.f32 %v3847_v54, %v3846_v47  ;;  %v3855_v37 = vadd.f32 %v3854_v55, %v3853_v48  ;;  %v3206_v61 = vpop.f32.mrf.mxu0  ;;  %v3219_v62 = vpop.f32.mrf.mxu1  ;;  %v4582_v28 = vperm.slane %v7995_v63, 2 }
 0x271   :  { %v3858_v0 = vadd.f32 %v3857_v57, %v3856_v34  ;;  %v3865_v12 = vadd.f32 %v3864_v3, %v3863_v60  ;;  %v4479_v29 = vperm.slane %v7988_v58, 3  ;;  %v4583_v32 = vperm.slane %v7995_v63, 3  ;;  %v8027_v47 = vpop.f32.mrf.mxu3 }
 0x272   :  { %v4054_v8 = vmul.f32 %v3848_v59, %v7438_v17  ;;  %v4055_v9 = vmul.f32 %v3855_v37, %v7438_v17  ;;  %vm4122_vm7 = vweird.f32 %v7977_v33  ;;  %v3554_v44 = vadd.f32 %v3553_v19, %v3552_v6 }
 0x273   :  { %v3859_v11 = vrot.slane %v3858_v0, 2  ;;  %v3866_v50 = vrot.slane %v3865_v12, 2  ;;  %v3561_v46 = vadd.f32 %v3560_v21, %v3559_v7  ;;  %vm4132_vm8 = vweird.f32 %v7979_v51 }
 0x274   :  { %v8002_v15 = vadd.f32 1e-05, %v4054_v8  ;;  %v8004_v5 = vadd.f32 1e-05, %v4055_v9  ;;  %v3555_v54 = vrot.slane %v3554_v44, 1  ;;  %v2711_v55 = vperm.slane %v8021_v40, 0 }
 0x275   :  { %v6504_v16 = vpop.eup %6503  ;;  %v3860_v18 = vadd.f32 %v3859_v11, %v3858_v0  ;;  %v3867_v39 = vadd.f32 %v3866_v50, %v3865_v12  ;;  %v2712_v34 = vperm.slane %v8021_v40, 1  ;;  %v3562_v0 = vrot.slane %v3561_v46, 1 }
 0x276   :  { %v8006_v22 = vpop.eup %6505  ;;  %v4117_v23 = vmul.f32 %v6504_v16, %v7977_v33  ;;  %6507 = vrsqrt.f32 %v8002_v15  ;;  %vm4123_vm9 = vweird.f32 %v6504_v16  ;;  %v3556_v8 = vadd.f32 %v3555_v54, %v3554_v44 }
 0x277   :  { %v4127_v27 = vmul.f32 %v8006_v22, %v7979_v51  ;;  %6509 = vrsqrt.f32 %v8004_v5  ;;  %v3861_v38 = vrot.slane %v3860_v18, 1  ;;  %v3868_v52 = vrot.slane %v3867_v39, 1  ;;  %vm4124_vm11 = vmor %vm4122_vm7, %vm4123_vm9 }
 0x278   :  { %v4118_v20 = vmul.f32 %v6504_v16, %v4117_v23  ;;  %vm4133_vm10 = vweird.f32 %v8006_v22  ;;  %v4480_v21 = vperm.slane %v7988_v58, 4  ;;  %v3232_v23 = vpop.f32.mrf.mxu2  ;;  %v3563_v44 = vadd.f32 %v3562_v0, %v3561_v46 }
 0x279   :  { %v4128_v43 = vmul.f32 %v8006_v22, %v4127_v27  ;;  %v3862_v49 = vadd.f32 %v3861_v38, %v3860_v18  ;;  %v3869_v37 = vadd.f32 %v3868_v52, %v3867_v39  ;;  %v8043_v18 = vadd.f32 %v7958_v30, %v2711_v55  ;;  %vm8052_vm12 = vmor %vm4132_vm8, %vm4133_vm10  ;;  %v3245_v38 = vpop.f32.mrf.mxu3 }
 0x27a   :  { %v4119_v48 = vmul.f32 0.5, %v4118_v20  ;;  %v4584_v30 = vperm.slane %v7995_v63, 4  ;;  %vm4142_vm15 = vweird.f32 %v8002_v15  ;;  %vm4152_vm0 = vweird.f32 %v8004_v5 }
 0x27b   :  { %v4129_v53 = vmul.f32 0.5, %v4128_v43  ;;  %v4056_v59 = vmul.f32 %v3862_v49, %v7438_v17  ;;  %v4057_v12 = vmul.f32 %v3869_v37, %v7438_v17  ;;  %v3564_v51 = vsel %vm3507_vm6, %v8043_v18, 0.0 }
 0x27c   :  { %v6508_v56 = vpop.eup %6507  ;;  %v4120_v57 = vsub.f32 1.5, %v4119_v48  ;;  %vm4772_vm9 = vcmask 1042434  }
 0x27d   :  { %v6510_v60 = vpop.eup %6509  ;;  %v4130_v61 = vsub.f32 1.5, %v4129_v53  ;;  %v4137_v62 = vmul.f32 %v6508_v56, %v8002_v15  ;;  %v8036_v7 = vadd.f32 1e-05, %v4056_v59  ;;  %vm4143_vm13 = vweird.f32 %v6508_v56 }
 0x27e   :  { %v4121_v3 = vmul.f32 %v6504_v16, %v4120_v57  ;;  %v4147_v6 = vmul.f32 %v6510_v60, %v8004_v5  ;;  %vm4153_vm14 = vweird.f32 %v6510_v60  ;;  %v3739_v53 = vmul.f32 %v3563_v44, %v7438_v17  ;;  %vm4144_vm1 = vmor %vm4142_vm15, %vm4143_vm13 }
 0x27f   :  { %v4131_v9 = vmul.f32 %v8006_v22, %v4130_v61  ;;  %v4138_v11 = vmul.f32 %v6508_v56, %v4137_v62  ;;  %6511 = vrsqrt.f32 %v8036_v7  ;;  %vm4154_vm2 = vmor %vm4152_vm0, %vm4153_vm14  ;;  %v3565_v61 = vrot.slane %v3564_v51, 4 }
 0x280   :  { %v4125_v50 = vsel %vm4124_vm11, %v6504_v16, %v4121_v3  ;;  %v4148_v19 = vmul.f32 %v6510_v60, %v4147_v6  ;;  %v8057_v16 = vadd.f32 1e-05, %v4057_v12  ;;  %v8082_v15 = vadd.f32 %v7960_v31, %v2712_v34  ;;  %v8100_v12 = vpop.f32.mrf.mxu0 }
 0x281   :  { %v4436_v27 = vmul.f32 %v4125_v50, %v7925_v35  ;;  %v4139_v20 = vmul.f32 0.5, %v4138_v11  ;;  %v4135_v39 = vsel %vm8052_vm12, %v8006_v22, %v4131_v9  ;;  %v3738_v35 = vmul.f32 %v3556_v8, %v7438_v17  ;;  %v8102_v50 = vpop.f32.mrf.mxu1 }
 0x282   :  { %v4149_v43 = vmul.f32 0.5, %v4148_v19  ;;  %6513 = vrsqrt.f32 %v8057_v16  ;;  %v4437_v22 = vmul.f32 %v4135_v39, %v7927_v36  ;;  %vm4162_vm3 = vweird.f32 %v8036_v7 }
 0x283   :  { %v4140_v48 = vsub.f32 1.5, %v4139_v20  ;;  %v8067_v52 = vsub.f32 %v7951_v14, %v3738_v35  ;;  %v4540_v55 = vmul.f32 %v4476_v10, %v4436_v27  ;;  %v8078_v14 = vsub.f32 %v7955_v24, %v3739_v53 }
 0x284   :  { %v4150_v49 = vsub.f32 1.5, %v4149_v43  ;;  %v4541_v31 = vmul.f32 %v4477_v4, %v4437_v22  ;;  %vm4172_vm4 = vweird.f32 %v8057_v16  ;;  %v3566_v11 = vadd.f32 %v3565_v61, %v3564_v51 }
 0x285   :  { %v4141_v54 = vmul.f32 %v6508_v56, %v4140_v48  ;;  %v6512_v46 = vpop.eup %6511  ;;  %v3802_v59 = vmul.f32 %v8067_v52, %v8067_v52  ;;  %v4644_v8 = vadd.f32 %v4580_v13, %v4540_v55  ;;  %v3571_v19 = vsel %vm3507_vm6, %v8082_v15, 0.0 }
 0x286   :  { %v4151_v57 = vmul.f32 %v6510_v60, %v4150_v49  ;;  %v4157_v36 = vmul.f32 %v6512_v46, %v8036_v7  ;;  %vm4163_vm5 = vweird.f32 %v6512_v46  ;;  %v4645_v33 = vadd.f32 %v4581_v25, %v4541_v31 }
 0x287   :  { %v4145_v37 = vsel %vm4144_vm1, %v6508_v56, %v4141_v54  ;;  %v3870_v10 = vsel %vm3507_vm6, %v3802_v59, 0.0  ;;  %v3803_v56 = vmul.f32 %v8078_v14, %v8078_v14  ;;  %v3567_v44 = vrot.slane %v3566_v11, 2  ;;  %vm4164_vm7 = vmor %vm4162_vm3, %vm4163_vm5 }
 0x288   :  { %v4438_v5 = vmul.f32 %v4145_v37, %v7942_v1  ;;  %v4155_v62 = vsel %vm4154_vm2, %v6510_v60, %v4151_v57  ;;  %v6514_v0 = vpop.eup %6513  ;;  %v4158_v24 = vmul.f32 %v6512_v46, %v4157_v36  ;;  %v3871_v6 = vrot.slane %v3870_v10, 4 }
 0x289   :  { %v4439_v3 = vmul.f32 %v4155_v62, %v7944_v2  ;;  %v4167_v34 = vmul.f32 %v6514_v0, %v8057_v16  ;;  %vm4173_vm8 = vweird.f32 %v6514_v0  ;;  %v4676_v49 = vmax.f32 %v4644_v8, 0.0  ;;  %v3271_v62 = vpop.f32.mrf.mxu1 }
 0x28a   :  { %v4542_v1 = vmul.f32 %v4478_v26, %v4438_v5  ;;  %v4159_v60 = vmul.f32 0.5, %v4158_v24  ;;  %v3872_v9 = vadd.f32 %v3871_v6, %v3870_v10  ;;  %v3877_v26 = vsel %vm3507_vm6, %v3803_v56, 0.0  ;;  %vm4174_vm10 = vmor %vm4172_vm4, %vm4173_vm8  ;;  %v3258_v5 = vpop.f32.mrf.mxu0 }
 0x28b   :  { %v4543_v2 = vmul.f32 %v4479_v29, %v4439_v3  ;;  %v4168_v4 = vmul.f32 %v6514_v0, %v4167_v34  ;;  %v3878_v39 = vrot.slane %v3877_v26, 4  ;;  %v3568_v54 = vadd.f32 %v3567_v44, %v3566_v11 }
 0x28c   :  { %v4646_v13 = vadd.f32 %v4582_v28, %v4542_v1  ;;  %v4160_v29 = vsub.f32 1.5, %v4159_v60  ;;  %v3873_v27 = vrot.slane %v3872_v9, 2  ;;  %v4677_v55 = vmax.f32 %v4645_v33, 0.0 }
 0x28d   :  { %v4647_v23 = vadd.f32 %v4583_v32, %v4543_v2  ;;  %v4169_v38 = vmul.f32 0.5, %v4168_v4  ;;  %v3879_v51 = vadd.f32 %v3878_v39, %v3877_v26  ;;  %v3572_v32 = vrot.slane %v3571_v19, 4  ;;  %v8131_v4 = vpop.f32.mrf.mxu2 }
 0x28e   :  { %v4678_v20 = vmax.f32 %v4646_v13, 0.0  ;;  %v4161_v28 = vmul.f32 %v6512_v46, %v4160_v29  ;;  %v3874_v35 = vadd.f32 %v3873_v27, %v3872_v9  ;;  %v4481_v7 = vperm.slane %v7988_v58, 5 }
 0x28f   :  { %v4679_v43 = vmax.f32 %v4647_v23, 0.0  ;;  %v4170_v48 = vsub.f32 1.5, %v4169_v38  ;;  %v3880_v59 = vrot.slane %v3879_v51, 2  ;;  %v3569_v61 = vrot.slane %v3568_v54, 1 }
 0x290   :  { %v4165_v53 = vsel %vm4164_vm7, %v6512_v46, %v4161_v28  ;;  %v3875_v22 = vrot.slane %v3874_v35, 1  ;;  %vm4768_vm11 = vcmask 1040384   ;;  %v3573_v24 = vadd.f32 %v3572_v32, %v3571_v19 }
 0x291   :  { %v4440_v25 = vmul.f32 %v4165_v53, %v7964_v41  ;;  %v4171_v57 = vmul.f32 %v6514_v0, %v4170_v48  ;;  %v4709_v37 = vpack.c.bf16 %v4679_v43, %v4678_v20  ;;  %v3881_v3 = vadd.f32 %v3880_v59, %v3879_v51  ;;  %v8151_v48 = vpop.f32.mrf.mxu3 }
 0x292   :  { %v3876_v36 = vadd.f32 %v3875_v22, %v3874_v35  ;;  %v4585_v6 = vperm.slane %v7995_v63, 5  ;;  %v3570_v56 = vadd.f32 %v3569_v61, %v3568_v54  ;;  %v4708_v8 = vpack.c.bf16 %v4677_v55, %v4676_v49 }
 0x293   :  { %v4544_v46 = vmul.f32 %v4480_v21, %v4440_v25  ;;  %v4175_v10 = vsel %vm4174_vm10, %v6514_v0, %v4171_v57  ;;  %v3882_v1 = vrot.slane %v3881_v3, 1  ;;  %v3574_v34 = vrot.slane %v3573_v24, 2 }
 0x294   :  { %v4441_v41 = vmul.f32 %v4175_v10, %v7971_v45  ;;  %v4058_v16 = vmul.f32 %v3876_v36, %v7438_v17  ;;  %v3740_v21 = vmul.f32 %v3570_v56, %v7438_v17  ;;  %v2713_v0 = vperm.slane %v8021_v40, 2 }
 0x295   :  { %v4648_v31 = vadd.f32 %v4584_v30, %v4544_v46  ;;  %v4741_v9 = vrot.slane %v4709_v37, 6  ;;  %v3883_v45 = vadd.f32 %v3882_v1, %v3881_v3  ;;  %v3575_v11 = vadd.f32 %v3574_v34, %v3573_v24  ;;  %v3284_v5 = vpop.f32.mrf.mxu2 }
 0x296   :  { %v4545_v2 = vmul.f32 %v4481_v7, %v4441_v41  ;;  %v8126_v60 = vadd.f32 1e-05, %v4058_v16  ;;  %v2714_v13 = vperm.slane %v8021_v40, 3  ;;  %v4742_v26 = vrot.slane %v4709_v37, 1 }
 0x297   :  { %v8135_v30 = vsub.f32 %v8043_v18, %v3740_v21  ;;  %v4740_v23 = vrot.slane %v4708_v8, 3  ;;  %v4059_v29 = vmul.f32 %v3883_v45, %v7438_v17  ;;  %v3576_v27 = vrot.slane %v3575_v11, 1 }
 0x298   :  { %v4649_v19 = vadd.f32 %v4585_v6, %v4545_v2  ;;  %6515 = vrsqrt.f32 %v8126_v60  ;;  %v8139_v33 = vadd.f32 %v8023_v42, %v2713_v0  ;;  %v4680_v20 = vmax.f32 %v4648_v31, 0.0 }
 0x299   :  { %v3804_v39 = vmul.f32 %v8135_v30, %v8135_v30  ;;  %v8144_v43 = vadd.f32 %v8027_v47, %v2714_v13  ;;  %v4482_v28 = vperm.slane %v7988_v58, 6  ;;  %v8147_v35 = vadd.f32 1e-05, %v4059_v29  ;;  %v3297_v21 = vpop.f32.mrf.mxu3 }
 0x29a   :  { %v4681_v38 = vmax.f32 %v4649_v19, 0.0  ;;  %v3577_v18 = vadd.f32 %v3576_v27, %v3575_v11  ;;  %v3578_v44 = vsel %vm3507_vm6, %v8139_v33, 0.0  ;;  %v4775_v42 = vsel %vm4772_vm9, %v4741_v9, %v4742_v26 }
 0x29b   :  { %v4586_v51 = vperm.slane %v7995_v63, 6  ;;  %v3884_v32 = vsel %vm3507_vm6, %v3804_v39, 0.0  ;;  %v3579_v49 = vrot.slane %v3578_v44, 4  ;;  %6517 = vrsqrt.f32 %v8147_v35 }
 0x29c   :  { %v3885_v47 = vrot.slane %v3884_v32, 4  ;;  %v3741_v53 = vmul.f32 %v3577_v18, %v7438_v17  ;;  %v2715_v22 = vperm.slane %v8021_v40, 4  ;;  %v4771_v55 = vsel %vm4768_vm11, %v4708_v8, %v4740_v23 }
 0x29d   :  { %v8160_v25 = vpack.c.bf16 %v4681_v38, %v4680_v20  ;;  %v3580_v57 = vadd.f32 %v3579_v49, %v3578_v44  ;;  %v3585_v59 = vsel %vm3507_vm6, %v8144_v43, 0.0  ;;  %v4483_v7 = vperm.slane %v7988_v58, 7 }
 0x29e   :  { %v6516_v54 = vpop.eup %6515  ;;  %v4587_v36 = vperm.slane %v7995_v63, 7  ;;  %v3886_v61 = vadd.f32 %v3885_v47, %v3884_v32  ;;  %v8168_v62 = vsel %vm3507_vm6, %v4771_v55, %v4775_v42  ;;  %v8171_v46 = vsub.f32 %v8082_v15, %v3741_v53 }
 0x29f   :  { %v4177_v37 = vmul.f32 %v6516_v54, %v8126_v60  ;;  %v3581_v10 = vrot.slane %v3580_v57, 2  ;;  %v3586_v3 = vrot.slane %v3585_v59, 4  ;;  %vm4182_vm12 = vweird.f32 %v8126_v60 }
 0x2a0   :  { %v3887_v41 = vrot.slane %v3886_v61, 2  ;;  %v8175_v6 = vadd.f32 %v8100_v12, %v2715_v22  ;;  %v4743_v16 = vrot.slane %v8160_v25, 4  ;;  %v3805_v56 = vmul.f32 %v8171_v46, %v8171_v46 }
 0x2a1   :  { %v4178_v24 = vmul.f32 %v6516_v54, %v4177_v37  ;;  %v3582_v8 = vadd.f32 %v3581_v10, %v3580_v57  ;;  %v3587_v31 = vadd.f32 %v3586_v3, %v3585_v59  ;;  %v6518_v1 = vpop.eup %6517  ;;  %vm4183_vm13 = vweird.f32 %v6516_v54 }
 0x2a2   :  { %v3888_v15 = vadd.f32 %v3887_v41, %v3886_v61  ;;  %v3592_v2 = vsel %vm3507_vm6, %v8175_v6, 0.0  ;;  %v4187_v0 = vmul.f32 %v6518_v1, %v8147_v35  ;;  %vm4192_vm14 = vweird.f32 %v8147_v35  ;;  %vm4184_vm1 = vmor %vm4182_vm12, %vm4183_vm13 }
 0x2a3   :  { %v4179_v34 = vmul.f32 0.5, %v4178_v24  ;;  %v3891_v12 = vsel %vm3507_vm6, %v3805_v56, 0.0  ;;  %v3583_v9 = vrot.slane %v3582_v8, 1  ;;  %v2716_v45 = vperm.slane %v8021_v40, 5 }
 0x2a4   :  { %vm4777_vm15 = vcmask 1044484   ;;  %v3889_v13 = vrot.slane %v3888_v15, 1  ;;  %v3892_v26 = vrot.slane %v3891_v12, 4  ;;  %v3588_v19 = vrot.slane %v3587_v31, 2 }
 0x2a5   :  { %v4180_v11 = vsub.f32 1.5, %v4179_v34  ;;  %v4744_v23 = vrot.slane %v8160_v25, 7  ;;  %v4188_v29 = vmul.f32 %v6518_v1, %v4187_v0  ;;  %v3584_v27 = vadd.f32 %v3583_v9, %v3582_v8  ;;  %v8227_v9 = vpop.f32.mrf.mxu0 }
 0x2a6   :  { %v3593_v20 = vrot.slane %v3592_v2, 4  ;;  %vm4193_vm0 = vweird.f32 %v6518_v1  ;;  %v3890_v39 = vadd.f32 %v3889_v13, %v3888_v15  ;;  %v3893_v18 = vadd.f32 %v3892_v26, %v3891_v12 }
 0x2a7   :  { %v4181_v38 = vmul.f32 %v6516_v54, %v4180_v11  ;;  %v4189_v44 = vmul.f32 0.5, %v4188_v29  ;;  %v3742_v42 = vmul.f32 %v3584_v27, %v7438_v17  ;;  %v3589_v32 = vadd.f32 %v3588_v19, %v3587_v31  ;;  %vm4194_vm2 = vmor %vm4192_vm14, %vm4193_vm0 }
 0x2a8   :  { %v3594_v49 = vadd.f32 %v3593_v20, %v3592_v2  ;;  %v4060_v53 = vmul.f32 %v3890_v39, %v7438_v17  ;;  %v3894_v22 = vrot.slane %v3893_v18, 2  ;;  %v8193_v55 = vadd.f32 %v8102_v50, %v2716_v45  ;;  %v8225_v2 = vld [vmem:[%s8950_s8 + $0x8] sm:$0xff]  ;;  %v8229_v45 = vpop.f32.mrf.mxu1 }
 0x2a9   :  { %v4185_v47 = vsel %vm4184_vm1, %v6516_v54, %v4181_v38  ;;  %v4190_v59 = vsub.f32 1.5, %v4189_v44  ;;  %v8197_v37 = vsub.f32 %v8139_v33, %v3742_v42  ;;  %v3590_v60 = vrot.slane %v3589_v32, 1 }
 0x2aa   :  { %v4442_v57 = vmul.f32 %v4185_v47, %v8067_v52  ;;  %v8199_v61 = vadd.f32 1e-05, %v4060_v53  ;;  %v3895_v5 = vadd.f32 %v3894_v22, %v3893_v18  ;;  %v3595_v10 = vrot.slane %v3594_v49, 2  ;;  %v8213_v52 = vld [vmem:[%s8949_s7 + $0x8] sm:$0xff] }
 0x2ab   :  { %v2717_v3 = vperm.slane %v8021_v40, 6  ;;  %v4191_v24 = vmul.f32 %v6518_v1, %v4190_v59  ;;  %v3806_v50 = vmul.f32 %v8197_v37, %v8197_v37  ;;  %v3591_v41 = vadd.f32 %v3590_v60, %v3589_v32 }
 0x2ac   :  { %v4546_v54 = vmul.f32 %v4482_v28, %v4442_v57  ;;  %6519 = vrsqrt.f32 %v8199_v61  ;;  %v3896_v33 = vrot.slane %v3895_v5, 1  ;;  %v3596_v56 = vadd.f32 %v3595_v10, %v3594_v49 }
 0x2ad   :  { %v3599_v28 = vsel %vm3507_vm6, %v8193_v55, 0.0  ;;  %v4195_v31 = vsel %vm4194_vm2, %v6518_v1, %v4191_v24  ;;  %v3898_v34 = vsel %vm3507_vm6, %v3806_v50, 0.0  ;;  %v3743_v35 = vmul.f32 %v3591_v41, %v7438_v17  ;;  %v3310_v60 = vpop.f32.mrf.mxu0 }
 0x2ae   :  { %v4650_v8 = vadd.f32 %v4586_v51, %v4546_v54  ;;  %v4443_v15 = vmul.f32 %v4195_v31, %v8078_v14  ;;  %v3897_v21 = vadd.f32 %v3896_v33, %v3895_v5  ;;  %v3899_v0 = vrot.slane %v3898_v34, 4 }
 0x2af   :  { %v3597_v12 = vrot.slane %v3596_v56, 1  ;;  %v4780_v51 = vsel %vm4777_vm15, %v4743_v16, %v4744_v23  ;;  %vm4781_vm3 = vcmask 1046534   ;;  %v4484_v1 = vperm.slane %v8213_v52, 0 }
 0x2b0   :  { %v8236_v14 = vsub.f32 %v8144_v43, %v3743_v35  ;;  %v3600_v11 = vrot.slane %v3599_v28, 4  ;;  %v4547_v13 = vmul.f32 %v4483_v7, %v4443_v15  ;;  %vm4785_vm4 = vcmask 1045508   ;;  %v3323_v5 = vpop.f32.mrf.mxu1 }
 0x2b1   :  { %v4061_v26 = vmul.f32 %v3897_v21, %v7438_v17  ;;  %v3900_v19 = vadd.f32 %v3899_v0, %v3898_v34  ;;  %v8242_v29 = vadd.f32 %v8131_v4, %v2717_v3  ;;  %vm4787_vm5 = vcmask 1043456  }
 0x2b2   :  { %v4588_v25 = vperm.slane %v8225_v2, 0  ;;  %v3807_v16 = vmul.f32 %v8236_v14, %v8236_v14  ;;  %v3598_v23 = vadd.f32 %v3597_v12, %v3596_v56  ;;  %v3601_v43 = vadd.f32 %v3600_v11, %v3599_v28  ;;  %v6520_v27 = vpop.eup %6519 }
 0x2b3   :  { %v4682_v20 = vmax.f32 %v4650_v8, 0.0  ;;  %v4651_v58 = vadd.f32 %v4587_v36, %v4547_v13  ;;  %v8249_v7 = vadd.f32 1e-05, %v4061_v26  ;;  %v3901_v38 = vrot.slane %v3900_v19, 2 }
 0x2b4   :  { %v4197_v39 = vmul.f32 %v6520_v27, %v8199_v61  ;;  %v4485_v4 = vperm.slane %v8213_v52, 1  ;;  %v3905_v18 = vsel %vm3507_vm6, %v3807_v16, 0.0  ;;  %v3744_v44 = vmul.f32 %v3598_v23, %v7438_v17 }
 0x2b5   :  { %v4683_v42 = vmax.f32 %v4651_v58, 0.0  ;;  %6521 = vrsqrt.f32 %v8249_v7  ;;  %v3902_v32 = vadd.f32 %v3901_v38, %v3900_v19  ;;  %v3606_v49 = vsel %vm3507_vm6, %v8242_v29, 0.0 }
 0x2b6   :  { %v4198_v63 = vmul.f32 %v6520_v27, %v4197_v39  ;;  %v3906_v36 = vrot.slane %v3905_v18, 4  ;;  %v8259_v47 = vsub.f32 %v8175_v6, %v3744_v44  ;;  %v3602_v53 = vrot.slane %v3601_v43, 2 }
 0x2b7   :  { %v4711_v22 = vpack.c.bf16 %v4683_v42, %v4682_v20  ;;  %vm4203_vm7 = vweird.f32 %v6520_v27  ;;  %v4589_v57 = vperm.slane %v8225_v2, 1  ;;  %v3903_v59 = vrot.slane %v3902_v32, 1 }
 0x2b8   :  { %v4199_v10 = vmul.f32 0.5, %v4198_v63  ;;  %v3907_v3 = vadd.f32 %v3906_v36, %v3905_v18  ;;  %v3808_v54 = vmul.f32 %v8259_v47, %v8259_v47  ;;  %v3603_v24 = vadd.f32 %v3602_v53, %v3601_v43  ;;  %v8294_v53 = vld [vmem:[%s8948_s6 + $0x10] sm:$0xff] }
 0x2b9   :  { %v4745_v50 = vrot.slane %v4711_v22, 2  ;;  %v4746_v41 = vrot.slane %v4711_v22, 5  ;;  %v3904_v33 = vadd.f32 %v3903_v59, %v3902_v32  ;;  %v3607_v56 = vrot.slane %v3606_v49, 4 }
 0x2ba   :  { %v4200_v6 = vsub.f32 1.5, %v4199_v10  ;;  %v3908_v28 = vrot.slane %v3907_v3, 2  ;;  %v3912_v8 = vsel %vm3507_vm6, %v3808_v54, 0.0  ;;  %v3604_v31 = vrot.slane %v3603_v24, 1  ;;  %v8303_v10 = vpop.f32.mrf.mxu2 }
 0x2bb   :  { %v6522_v34 = vpop.eup %6521  ;;  %v4784_v35 = vsel %vm4781_vm3, %v4745_v50, %v4746_v41  ;;  %vm4202_vm8 = vweird.f32 %v8199_v61  ;;  %v4062_v15 = vmul.f32 %v3904_v33, %v7438_v17  ;;  %v3913_v21 = vrot.slane %v3912_v8, 4 }
 0x2bc   :  { %v4786_v0 = vsel %vm4785_vm4, %v4780_v51, %v4784_v35  ;;  %v4201_v12 = vmul.f32 %v6520_v27, %v4200_v6  ;;  %v4207_v11 = vmul.f32 %v6522_v34, %v8249_v7  ;;  %v2718_v13 = vperm.slane %v8021_v40, 7  ;;  %vm4204_vm10 = vmor %vm4202_vm8, %vm4203_vm7 }
 0x2bd   :  { %v4788_v26 = vsel %vm4787_vm5, %v8168_v62, %v4786_v0  ;;  %v8274_v19 = vadd.f32 1e-05, %v4062_v15  ;;  %v3909_v16 = vadd.f32 %v3908_v28, %v3907_v3  ;;  %v3914_v23 = vadd.f32 %v3913_v21, %v3912_v8  ;;  %v8313_v28 = vpop.f32.mrf.mxu3 }
 0x2be   :  { %4838 = vst [vmem:[%s8952_s10] sm:$0xff] %v4788_v26  ;;  %v4205_v61 = vsel %vm4204_vm10, %v6520_v27, %v4201_v12  ;;  %v4208_v51 = vmul.f32 %v6522_v34, %v4207_v11  ;;  %v3605_v43 = vadd.f32 %v3604_v31, %v3603_v24  ;;  %v3608_v20 = vadd.f32 %v3607_v56, %v3606_v49 }
 0x2bf   :  { %v4444_v58 = vmul.f32 %v4205_v61, %v8135_v30  ;;  %6523 = vrsqrt.f32 %v8274_v19  ;;  %v4486_v40 = vperm.slane %v8213_v52, 2  ;;  %v3910_v62 = vrot.slane %v3909_v16, 1 }
 0x2c0   :  { %v4209_v38 = vmul.f32 0.5, %v4208_v51  ;;  %v3915_v39 = vrot.slane %v3914_v23, 2  ;;  %v3745_v18 = vmul.f32 %v3605_v43, %v7438_v17  ;;  %v3609_v44 = vrot.slane %v3608_v20, 2 }
 0x2c1   :  { %v4548_v42 = vmul.f32 %v4484_v1, %v4444_v58  ;;  %vm4213_vm12 = vweird.f32 %v6522_v34  ;;  %v3911_v27 = vadd.f32 %v3910_v62, %v3909_v16  ;;  %v8286_v32 = vadd.f32 %v8151_v48, %v2718_v13 }
 0x2c2   :  { %v4210_v49 = vsub.f32 1.5, %v4209_v38  ;;  %v3916_v30 = vadd.f32 %v3915_v39, %v3914_v23  ;;  %v8289_v63 = vsub.f32 %v8193_v55, %v3745_v18  ;;  %v3610_v36 = vadd.f32 %v3609_v44, %v3608_v20  ;;  %v3336_v20 = vpop.f32.mrf.mxu2 }
 0x2c3   :  { %vm4212_vm13 = vweird.f32 %v8249_v7  ;;  %v4590_v1 = vperm.slane %v8225_v2, 2  ;;  %v4063_v22 = vmul.f32 %v3911_v27, %v7438_v17  ;;  %v3613_v48 = vsel %vm3507_vm6, %v8286_v32, 0.0 }
 0x2c4   :  { %v4211_v59 = vmul.f32 %v6522_v34, %v4210_v49  ;;  %v3917_v60 = vrot.slane %v3916_v30, 1  ;;  %v3809_v55 = vmul.f32 %v8289_v63, %v8289_v63  ;;  %v3611_v5 = vrot.slane %v3610_v36, 1  ;;  %vm4214_vm14 = vmor %vm4212_vm13, %vm4213_vm12 }
 0x2c5   :  { %v6524_v3 = vpop.eup %6523  ;;  %v8306_v54 = vadd.f32 1e-05, %v4063_v22  ;;  %v4487_v7 = vperm.slane %v8213_v52, 3  ;;  %v3614_v24 = vrot.slane %v3613_v48, 4  ;;  %v2719_v50 = vperm.slane %v8294_v53, 0  ;;  %v3349_v49 = vpop.f32.mrf.mxu3 }
 0x2c6   :  { %v4652_v41 = vadd.f32 %v4588_v25, %v4548_v42  ;;  %v4215_v33 = vsel %vm4214_vm14, %v6522_v34, %v4211_v59  ;;  %v4217_v56 = vmul.f32 %v6524_v3, %v8274_v19  ;;  %v3918_v6 = vadd.f32 %v3917_v60, %v3916_v30 }
 0x2c7   :  { %v4445_v8 = vmul.f32 %v4215_v33, %v8171_v46  ;;  %6525 = vrsqrt.f32 %v8306_v54  ;;  %v4591_v31 = vperm.slane %v8225_v2, 3  ;;  %v3919_v35 = vsel %vm3507_vm6, %v3809_v55, 0.0 }
 0x2c8   :  { %v4218_v15 = vmul.f32 %v6524_v3, %v4217_v56  ;;  %v4064_v21 = vmul.f32 %v3918_v6, %v7438_v17  ;;  %v3920_v0 = vrot.slane %v3919_v35, 4  ;;  %v3612_v12 = vadd.f32 %v3611_v5, %v3610_v36 }
 0x2c9   :  { %v4549_v25 = vmul.f32 %v4485_v4, %v4445_v8  ;;  %vm4222_vm0 = vweird.f32 %v8274_v19  ;;  %v3615_v34 = vadd.f32 %v3614_v24, %v3613_v48  ;;  %v8324_v11 = vadd.f32 %v8227_v9, %v2719_v50 }
 0x2ca   :  { %v4684_v46 = vmax.f32 %v4652_v41, 0.0  ;;  %v4219_v13 = vmul.f32 0.5, %v4218_v15  ;;  %v8326_v26 = vadd.f32 1e-05, %v4064_v21  ;;  %v3921_v16 = vadd.f32 %v3920_v0, %v3919_v35  ;;  %v8360_v0 = vpop.f32.mrf.mxu0 }
 0x2cb   :  { %v4653_v23 = vadd.f32 %v4589_v57, %v4549_v25  ;;  %vm4223_vm1 = vweird.f32 %v6524_v3  ;;  %v3746_v61 = vmul.f32 %v3612_v12, %v7438_v17  ;;  %v3616_v51 = vrot.slane %v3615_v34, 2  ;;  %v8362_v12 = vpop.f32.mrf.mxu1 }
 0x2cc   :  { %v4220_v43 = vsub.f32 1.5, %v4219_v13  ;;  %6527 = vrsqrt.f32 %v8326_v26  ;;  %v3922_v4 = vrot.slane %v3921_v16, 2  ;;  %v3620_v9 = vsel %vm3507_vm6, %v8324_v11, 0.0  ;;  %vm4224_vm2 = vmor %vm4222_vm0, %vm4223_vm1 }
 0x2cd   :  { %v6526_v58 = vpop.eup %6525  ;;  %v4685_v62 = vmax.f32 %v4653_v23, 0.0  ;;  %v4488_v38 = vperm.slane %v8213_v52, 4  ;;  %v8336_v39 = vsub.f32 %v8242_v29, %v3746_v61  ;;  %v3617_v57 = vadd.f32 %v3616_v51, %v3615_v34 }
 0x2ce   :  { %v4221_v18 = vmul.f32 %v6524_v3, %v4220_v43  ;;  %v4227_v44 = vmul.f32 %v6526_v58, %v8306_v54  ;;  %v4592_v42 = vperm.slane %v8225_v2, 4  ;;  %v3923_v27 = vadd.f32 %v3922_v4, %v3921_v16 }
 0x2cf   :  { %v8340_v30 = vpack.c.bf16 %v4685_v62, %v4684_v46  ;;  %v3810_v36 = vmul.f32 %v8336_v39, %v8336_v39  ;;  %v3618_v22 = vrot.slane %v3617_v57, 1  ;;  %v3621_v29 = vrot.slane %v3620_v9, 4 }
 0x2d0   :  { %v4225_v48 = vsel %vm4224_vm2, %v6524_v3, %v4221_v18  ;;  %v4228_v59 = vmul.f32 %v6526_v58, %v4227_v44  ;;  %vm4232_vm7 = vweird.f32 %v8306_v54  ;;  %v3924_v60 = vrot.slane %v3923_v27, 1 }
 0x2d1   :  { %v4446_v55 = vmul.f32 %v4225_v48, %v8197_v37  ;;  %v3926_v5 = vsel %vm3507_vm6, %v3810_v36, 0.0  ;;  %v3619_v24 = vadd.f32 %v3618_v22, %v3617_v57  ;;  %v2720_v50 = vperm.slane %v8294_v53, 1 }
 0x2d2   :  { %v8351_v41 = vpop.eup %6527  ;;  %v4229_v19 = vmul.f32 0.5, %v4228_v59  ;;  %v3925_v33 = vadd.f32 %v3924_v60, %v3923_v27  ;;  %v3927_v56 = vrot.slane %v3926_v5, 4  ;;  %v3622_v6 = vadd.f32 %v3621_v29, %v3620_v9 }
 0x2d3   :  { %vm4233_vm8 = vweird.f32 %v6526_v58  ;;  %v4237_v3 = vmul.f32 %v8351_v41, %v8326_v26  ;;  %vm4242_vm10 = vweird.f32 %v8326_v26  ;;  %v4489_v8 = vperm.slane %v8213_v52, 5 }
 0x2d4   :  { %v4550_v37 = vmul.f32 %v4486_v40, %v4446_v55  ;;  %v4230_v35 = vsub.f32 1.5, %v4229_v19  ;;  %v4065_v15 = vmul.f32 %v3925_v33, %v7438_v17  ;;  %v3928_v21 = vadd.f32 %v3927_v56, %v3926_v5  ;;  %vm4234_vm12 = vmor %vm4232_vm7, %vm4233_vm8  ;;  %v3362_v55 = vpop.f32.mrf.mxu0 }
 0x2d5   :  { %v4238_v25 = vmul.f32 %v8351_v41, %v4237_v3  ;;  %v4593_v34 = vperm.slane %v8225_v2, 5  ;;  %v3747_v46 = vmul.f32 %v3619_v24, %v7438_v17  ;;  %v3623_v13 = vrot.slane %v3622_v6, 2 }
 0x2d6   :  { %v4231_v16 = vmul.f32 %v6526_v58, %v4230_v35  ;;  %v8367_v23 = vadd.f32 1e-05, %v4065_v15  ;;  %v3929_v61 = vrot.slane %v3928_v21, 2  ;;  %v8370_v40 = vadd.f32 %v8229_v45, %v2720_v50 }
 0x2d7   :  { %v4239_v51 = vmul.f32 0.5, %v4238_v25  ;;  %vm4243_vm13 = vweird.f32 %v8351_v41  ;;  %v8377_v43 = vsub.f32 %v8286_v32, %v3747_v46  ;;  %v3624_v4 = vadd.f32 %v3623_v13, %v3622_v6 }
 0x2d8   :  { %v4654_v9 = vadd.f32 %v4590_v1, %v4550_v37  ;;  %v4235_v20 = vsel %vm4234_vm12, %v6526_v58, %v4231_v16  ;;  %6529 = vrsqrt.f32 %v8367_v23  ;;  %v3930_v62 = vadd.f32 %v3929_v61, %v3928_v21  ;;  %vm8397_vm14 = vmor %vm4242_vm10, %vm4243_vm13 }
 0x2d9   :  { %v4447_v45 = vmul.f32 %v4235_v20, %v8236_v14  ;;  %v4240_v57 = vsub.f32 1.5, %v4239_v51  ;;  %v3811_v54 = vmul.f32 %v8377_v43, %v8377_v43  ;;  %v3625_v18 = vrot.slane %v3624_v4, 1 }
 0x2da   :  { %v4747_v44 = vrot.slane %v8340_v30, 3  ;;  %v3931_v27 = vrot.slane %v3930_v62, 1  ;;  %v3627_v32 = vsel %vm3507_vm6, %v8370_v40, 0.0  ;;  %v2721_v49 = vperm.slane %v8294_v53, 2 }
 0x2db   :  { %v4551_v1 = vmul.f32 %v4487_v7, %v4447_v45  ;;  %v4241_v58 = vmul.f32 %v8351_v41, %v4240_v57  ;;  %v3933_v14 = vsel %vm3507_vm6, %v3811_v54, 0.0  ;;  %v3626_v36 = vadd.f32 %v3625_v18, %v3624_v4  ;;  %v3375_v7 = vpop.f32.mrf.mxu1 }
 0x2dc   :  { %v4686_v22 = vmax.f32 %v4654_v9, 0.0  ;;  %v3932_v48 = vadd.f32 %v3931_v27, %v3930_v62  ;;  %v3934_v59 = vrot.slane %v3933_v14, 4  ;;  %v2722_v60 = vperm.slane %v8294_v53, 3 }
 0x2dd   :  { %v4655_v5 = vadd.f32 %v4591_v31, %v4551_v1  ;;  %v4245_v24 = vsel %vm8397_vm14, %v8351_v41, %v4241_v58  ;;  %v3748_v50 = vmul.f32 %v3626_v36, %v7438_v17  ;;  %v3628_v26 = vrot.slane %v3627_v32, 4 }
 0x2de   :  { %v6530_v19 = vpop.eup %6529  ;;  %v4791_v33 = vsel %vm4768_vm11, %v8340_v30, %v4747_v44  ;;  %v4066_v56 = vmul.f32 %v3932_v48, %v7438_v17  ;;  %v4490_v6 = vperm.slane %v8213_v52, 6  ;;  %v3935_v3 = vadd.f32 %v3934_v59, %v3933_v14 }
 0x2df   :  { %v4687_v37 = vmax.f32 %v4655_v5, 0.0  ;;  %v4247_v35 = vmul.f32 %v6530_v19, %v8367_v23  ;;  %v8414_v31 = vsub.f32 %v8324_v11, %v3748_v50  ;;  %v8417_v41 = vadd.f32 %v8303_v10, %v2721_v49 }
 0x2e0   :  { %v4448_v15 = vmul.f32 %v4245_v24, %v8259_v47  ;;  %v8420_v21 = vadd.f32 1e-05, %v4066_v56  ;;  %v3936_v25 = vrot.slane %v3935_v3, 2  ;;  %v8423_v30 = vadd.f32 %v8313_v28, %v2722_v60  ;;  %v8445_v60 = vpop.f32.mrf.mxu2 }
 0x2e1   :  { %v4713_v46 = vpack.c.bf16 %v4687_v37, %v4686_v22  ;;  %v4248_v13 = vmul.f32 %v6530_v19, %v4247_v35  ;;  %v3812_v16 = vmul.f32 %v8414_v31, %v8414_v31  ;;  %v3629_v61 = vadd.f32 %v3628_v26, %v3627_v32  ;;  %v8453_v37 = vpop.f32.mrf.mxu3 }
 0x2e2   :  { %vm4253_vm0 = vweird.f32 %v6530_v19  ;;  %6531 = vrsqrt.f32 %v8420_v21  ;;  %v4594_v10 = vperm.slane %v8225_v2, 6  ;;  %v3937_v11 = vadd.f32 %v3936_v25, %v3935_v3 }
 0x2e3   :  { %v4748_v51 = vrot.slane %v4713_v46, 6  ;;  %v4749_v47 = vrot.slane %v4713_v46, 1  ;;  %v4249_v4 = vmul.f32 0.5, %v4248_v13  ;;  %v3940_v9 = vsel %vm3507_vm6, %v3812_v16, 0.0 }
 0x2e4   :  { %v4552_v28 = vmul.f32 %v4488_v38, %v4448_v15  ;;  %v3938_v20 = vrot.slane %v3937_v11, 1  ;;  %v3941_v62 = vrot.slane %v3940_v9, 4  ;;  %v3630_v45 = vrot.slane %v3629_v61, 2 }
 0x2e5   :  { %v4794_v57 = vsel %vm4772_vm9, %v4748_v51, %v4749_v47  ;;  %v4250_v54 = vsub.f32 1.5, %v4249_v4  ;;  %v3634_v18 = vsel %vm3507_vm6, %v8417_v41, 0.0  ;;  %v3641_v44 = vsel %vm3507_vm6, %v8423_v30, 0.0 }
 0x2e6   :  { %v8438_v27 = vsel %vm3507_vm6, %v4791_v33, %v4794_v57  ;;  %v3939_v32 = vadd.f32 %v3938_v20, %v3937_v11  ;;  %v3942_v49 = vadd.f32 %v3941_v62, %v3940_v9  ;;  %v3631_v1 = vadd.f32 %v3630_v45, %v3629_v61 }
 0x2e7   :  { %v4251_v58 = vmul.f32 %v6530_v19, %v4250_v54  ;;  %vm4252_vm1 = vweird.f32 %v8367_v23  ;;  %v3635_v38 = vrot.slane %v3634_v18, 4  ;;  %v3642_v14 = vrot.slane %v3641_v44, 4 }
 0x2e8   :  { %v6532_v36 = vpop.eup %6531  ;;  %v4656_v22 = vadd.f32 %v4592_v42, %v4552_v28  ;;  %vm4254_vm2 = vmor %vm4252_vm1, %vm4253_vm0  ;;  %v4067_v29 = vmul.f32 %v3939_v32, %v7438_v17  ;;  %v3943_v48 = vrot.slane %v3942_v49, 2  ;;  %v3632_v59 = vrot.slane %v3631_v1, 1 }
 0x2e9   :  { %v4255_v55 = vsel %vm4254_vm2, %v6530_v19, %v4251_v58  ;;  %v4257_v7 = vmul.f32 %v6532_v36, %v8420_v21  ;;  %vm4262_vm7 = vweird.f32 %v8420_v21  ;;  %v3636_v23 = vadd.f32 %v3635_v38, %v3634_v18  ;;  %v3401_v21 = vpop.f32.mrf.mxu3 }
 0x2ea   :  { %v4449_v5 = vmul.f32 %v4255_v55, %v8289_v63  ;;  %v8450_v24 = vadd.f32 1e-05, %v4067_v29  ;;  %v3944_v50 = vadd.f32 %v3943_v48, %v3942_v49  ;;  %v2723_v42 = vperm.slane %v8294_v53, 4 }
 0x2eb   :  { %v4258_v26 = vmul.f32 %v6532_v36, %v4257_v7  ;;  %v3633_v33 = vadd.f32 %v3632_v59, %v3631_v1  ;;  %v3637_v56 = vrot.slane %v3636_v23, 2  ;;  %v3643_v3 = vadd.f32 %v3642_v14, %v3641_v44 }
 0x2ec   :  { %v4553_v19 = vmul.f32 %v4489_v8, %v4449_v5  ;;  %vm4263_vm8 = vweird.f32 %v6532_v36  ;;  %6533 = vrsqrt.f32 %v8450_v24  ;;  %v3945_v35 = vrot.slane %v3944_v50, 1 }
 0x2ed   :  { %v4259_v15 = vmul.f32 0.5, %v4258_v26  ;;  %v3749_v63 = vmul.f32 %v3633_v33, %v7438_v17  ;;  %v3638_v25 = vadd.f32 %v3637_v56, %v3636_v23  ;;  %v3644_v46 = vrot.slane %v3643_v3, 2  ;;  %vm4264_vm10 = vmor %vm4262_vm7, %vm4263_vm8 }
 0x2ee   :  { %v4657_v13 = vadd.f32 %v4593_v34, %v4553_v19  ;;  %v3946_v16 = vadd.f32 %v3945_v35, %v3944_v50  ;;  %v8462_v61 = vadd.f32 %v8360_v0, %v2723_v42  ;;  %v2724_v11 = vperm.slane %v8294_v53, 5  ;;  %v3388_v34 = vpop.f32.mrf.mxu2  ;;  %v8474_v0 = vld [vmem:[%s8949_s7 + $0x10] sm:$0xff] }
 0x2ef   :  { %v4260_v51 = vsub.f32 1.5, %v4259_v15  ;;  %v8466_v8 = vsub.f32 %v8370_v40, %v3749_v63  ;;  %v3639_v47 = vrot.slane %v3638_v25, 1  ;;  %v3645_v4 = vadd.f32 %v3644_v46, %v3643_v3 }
 0x2f0   :  { %v4688_v9 = vmax.f32 %v4656_v22, 0.0  ;;  %v4689_v28 = vmax.f32 %v4657_v13, 0.0  ;;  %v4068_v20 = vmul.f32 %v3946_v16, %v7438_v17  ;;  %v3648_v62 = vsel %vm3507_vm6, %v8462_v61, 0.0 }
 0x2f1   :  { %v4261_v45 = vmul.f32 %v6532_v36, %v4260_v51  ;;  %v3813_v40 = vmul.f32 %v8466_v8, %v8466_v8  ;;  %v3640_v57 = vadd.f32 %v3639_v47, %v3638_v25  ;;  %v8479_v54 = vadd.f32 %v8362_v12, %v2724_v11  ;;  %v8492_v12 = vld [vmem:[%s8950_s8 + $0x10] sm:$0xff] }
 0x2f2   :  { %v6534_v18 = vpop.eup %6533  ;;  %v4491_v44 = vperm.slane %v8213_v52, 7  ;;  %v8485_v32 = vadd.f32 1e-05, %v4068_v20  ;;  %v3646_v49 = vrot.slane %v3645_v4, 1  ;;  %v3649_v1 = vrot.slane %v3648_v62, 4 }
 0x2f3   :  { %v4265_v58 = vsel %vm4264_vm10, %v6532_v36, %v4261_v45  ;;  %v4267_v38 = vmul.f32 %v6534_v18, %v8450_v24  ;;  %v4595_v14 = vperm.slane %v8225_v2, 7  ;;  %v3947_v22 = vsel %vm3507_vm6, %v3813_v40, 0.0 }
 0x2f4   :  { %v8495_v29 = vpack.c.bf16 %v4689_v28, %v4688_v9  ;;  %v4450_v48 = vmul.f32 %v4265_v58, %v8336_v39  ;;  %6535 = vrsqrt.f32 %v8485_v32  ;;  %v4492_v36 = vperm.slane %v8474_v0, 0  ;;  %v8531_v58 = vpop.f32.mrf.mxu1 }
 0x2f5   :  { %v4268_v59 = vmul.f32 %v6534_v18, %v4267_v38  ;;  %v3948_v55 = vrot.slane %v3947_v22, 4  ;;  %v3750_v7 = vmul.f32 %v3640_v57, %v7438_v17  ;;  %v3655_v23 = vsel %vm3507_vm6, %v8479_v54, 0.0 }
 0x2f6   :  { %vm4272_vm12 = vweird.f32 %v8450_v24  ;;  %v4596_v5 = vperm.slane %v8492_v12, 0  ;;  %v3647_v50 = vadd.f32 %v3646_v49, %v3645_v4  ;;  %v3650_v42 = vadd.f32 %v3649_v1, %v3648_v62 }
 0x2f7   :  { %v4554_v39 = vmul.f32 %v4490_v6, %v4450_v48  ;;  %v4269_v26 = vmul.f32 0.5, %v4268_v59  ;;  %v3949_v33 = vadd.f32 %v3948_v55, %v3947_v22  ;;  %v8508_v56 = vsub.f32 %v8417_v41, %v3750_v7 }
 0x2f8   :  { %vm4273_vm13 = vweird.f32 %v6534_v18  ;;  %v3751_v3 = vmul.f32 %v3647_v50, %v7438_v17  ;;  %v3651_v19 = vrot.slane %v3650_v42, 2  ;;  %v3656_v35 = vrot.slane %v3655_v23, 4 }
 0x2f9   :  { %v4750_v15 = vrot.slane %v8495_v29, 4  ;;  %v4270_v63 = vsub.f32 1.5, %v4269_v26  ;;  %v3950_v25 = vrot.slane %v3949_v33, 2  ;;  %v3814_v46 = vmul.f32 %v8508_v56, %v8508_v56  ;;  %vm4274_vm14 = vmor %vm4272_vm12, %vm4273_vm13 }
 0x2fa   :  { %v6536_v13 = vpop.eup %6535  ;;  %v4751_v52 = vrot.slane %v8495_v29, 7  ;;  %v8516_v6 = vsub.f32 %v8423_v30, %v3751_v3  ;;  %v3652_v41 = vadd.f32 %v3651_v19, %v3650_v42  ;;  %v3657_v16 = vadd.f32 %v3656_v35, %v3655_v23 }
 0x2fb   :  { %v4658_v11 = vadd.f32 %v4594_v10, %v4554_v39  ;;  %v4271_v51 = vmul.f32 %v6534_v18, %v4270_v63  ;;  %v4277_v47 = vmul.f32 %v6536_v13, %v8485_v32  ;;  %v3951_v4 = vadd.f32 %v3950_v25, %v3949_v33  ;;  %v8527_v10 = vpop.f32.mrf.mxu0 }
 0x2fc   :  { %v3954_v9 = vsel %vm3507_vm6, %v3814_v46, 0.0  ;;  %v3815_v28 = vmul.f32 %v8516_v6, %v8516_v6  ;;  %v3653_v30 = vrot.slane %v3652_v41, 1  ;;  %v3658_v20 = vrot.slane %v3657_v16, 2 }
 0x2fd   :  { %v4275_v62 = vsel %vm4274_vm14, %v6534_v18, %v4271_v51  ;;  %v4278_v34 = vmul.f32 %v6536_v13, %v4277_v47  ;;  %v3952_v45 = vrot.slane %v3951_v4, 1  ;;  %v3955_v40 = vrot.slane %v3954_v9, 4  ;;  %v3427_v51 = vpop.f32.mrf.mxu1 }
 0x2fe   :  { %v4451_v57 = vmul.f32 %v4275_v62, %v8377_v43  ;;  %v3961_v49 = vsel %vm3507_vm6, %v3815_v28, 0.0  ;;  %v3654_v1 = vadd.f32 %v3653_v30, %v3652_v41  ;;  %v3659_v24 = vadd.f32 %v3658_v20, %v3657_v16 }
 0x2ff   :  { %v4690_v38 = vmax.f32 %v4658_v11, 0.0  ;;  %v4279_v22 = vmul.f32 0.5, %v4278_v34  ;;  %v3953_v21 = vadd.f32 %v3952_v45, %v3951_v4  ;;  %v3956_v29 = vadd.f32 %v3955_v40, %v3954_v9 }
 0x300   :  { %v4555_v48 = vmul.f32 %v4491_v44, %v4451_v57  ;;  %v3962_v59 = vrot.slane %v3961_v49, 4  ;;  %v3752_v18 = vmul.f32 %v3654_v1, %v7438_v17  ;;  %v3660_v55 = vrot.slane %v3659_v24, 1 }
 0x301   :  { %v4280_v7 = vsub.f32 1.5, %v4279_v22  ;;  %vm4283_vm0 = vweird.f32 %v6536_v13  ;;  %v4069_v23 = vmul.f32 %v3953_v21, %v7438_v17  ;;  %v3957_v43 = vrot.slane %v3956_v29, 2 }
 0x302   :  { %v4659_v50 = vadd.f32 %v4595_v14, %v4555_v48  ;;  %v3963_v42 = vadd.f32 %v3962_v59, %v3961_v49  ;;  %v8538_v39 = vsub.f32 %v8462_v61, %v3752_v18  ;;  %v3661_v26 = vadd.f32 %v3660_v55, %v3659_v24  ;;  %v8575_v59 = vpop.f32.mrf.mxu2 }
 0x303   :  { %v4281_v33 = vmul.f32 %v6536_v13, %v4280_v7  ;;  %vm4282_vm1 = vweird.f32 %v8485_v32  ;;  %v8541_v44 = vadd.f32 1e-05, %v4069_v23  ;;  %v3958_v3 = vadd.f32 %v3957_v43, %v3956_v29  ;;  %v3414_v46 = vpop.f32.mrf.mxu0 }
 0x304   :  { %v4691_v19 = vmax.f32 %v4659_v50, 0.0  ;;  %vm4284_vm2 = vmor %vm4282_vm1, %vm4283_vm0  ;;  %v3964_v35 = vrot.slane %v3963_v42, 2  ;;  %v3816_v63 = vmul.f32 %v8538_v39, %v8538_v39  ;;  %v3753_v2 = vmul.f32 %v3661_v26, %v7438_v17 }
 0x305   :  { %v4798_v14 = vsel %vm4777_vm15, %v4750_v15, %v4751_v52  ;;  %v4285_v25 = vsel %vm4284_vm2, %v6536_v13, %v4281_v33  ;;  %6537 = vrsqrt.f32 %v8541_v44  ;;  %v3959_v61 = vrot.slane %v3958_v3, 1 }
 0x306   :  { %v4715_v41 = vpack.c.bf16 %v4691_v19, %v4690_v38  ;;  %v4452_v32 = vmul.f32 %v4285_v25, %v8414_v31  ;;  %v4493_v16 = vperm.slane %v8474_v0, 1  ;;  %v3965_v11 = vadd.f32 %v3964_v35, %v3963_v42  ;;  %v8599_v19 = vld [vmem:[%s8948_s6 + $0x18] sm:$0xff]  ;;  %s6594_s6 = smov [#allocation2]  }
 0x307   :  { %v3960_v47 = vadd.f32 %v3959_v61, %v3958_v3  ;;  %v3968_v4 = vsel %vm3507_vm6, %v3816_v63, 0.0  ;;  %v8552_v9 = vsub.f32 %v8479_v54, %v3753_v2  ;;  %v2725_v15 = vperm.slane %v8294_v53, 6  ;;  %s4847_s30 = sshll.u32 %s6594_s6, 4  ;;  %s4848_s30 = int_to_ptr.vmem [resolvable:$true] %s4847_s30 }
 0x308   :  { %v4752_v13 = vrot.slane %v4715_v41, 2  ;;  %v4753_v52 = vrot.slane %v4715_v41, 5  ;;  %v4597_v28 = vperm.slane %v8492_v12, 1  ;;  %v3966_v30 = vrot.slane %v3965_v11, 1  ;;  %4852 = dma.vmem_to_hbm [thread:$0]  %s4848_s30, 32, %s4850_s12, [#allocation3]  }
 0x309   :  { %v4556_v31 = vmul.f32 %v4492_v36, %v4452_v32  ;;  %v4070_v20 = vmul.f32 %v3960_v47, %v7438_v17  ;;  %v3969_v62 = vrot.slane %v3968_v4, 4  ;;  %v3817_v34 = vmul.f32 %v8552_v9, %v8552_v9 }
 0x30a   :  { %v4801_v45 = vsel %vm4781_vm3, %v4752_v13, %v4753_v52  ;;  %v4494_v54 = vperm.slane %v8474_v0, 2  ;;  %v3967_v40 = vadd.f32 %v3966_v30, %v3965_v11  ;;  %v8564_v57 = vadd.f32 %v8445_v60, %v2725_v15  ;;  %v8609_v13 = vpop.f32.mrf.mxu3  ;;  %v3440_v52 = vpop.f32.mrf.mxu2 }
 0x30b   :  { %v6538_v49 = vpop.eup %6537  ;;  %v4802_v1 = vsel %vm4785_vm4, %v4798_v14, %v4801_v45  ;;  %v8567_v24 = vadd.f32 1e-05, %v4070_v20  ;;  %v3970_v36 = vadd.f32 %v3969_v62, %v3968_v4  ;;  %v3975_v38 = vsel %vm3507_vm6, %v3817_v34, 0.0 }
 0x30c   :  { %v4803_v22 = vsel %vm4787_vm5, %v8438_v27, %v4802_v1  ;;  %v4287_v21 = vmul.f32 %v6538_v49, %v8541_v44  ;;  %v4598_v29 = vperm.slane %v8492_v12, 2  ;;  %v2726_v48 = vperm.slane %v8294_v53, 7 }
 0x30d   :  { %4839 = vst [vmem:[%s8952_s10 + $0x8] sm:$0xff] %v4803_v22  ;;  %v8582_v60 = vadd.f32 %v4596_v5, %v4556_v31  ;;  %6539 = vrsqrt.f32 %v8567_v24  ;;  %v4071_v27 = vmul.f32 %v3967_v40, %v7438_v17  ;;  %v3971_v18 = vrot.slane %v3970_v36, 2 }
 0x30e   :  { %v4288_v55 = vmul.f32 %v6538_v49, %v4287_v21  ;;  %v4495_v7 = vperm.slane %v8474_v0, 3  ;;  %v3976_v23 = vrot.slane %v3975_v38, 4  ;;  %v3662_v53 = vsel %vm3507_vm6, %v8564_v57, 0.0 }
 0x30f   :  { %vm4292_vm7 = vweird.f32 %v8541_v44  ;;  %v8590_v43 = vadd.f32 1e-05, %v4071_v27  ;;  %v3972_v50 = vadd.f32 %v3971_v18, %v3970_v36  ;;  %v3663_v42 = vrot.slane %v3662_v53, 4 }
 0x310   :  { %v4289_v5 = vmul.f32 0.5, %v4288_v55  ;;  %v4599_v26 = vperm.slane %v8492_v12, 3  ;;  %v3977_v33 = vadd.f32 %v3976_v23, %v3975_v38  ;;  %v8594_v3 = vadd.f32 %v8453_v37, %v2726_v48 }
 0x311   :  { %v4692_v35 = vmax.f32 %v8582_v60, 0.0  ;;  %6541 = vrsqrt.f32 %v8590_v43  ;;  %v3973_v63 = vrot.slane %v3972_v50, 1  ;;  %v3664_v2 = vadd.f32 %v3663_v42, %v3662_v53 }
 0x312   :  { %v4290_v14 = vsub.f32 1.5, %v4289_v5  ;;  %vm4293_vm8 = vweird.f32 %v6538_v49  ;;  %v3978_v25 = vrot.slane %v3977_v33, 2  ;;  %v3669_v61 = vsel %vm3507_vm6, %v8594_v3, 0.0 }
 0x313   :  { %v6540_v46 = vpop.eup %6539  ;;  %v3974_v37 = vadd.f32 %v3973_v63, %v3972_v50  ;;  %v3665_v41 = vrot.slane %v3664_v2, 2  ;;  %v3670_v32 = vrot.slane %v3669_v61, 4  ;;  %v2727_v11 = vperm.slane %v8599_v19, 0  ;;  %vm4294_vm12 = vmor %vm4292_vm7, %vm4293_vm8 }
 0x314   :  { %v4291_v51 = vmul.f32 %v6538_v49, %v4290_v14  ;;  %v4297_v47 = vmul.f32 %v6540_v46, %v8567_v24  ;;  %vm4302_vm10 = vweird.f32 %v8567_v24  ;;  %v4496_v4 = vperm.slane %v8474_v0, 4 }
 0x315   :  { %v3979_v15 = vadd.f32 %v3978_v25, %v3977_v33  ;;  %v4072_v30 = vmul.f32 %v3974_v37, %v7438_v17  ;;  %v4600_v31 = vperm.slane %v8492_v12, 4  ;;  %v3666_v20 = vadd.f32 %v3665_v41, %v3664_v2 }
 0x316   :  { %v3671_v62 = vadd.f32 %v3670_v32, %v3669_v61  ;;  %v4295_v34 = vsel %vm4294_vm12, %v6538_v49, %v4291_v51  ;;  %v4298_v45 = vmul.f32 %v6540_v46, %v4297_v47  ;;  %v8617_v1 = vadd.f32 %v8527_v10, %v2727_v11  ;;  %v3453_v61 = vpop.f32.mrf.mxu3 }
 0x317   :  { %v3980_v40 = vrot.slane %v3979_v15, 1  ;;  %v6542_v36 = vpop.eup %6541  ;;  %v4453_v38 = vmul.f32 %v4295_v34, %v8466_v8  ;;  %v8620_v22 = vadd.f32 1e-05, %v4072_v30  ;;  %v3667_v21 = vrot.slane %v3666_v20, 1  ;;  %v8665_v34 = vpop.f32.mrf.mxu0 }
 0x318   :  { %v3672_v44 = vrot.slane %v3671_v62, 2  ;;  %v4299_v48 = vmul.f32 0.5, %v4298_v45  ;;  %v4307_v27 = vmul.f32 %v6542_v36, %v8590_v43  ;;  %v4497_v55 = vperm.slane %v8474_v0, 5  ;;  %v8667_v45 = vpop.f32.mrf.mxu1 }
 0x319   :  { %v3981_v18 = vadd.f32 %v3980_v40, %v3979_v15  ;;  %v4557_v49 = vmul.f32 %v4493_v16, %v4453_v38  ;;  %vm4303_vm13 = vweird.f32 %v6540_v46  ;;  %6543 = vrsqrt.f32 %v8620_v22 }
 0x31a   :  { %v3668_v10 = vadd.f32 %v3667_v21, %v3666_v20  ;;  %v4300_v23 = vsub.f32 1.5, %v4299_v48  ;;  %v4308_v53 = vmul.f32 %v6542_v36, %v4307_v27  ;;  %v3673_v50 = vadd.f32 %v3672_v44, %v3671_v62  ;;  %vm4304_vm14 = vmor %vm4302_vm10, %vm4303_vm13 }
 0x31b   :  { %v4073_v8 = vmul.f32 %v3981_v18, %v7438_v17  ;;  %v4661_v42 = vadd.f32 %v4597_v28, %v4557_v49  ;;  %v3676_v33 = vsel %vm3507_vm6, %v8617_v1, 0.0  ;;  %v2728_v63 = vperm.slane %v8599_v19, 1 }
 0x31c   :  { %v3754_v5 = vmul.f32 %v3668_v10, %v7438_v17  ;;  %v4301_v16 = vmul.f32 %v6540_v46, %v4300_v23  ;;  %v4309_v2 = vmul.f32 0.5, %v4308_v53  ;;  %v3674_v25 = vrot.slane %v3673_v50, 1 }
 0x31d   :  { %v8634_v14 = vadd.f32 1e-05, %v4073_v8  ;;  %v4693_v37 = vmax.f32 %v4661_v42, 0.0  ;;  %vm4312_vm0 = vweird.f32 %v8590_v43  ;;  %v3677_v41 = vrot.slane %v3676_v33, 4 }
 0x31e   :  { %v8641_v28 = vsub.f32 %v8564_v57, %v3754_v5  ;;  %v4305_v32 = vsel %vm4304_vm14, %v6540_v46, %v4301_v16  ;;  %v4310_v11 = vsub.f32 1.5, %v4309_v2  ;;  %vm4313_vm1 = vweird.f32 %v6542_v36 }
 0x31f   :  { %6545 = vrsqrt.f32 %v8634_v14  ;;  %v8644_v51 = vpop.eup %6543  ;;  %v8648_v47 = vpack.c.bf16 %v4693_v37, %v4692_v35  ;;  %v4454_v24 = vmul.f32 %v4305_v32, %v8508_v56  ;;  %v3675_v52 = vadd.f32 %v3674_v25, %v3673_v50  ;;  %vm4314_vm2 = vmor %vm4312_vm0, %vm4313_vm1 }
 0x320   :  { %v3818_v15 = vmul.f32 %v8641_v28, %v8641_v28  ;;  %v4311_v57 = vmul.f32 %v6542_v36, %v4310_v11  ;;  %v4317_v46 = vmul.f32 %v8644_v51, %v8620_v22  ;;  %v3678_v30 = vadd.f32 %v3677_v41, %v3676_v33  ;;  %v3466_v41 = vpop.f32.mrf.mxu0  ;;  %v3479_v32 = vpop.f32.mrf.mxu1 }
 0x321   :  { %v8656_v20 = vadd.f32 %v8531_v58, %v2728_v63  ;;  %v4558_v62 = vmul.f32 %v4494_v54, %v4454_v24  ;;  %v4601_v56 = vperm.slane %v8492_v12, 5  ;;  %v3755_v35 = vmul.f32 %v3675_v52, %v7438_v17 }
 0x322   :  { %v3982_v60 = vsel %vm3507_vm6, %v3818_v15, 0.0  ;;  %v4315_v40 = vsel %vm4314_vm2, %v6542_v36, %v4311_v57  ;;  %v4318_v58 = vmul.f32 %v8644_v51, %v4317_v46  ;;  %v3679_v21 = vrot.slane %v3678_v30, 2 }
 0x323   :  { %v3983_v38 = vrot.slane %v3982_v60, 4  ;;  %v4662_v54 = vadd.f32 %v4598_v29, %v4558_v62  ;;  %v4455_v43 = vmul.f32 %v4315_v40, %v8516_v6  ;;  %vm4322_vm7 = vweird.f32 %v8620_v22 }
 0x324   :  { %v8675_v44 = vsub.f32 %v8594_v3, %v3755_v35  ;;  %v4319_v27 = vmul.f32 0.5, %v4318_v58  ;;  %v3680_v49 = vadd.f32 %v3679_v21, %v3678_v30  ;;  %v3683_v36 = vsel %vm3507_vm6, %v8656_v20, 0.0 }
 0x325   :  { %v6546_v48 = vpop.eup %6545  ;;  %v3984_v18 = vadd.f32 %v3983_v38, %v3982_v60  ;;  %v4754_v10 = vrot.slane %v8648_v47, 3  ;;  %v4559_v23 = vmul.f32 %v4495_v7, %v4455_v43  ;;  %vm4323_vm8 = vweird.f32 %v8644_v51 }
 0x326   :  { %v4327_v6 = vmul.f32 %v6546_v48, %v8634_v14  ;;  %v4694_v29 = vmax.f32 %v4662_v54, 0.0  ;;  %v4320_v53 = vsub.f32 1.5, %v4319_v27  ;;  %v3819_v8 = vmul.f32 %v8675_v44, %v8675_v44  ;;  %vm4324_vm10 = vmor %vm4322_vm7, %vm4323_vm8 }
 0x327   :  { %v3985_v3 = vrot.slane %v3984_v18, 2  ;;  %v4663_v50 = vadd.f32 %v4599_v26, %v4559_v23  ;;  %v3681_v5 = vrot.slane %v3680_v49, 1  ;;  %v3684_v33 = vrot.slane %v3683_v36, 4 }
 0x328   :  { %v4328_v42 = vmul.f32 %v6546_v48, %v4327_v6  ;;  %v4321_v63 = vmul.f32 %v8644_v51, %v4320_v53  ;;  %v3989_v7 = vsel %vm3507_vm6, %v3819_v8, 0.0  ;;  %v2729_v2 = vperm.slane %v8599_v19, 2 }
 0x329   :  { %v3986_v16 = vadd.f32 %v3985_v3, %v3984_v18  ;;  %v4695_v25 = vmax.f32 %v4663_v50, 0.0  ;;  %v3990_v61 = vrot.slane %v3989_v7, 4  ;;  %v3682_v37 = vadd.f32 %v3681_v5, %v3680_v49 }
 0x32a   :  { %v4329_v26 = vmul.f32 0.5, %v4328_v42  ;;  %v4325_v11 = vsel %vm4324_vm10, %v8644_v51, %v4321_v63  ;;  %vm4333_vm12 = vweird.f32 %v6546_v48  ;;  %v3685_v15 = vadd.f32 %v3684_v33, %v3683_v36 }
 0x32b   :  { %v3987_v24 = vrot.slane %v3986_v16, 1  ;;  %v4717_v52 = vpack.c.bf16 %v4695_v25, %v4694_v29  ;;  %v4456_v57 = vmul.f32 %v4325_v11, %v8538_v39  ;;  %v3991_v30 = vadd.f32 %v3990_v61, %v3989_v7 }
 0x32c   :  { %v4330_v46 = vsub.f32 1.5, %v4329_v26  ;;  %vm4332_vm13 = vweird.f32 %v8634_v14  ;;  %v3756_v62 = vmul.f32 %v3682_v37, %v7438_v17  ;;  %v3686_v60 = vrot.slane %v3685_v15, 2 }
 0x32d   :  { %v3988_v22 = vadd.f32 %v3987_v24, %v3986_v16  ;;  %v4755_v35 = vrot.slane %v4717_v52, 6  ;;  %v4756_v40 = vrot.slane %v4717_v52, 1  ;;  %v8703_v51 = vadd.f32 %v8575_v59, %v2729_v2  ;;  %vm4334_vm14 = vmor %vm4332_vm13, %vm4333_vm12 }
 0x32e   :  { %v4331_v58 = vmul.f32 %v6546_v48, %v4330_v46  ;;  %v4560_v38 = vmul.f32 %v4496_v4, %v4456_v57  ;;  %v3992_v21 = vrot.slane %v3991_v30, 2  ;;  %v8710_v14 = vsub.f32 %v8617_v1, %v3756_v62 }
 0x32f   :  { %v4074_v39 = vmul.f32 %v3988_v22, %v7438_v17  ;;  %v4806_v54 = vsel %vm4768_vm11, %v8648_v47, %v4754_v10  ;;  %v4809_v43 = vsel %vm4772_vm9, %v4755_v35, %v4756_v40  ;;  %v3687_v18 = vadd.f32 %v3686_v60, %v3685_v15  ;;  %v8725_v47 = vpop.f32.mrf.mxu2 }
 0x330   :  { %v4335_v27 = vsel %vm4334_vm14, %v6546_v48, %v4331_v58  ;;  %v8716_v59 = vsel %vm3507_vm6, %v4806_v54, %v4809_v43  ;;  %v3993_v36 = vadd.f32 %v3992_v21, %v3991_v30  ;;  %v3820_v23 = vmul.f32 %v8710_v14, %v8710_v14 }
 0x331   :  { %v4457_v4 = vmul.f32 %v4335_v27, %v8552_v9  ;;  %v8719_v49 = vadd.f32 1e-05, %v4074_v39  ;;  %v3688_v1 = vrot.slane %v3687_v18, 1  ;;  %v3690_v6 = vsel %vm3507_vm6, %v8703_v51, 0.0 }
 0x332   :  { %v4664_v48 = vadd.f32 %v4600_v31, %v4560_v38  ;;  %v3994_v9 = vrot.slane %v3993_v36, 1  ;;  %v3996_v29 = vsel %vm3507_vm6, %v3820_v23, 0.0  ;;  %v3691_v3 = vrot.slane %v3690_v6, 4  ;;  %v8737_v31 = vpop.f32.mrf.mxu3 }
 0x333   :  { %v4561_v10 = vmul.f32 %v4497_v55, %v4457_v4  ;;  %6547 = vrsqrt.f32 %v8719_v49  ;;  %v3689_v53 = vadd.f32 %v3688_v1, %v3687_v18  ;;  %v2730_v8 = vperm.slane %v8599_v19, 3 }
 0x334   :  { %v3995_v42 = vadd.f32 %v3994_v9, %v3993_v36  ;;  %v3997_v5 = vrot.slane %v3996_v29, 4  ;;  %v2731_v33 = vperm.slane %v8599_v19, 4  ;;  %v3692_v63 = vadd.f32 %v3691_v3, %v3690_v6 }
 0x335   :  { %v4665_v50 = vadd.f32 %v4601_v56, %v4561_v10  ;;  %v3757_v55 = vmul.f32 %v3689_v53, %v7438_v17  ;;  %v8741_v16 = vadd.f32 %v8609_v13, %v2730_v8  ;;  %v4696_v7 = vmax.f32 %v4664_v48, 0.0 }
 0x336   :  { %v4075_v2 = vmul.f32 %v3995_v42, %v7438_v17  ;;  %v3998_v25 = vadd.f32 %v3997_v5, %v3996_v29  ;;  %v3693_v56 = vrot.slane %v3692_v63, 2  ;;  %v8752_v13 = vadd.f32 %v8665_v34, %v2731_v33 }
 0x337   :  { %v4697_v26 = vmax.f32 %v4665_v50, 0.0  ;;  %v8745_v61 = vsub.f32 %v8656_v20, %v3757_v55  ;;  %v3697_v37 = vsel %vm3507_vm6, %v8741_v16, 0.0  ;;  %v4498_v52 = vperm.slane %v8474_v0, 6  ;;  %v3492_v46 = vpop.f32.mrf.mxu2 }
 0x338   :  { %v8749_v32 = vadd.f32 1e-05, %v4075_v2  ;;  %v3999_v11 = vrot.slane %v3998_v25, 2  ;;  %v3698_v24 = vrot.slane %v3697_v37, 4  ;;  %v4602_v57 = vperm.slane %v8492_v12, 6 }
 0x339   :  { %v6548_v41 = vpop.eup %6547  ;;  %v3821_v20 = vmul.f32 %v8745_v61, %v8745_v61  ;;  %v4499_v30 = vperm.slane %v8474_v0, 7  ;;  %v4603_v22 = vperm.slane %v8492_v12, 7  ;;  %v2732_v62 = vperm.slane %v8599_v19, 5 }
 0x33a   :  { %v4337_v15 = vmul.f32 %v6548_v41, %v8719_v49  ;;  %6549 = vrsqrt.f32 %v8749_v32  ;;  %v4000_v60 = vadd.f32 %v3999_v11, %v3998_v25  ;;  %v3694_v40 = vadd.f32 %v3693_v56, %v3692_v63  ;;  %v3505_v54 = vpop.f32.mrf.mxu3 }
 0x33b   :  { %v4003_v35 = vsel %vm3507_vm6, %v3821_v20, 0.0  ;;  %v8764_v58 = vpack.c.bf16 %v4697_v26, %v4696_v7  ;;  %v3699_v39 = vadd.f32 %v3698_v24, %v3697_v37  ;;  %v3704_v21 = vsel %vm3507_vm6, %v8752_v13, 0.0 }
 0x33c   :  { %v4338_v34 = vmul.f32 %v6548_v41, %v4337_v15  ;;  %v4004_v38 = vrot.slane %v4003_v35, 4  ;;  %v4001_v27 = vrot.slane %v4000_v60, 1  ;;  %v3695_v18 = vrot.slane %v3694_v40, 1 }
 0x33d   :  { %v3705_v4 = vrot.slane %v3704_v21, 4  ;;  %vm4343_vm0 = vweird.f32 %v6548_v41  ;;  %v3700_v23 = vrot.slane %v3699_v39, 2  ;;  %v8769_v1 = vadd.f32 %v8667_v45, %v2732_v62 }
 0x33e   :  { %v4339_v43 = vmul.f32 0.5, %v4338_v34  ;;  %v4005_v36 = vadd.f32 %v4004_v38, %v4003_v35  ;;  %v4002_v48 = vadd.f32 %v4001_v27, %v4000_v60  ;;  %v3696_v10 = vadd.f32 %v3695_v18, %v3694_v40 }
 0x33f   :  { %v3706_v9 = vadd.f32 %v3705_v4, %v3704_v21  ;;  %vm4342_vm1 = vweird.f32 %v8719_v49  ;;  %v3701_v3 = vadd.f32 %v3700_v23, %v3699_v39  ;;  %v3711_v8 = vsel %vm3507_vm6, %v8769_v1, 0.0 }
 0x340   :  { %v4340_v6 = vsub.f32 1.5, %v4339_v43  ;;  %v6550_v29 = vpop.eup %6549  ;;  %v4006_v53 = vrot.slane %v4005_v36, 2  ;;  %v4757_v50 = vrot.slane %v8764_v58, 4  ;;  %v4076_v45 = vmul.f32 %v4002_v48, %v7438_v17  ;;  %vm4344_vm2 = vmor %vm4342_vm1, %vm4343_vm0 }
 0x341   :  { %v4347_v5 = vmul.f32 %v6550_v29, %v8749_v32  ;;  %v3758_v55 = vmul.f32 %v3696_v10, %v7438_v17  ;;  %v3702_v63 = vrot.slane %v3701_v3, 1  ;;  %v3707_v7 = vrot.slane %v3706_v9, 2 }
 0x342   :  { %v4341_v42 = vmul.f32 %v6548_v41, %v4340_v6  ;;  %v4007_v33 = vadd.f32 %v4006_v53, %v4005_v36  ;;  %v8779_v25 = vadd.f32 1e-05, %v4076_v45  ;;  %v3712_v26 = vrot.slane %v3711_v8, 4 }
 0x343   :  { %v4348_v2 = vmul.f32 %v6550_v29, %v4347_v5  ;;  %v8783_v11 = vsub.f32 %v8703_v51, %v3758_v55  ;;  %v3703_v24 = vadd.f32 %v3702_v63, %v3701_v3  ;;  %v4758_v15 = vrot.slane %v8764_v58, 7 }
 0x344   :  { %v4345_v49 = vsel %vm4344_vm2, %v6548_v41, %v4341_v42  ;;  %v4008_v37 = vrot.slane %v4007_v33, 1  ;;  %6551 = vrsqrt.f32 %v8779_v25  ;;  %v3708_v46 = vadd.f32 %v3707_v7, %v3706_v9 }
 0x345   :  { %v4458_v56 = vmul.f32 %v4345_v49, %v8641_v28  ;;  %v4349_v20 = vmul.f32 0.5, %v4348_v2  ;;  %vm4353_vm7 = vweird.f32 %v6550_v29  ;;  %v3822_v41 = vmul.f32 %v8783_v11, %v8783_v11  ;;  %v8793_v28 = vld [vmem:[%s8949_s7 + $0x18] sm:$0xff] }
 0x346   :  { %v4009_v62 = vadd.f32 %v4008_v37, %v4007_v33  ;;  %v3759_v34 = vmul.f32 %v3703_v24, %v7438_v17  ;;  %v3709_v51 = vrot.slane %v3708_v46, 1  ;;  %v3713_v35 = vadd.f32 %v3712_v26, %v3711_v8 }
 0x347   :  { %v4350_v60 = vsub.f32 1.5, %v4349_v20  ;;  %v2733_v40 = vperm.slane %v8599_v19, 6  ;;  %v4562_v58 = vmul.f32 %v4498_v52, %v4458_v56  ;;  %v4010_v39 = vsel %vm3507_vm6, %v3822_v41, 0.0  ;;  %v8809_v52 = vld [vmem:[%s8950_s8 + $0x18] sm:$0xff] }
 0x348   :  { %v4077_v38 = vmul.f32 %v4009_v62, %v7438_v17  ;;  %v8801_v21 = vsub.f32 %v8741_v16, %v3759_v34  ;;  %vm4352_vm8 = vweird.f32 %v8749_v32  ;;  %v4011_v43 = vrot.slane %v4010_v39, 4 }
 0x349   :  { %v4351_v54 = vmul.f32 %v6550_v29, %v4350_v60  ;;  %v3710_v27 = vadd.f32 %v3709_v51, %v3708_v46  ;;  %vm4354_vm10 = vmor %vm4352_vm8, %vm4353_vm7  ;;  %v4500_v18 = vperm.slane %v8793_v28, 0  ;;  %v3714_v36 = vrot.slane %v3713_v35, 2 }
 0x34a   :  { %v8811_v4 = vadd.f32 1e-05, %v4077_v38  ;;  %v3823_v16 = vmul.f32 %v8801_v21, %v8801_v21  ;;  %v6552_v23 = vpop.eup %6551  ;;  %v4012_v32 = vadd.f32 %v4011_v43, %v4010_v39  ;;  %v8817_v10 = vadd.f32 %v8725_v47, %v2733_v40 }
 0x34b   :  { %v4355_v6 = vsel %vm4354_vm10, %v6550_v29, %v4351_v54  ;;  %v3760_v48 = vmul.f32 %v3710_v27, %v7438_v17  ;;  %v4666_v9 = vadd.f32 %v4602_v57, %v4562_v58  ;;  %v4357_v3 = vmul.f32 %v6552_v23, %v8779_v25 }
 0x34c   :  { %v4459_v53 = vmul.f32 %v4355_v6, %v8675_v44  ;;  %6553 = vrsqrt.f32 %v8811_v4  ;;  %v4813_v8 = vsel %vm4777_vm15, %v4757_v50, %v4758_v15  ;;  %v4604_v42 = vperm.slane %v8809_v52, 0 }
 0x34d   :  { %v4013_v29 = vrot.slane %v4012_v32, 2  ;;  %v4017_v5 = vsel %vm3507_vm6, %v3823_v16, 0.0  ;;  %v4358_v45 = vmul.f32 %v6552_v23, %v4357_v3  ;;  %v8830_v57 = vsub.f32 %v8752_v13, %v3760_v48 }
 0x34e   :  { %v4563_v47 = vmul.f32 %v4499_v30, %v4459_v53  ;;  %v4018_v33 = vrot.slane %v4017_v5, 4  ;;  %vm4362_vm12 = vweird.f32 %v8779_v25  ;;  %v3715_v55 = vadd.f32 %v3714_v36, %v3713_v35 }
 0x34f   :  { %v4014_v44 = vadd.f32 %v4013_v29, %v4012_v32  ;;  %v3718_v50 = vsel %vm3507_vm6, %v8817_v10, 0.0  ;;  %v4698_v63 = vmax.f32 %v4666_v9, 0.0  ;;  %v4359_v49 = vmul.f32 0.5, %v4358_v45 }
 0x350   :  { %v4667_v7 = vadd.f32 %v4603_v22, %v4563_v47  ;;  %v4019_v2 = vadd.f32 %v4018_v33, %v4017_v5  ;;  %v3824_v30 = vmul.f32 %v8830_v57, %v8830_v57  ;;  %v3716_v26 = vrot.slane %v3715_v55, 1 }
 0x351   :  { %v4015_v0 = vrot.slane %v4014_v44, 1  ;;  %v3719_v13 = vrot.slane %v3718_v50, 4  ;;  %v4360_v24 = vsub.f32 1.5, %v4359_v49  ;;  %vm4363_vm13 = vweird.f32 %v6552_v23 }
 0x352   :  { %v6554_v56 = vpop.eup %6553  ;;  %v4699_v37 = vmax.f32 %v4667_v7, 0.0  ;;  %v4020_v15 = vrot.slane %v4019_v2, 2  ;;  %v4024_v62 = vsel %vm3507_vm6, %v3824_v30, 0.0  ;;  %v2734_v12 = vperm.slane %v8599_v19, 7  ;;  %vm4364_vm14 = vmor %vm4362_vm12, %vm4363_vm13 }
 0x353   :  { %v4367_v20 = vmul.f32 %v6554_v56, %v8811_v4  ;;  %v4016_v46 = vadd.f32 %v4015_v0, %v4014_v44  ;;  %v4361_v41 = vmul.f32 %v6552_v23, %v4360_v24  ;;  %v4025_v60 = vrot.slane %v4024_v62, 4 }
 0x354   :  { %v4719_v22 = vpack.c.bf16 %v4699_v37, %v4698_v63  ;;  %v4021_v34 = vadd.f32 %v4020_v15, %v4019_v2  ;;  %v3717_v40 = vadd.f32 %v3716_v26, %v3715_v55  ;;  %v3720_v58 = vadd.f32 %v3719_v13, %v3718_v50 }
 0x355   :  { %v4368_v51 = vmul.f32 %v6554_v56, %v4367_v20  ;;  %v4078_v35 = vmul.f32 %v4016_v46, %v7438_v17  ;;  %v4365_v54 = vsel %vm4364_vm14, %v6552_v23, %v4361_v41  ;;  %v4026_v36 = vadd.f32 %v4025_v60, %v4024_v62 }
 0x356   :  { %v4759_v38 = vrot.slane %v4719_v22, 2  ;;  %v4760_v39 = vrot.slane %v4719_v22, 5  ;;  %v4022_v43 = vrot.slane %v4021_v34, 1  ;;  %v4460_v27 = vmul.f32 %v4365_v54, %v8710_v14 }
 0x357   :  { %v4369_v16 = vmul.f32 0.5, %v4368_v51  ;;  %v8846_v19 = vadd.f32 1e-05, %v4078_v35  ;;  %v3761_v25 = vmul.f32 %v3717_v40, %v7438_v17  ;;  %v3721_v48 = vrot.slane %v3720_v58, 2 }
 0x358   :  { %v4816_v6 = vsel %vm4781_vm3, %v4759_v38, %v4760_v39  ;;  %v4023_v32 = vadd.f32 %v4022_v43, %v4021_v34  ;;  %vm4373_vm0 = vweird.f32 %v6554_v56  ;;  %v4564_v14 = vmul.f32 %v4500_v18, %v4460_v27 }
 0x359   :  { %v4817_v9 = vsel %vm4785_vm4, %v4813_v8, %v4816_v6  ;;  %v4370_v53 = vsub.f32 1.5, %v4369_v16  ;;  %6555 = vrsqrt.f32 %v8846_v19  ;;  %v4027_v29 = vrot.slane %v4026_v36, 2 }
 0x35a   :  { %v4818_v23 = vsel %vm4787_vm5, %v8716_v59, %v4817_v9  ;;  %v4079_v3 = vmul.f32 %v4023_v32, %v7438_v17  ;;  %vm4372_vm1 = vweird.f32 %v8811_v4  ;;  %v8862_v8 = vsub.f32 %v8769_v1, %v3761_v25 }
 0x35b   :  { %4840 = vst [vmem:[%s8952_s10 + $0x10] sm:$0xff] %v4818_v23  ;;  %v4371_v5 = vmul.f32 %v6554_v56, %v4370_v53  ;;  %vm4374_vm2 = vmor %vm4372_vm1, %vm4373_vm0  ;;  %v4501_v47 = vperm.slane %v8793_v28, 1  ;;  %v4028_v45 = vadd.f32 %v4027_v29, %v4026_v36  ;;  %v3722_v18 = vadd.f32 %v3721_v48, %v3720_v58 }
 0x35c   :  { %v8865_v59 = vadd.f32 1e-05, %v4079_v3  ;;  %v4605_v44 = vperm.slane %v8809_v52, 1  ;;  %v3825_v55 = vmul.f32 %v8862_v8, %v8862_v8  ;;  %v8871_v50 = vadd.f32 %v8737_v31, %v2734_v12 }
 0x35d   :  { %v4375_v33 = vsel %vm4374_vm2, %v6554_v56, %v4371_v5  ;;  %v4668_v1 = vadd.f32 %v4604_v42, %v4564_v14  ;;  %v4029_v63 = vrot.slane %v4028_v45, 1  ;;  %v3723_v2 = vrot.slane %v3722_v18, 1 }
 0x35e   :  { %v4461_v4 = vmul.f32 %v4375_v33, %v8745_v61  ;;  %6557 = vrsqrt.f32 %v8865_v59  ;;  %v4031_v49 = vsel %vm3507_vm6, %v3825_v55, 0.0  ;;  %v3725_v0 = vsel %vm3507_vm6, %v8871_v50, 0.0 }
 0x35f   :  { %v6556_v7 = vpop.eup %6555  ;;  %v4030_v31 = vadd.f32 %v4029_v63, %v4028_v45  ;;  %v4032_v13 = vrot.slane %v4031_v49, 4  ;;  %v3724_v56 = vadd.f32 %v3723_v2, %v3722_v18  ;;  %v3726_v37 = vrot.slane %v3725_v0, 4 }
 0x360   :  { %v4565_v30 = vmul.f32 %v4501_v47, %v4461_v4  ;;  %v4377_v26 = vmul.f32 %v6556_v7, %v8846_v19  ;;  %v4700_v42 = vmax.f32 %v4668_v1, 0.0  ;;  %vm4383_vm7 = vweird.f32 %v6556_v7 }
 0x361   :  { %v4080_v15 = vmul.f32 %v4030_v31, %v7438_v17  ;;  %v4033_v20 = vadd.f32 %v4032_v13, %v4031_v49  ;;  %v3762_v46 = vmul.f32 %v3724_v56, %v7438_v17  ;;  %v3727_v34 = vadd.f32 %v3726_v37, %v3725_v0 }
 0x362   :  { %v4669_v24 = vadd.f32 %v4605_v44, %v4565_v30  ;;  %v4378_v61 = vmul.f32 %v6556_v7, %v4377_v26  ;;  %vm4382_vm8 = vweird.f32 %v8846_v19  ;;  %v4502_v16 = vperm.slane %v8793_v28, 2 }
 0x363   :  { %v8883_v41 = vadd.f32 1e-05, %v4080_v15  ;;  %v4034_v51 = vrot.slane %v4033_v20, 2  ;;  %v8887_v35 = vsub.f32 %v8817_v10, %v3762_v46  ;;  %v3728_v27 = vrot.slane %v3727_v34, 2  ;;  %vm4384_vm10 = vmor %vm4382_vm8, %vm4383_vm7 }
 0x364   :  { %v6558_v62 = vpop.eup %6557  ;;  %v4701_v12 = vmax.f32 %v4669_v24, 0.0  ;;  %v4379_v22 = vmul.f32 0.5, %v4378_v61  ;;  %v4606_v25 = vperm.slane %v8809_v52, 2  ;;  %vm4392_vm13 = vweird.f32 %v8865_v59 }
 0x365   :  { %v4387_v60 = vmul.f32 %v6558_v62, %v8865_v59  ;;  %6559 = vrsqrt.f32 %v8883_v41  ;;  %v4035_v39 = vadd.f32 %v4034_v51, %v4033_v20  ;;  %v3826_v54 = vmul.f32 %v8887_v35, %v8887_v35 }
 0x366   :  { %v8889_v40 = vpack.c.bf16 %v4701_v12, %v4700_v42  ;;  %v4380_v58 = vsub.f32 1.5, %v4379_v22  ;;  %v3729_v9 = vadd.f32 %v3728_v27, %v3727_v34  ;;  %vm4393_vm12 = vweird.f32 %v6558_v62 }
 0x367   :  { %v4388_v38 = vmul.f32 %v6558_v62, %v4387_v60  ;;  %v4036_v36 = vrot.slane %v4035_v39, 1  ;;  %v4038_v6 = vsel %vm3507_vm6, %v3826_v54, 0.0  ;;  %vm4394_vm14 = vmor %vm4392_vm13, %vm4393_vm12  ;;  %v4503_v18 = vperm.slane %v8793_v28, 3 }
 0x368   :  { %v4381_v43 = vmul.f32 %v6556_v7, %v4380_v58  ;;  %v4039_v48 = vrot.slane %v4038_v6, 4  ;;  %v3730_v29 = vrot.slane %v3729_v9, 1  ;;  %v4607_v4 = vperm.slane %v8809_v52, 3 }
 0x369   :  { %v4389_v10 = vmul.f32 0.5, %v4388_v38  ;;  %v4037_v14 = vadd.f32 %v4036_v36, %v4035_v39  ;;  %vm4402_vm1 = vweird.f32 %v8883_v41  ;;  %v4504_v27 = vperm.slane %v8793_v28, 4 }
 0x36a   :  { %v4385_v32 = vsel %vm4384_vm10, %v6556_v7, %v4381_v43  ;;  %v4040_v19 = vadd.f32 %v4039_v48, %v4038_v6  ;;  %v3731_v55 = vadd.f32 %v3730_v29, %v3729_v9  ;;  %v4608_v9 = vperm.slane %v8809_v52, 4 }
 0x36b   :  { %v4462_v53 = vmul.f32 %v4385_v32, %v8783_v11  ;;  %v4390_v23 = vsub.f32 1.5, %v4389_v10  ;;  %v6560_v3 = vpop.eup %6559  ;;  %v4081_v33 = vmul.f32 %v4037_v14, %v7438_v17 }
 0x36c   :  { %v4397_v45 = vmul.f32 %v6560_v3, %v8883_v41  ;;  %v4041_v44 = vrot.slane %v4040_v19, 2  ;;  %v3763_v59 = vmul.f32 %v3731_v55, %v7438_v17  ;;  %vm4403_vm0 = vweird.f32 %v6560_v3 }
 0x36d   :  { %v4566_v5 = vmul.f32 %v4502_v16, %v4462_v53  ;;  %v4391_v47 = vmul.f32 %v6558_v62, %v4390_v23  ;;  %v4113_v49 = vadd.f32 1e-05, %v4081_v33  ;;  %vm4404_vm2 = vmor %vm4402_vm1, %vm4403_vm0 }
 0x36e   :  { %v4398_v63 = vmul.f32 %v6560_v3, %v4397_v45  ;;  %v4042_v2 = vadd.f32 %v4041_v44, %v4040_v19  ;;  %v8907_v13 = vsub.f32 %v8871_v50, %v3763_v59 }
 0x36f   :  { %v4670_v11 = vadd.f32 %v4606_v25, %v4566_v5  ;;  %v4395_v1 = vsel %vm4394_vm14, %v6558_v62, %v4391_v47  ;;  %6561 = vrsqrt.f32 %v4113_v49  ;;  %v4761_v62 = vrot.slane %v8889_v40, 3 }
 0x370   :  { %v4463_v7 = vmul.f32 %v4395_v1, %v8801_v21  ;;  %v4399_v0 = vmul.f32 0.5, %v4398_v63  ;;  %v4043_v26 = vrot.slane %v4042_v2, 1  ;;  %v3827_v21 = vmul.f32 %v8907_v13, %v8907_v13 }
 0x371   :  { %v4702_v56 = vmax.f32 %v4670_v11, 0.0  ;;  %v4821_v54 = vsel %vm4768_vm11, %v8889_v40, %v4761_v62  ;;  %vm4412_vm11 = vweird.f32 %v4113_v49  ;;  %v4609_v47 = vperm.slane %v8809_v52, 5 }
 0x372   :  { %v4567_v30 = vmul.f32 %v4503_v18, %v4463_v7  ;;  %v4400_v31 = vsub.f32 1.5, %v4399_v0  ;;  %v4044_v42 = vadd.f32 %v4043_v26, %v4042_v2  ;;  %v4045_v20 = vsel %vm3507_vm6, %v3827_v21, 0.0 }
 0x373   :  { %v4046_v22 = vrot.slane %v4045_v20, 4 }
 0x374   :  { %v4671_v37 = vadd.f32 %v4607_v4, %v4567_v30  ;;  %v4401_v24 = vmul.f32 %v6560_v3, %v4400_v31  ;;  %v4082_v15 = vmul.f32 %v4044_v42, %v7438_v17  ;;  %v4507_v42 = vperm.slane %v8793_v28, 7 }
 0x375   :  { %v6562_v46 = vpop.eup %6561  ;;  %v4047_v39 = vadd.f32 %v4046_v22, %v4045_v20 }
 0x376   :  { %v4703_v61 = vmax.f32 %v4671_v37, 0.0  ;;  %v4114_v12 = vadd.f32 1e-05, %v4082_v15  ;;  %v4405_v34 = vsel %vm4404_vm2, %v6560_v3, %v4401_v24  ;;  %v4407_v60 = vmul.f32 %v6562_v46, %v4113_v49 }
 0x377   :  { %v4464_v43 = vmul.f32 %v4405_v34, %v8830_v57  ;;  %v4048_v36 = vrot.slane %v4047_v39, 2  ;;  %vm4413_vm7 = vweird.f32 %v6562_v46  ;;  %v4505_v57 = vperm.slane %v8793_v28, 5 }
 0x378   :  { %v4721_v50 = vpack.c.bf16 %v4703_v61, %v4702_v56  ;;  %6563 = vrsqrt.f32 %v4114_v12  ;;  %v4408_v38 = vmul.f32 %v6562_v46, %v4407_v60  ;;  %vm4422_vm8 = vweird.f32 %v4114_v12 }
 0x379   :  { %v4049_v32 = vadd.f32 %v4048_v36, %v4047_v39  ;;  %v4568_v48 = vmul.f32 %v4504_v27, %v4464_v43  ;;  %v4610_v56 = vperm.slane %v8809_v52, 6  ;;  %v4611_v15 = vperm.slane %v8809_v52, 7 }
 0x37a   :  { %v4762_v51 = vrot.slane %v4721_v50, 6  ;;  %v4763_v58 = vrot.slane %v4721_v50, 1  ;;  %v4409_v10 = vmul.f32 0.5, %v4408_v38 }
 0x37b   :  { %v4050_v23 = vrot.slane %v4049_v32, 1  ;;  %v4672_v29 = vadd.f32 %v4608_v9, %v4568_v48 }
 0x37c   :  { %v4824_v41 = vsel %vm4772_vm9, %v4762_v51, %v4763_v58  ;;  %v4410_v6 = vsub.f32 1.5, %v4409_v10  ;;  %vm4414_vm9 = vmor %vm4412_vm11, %vm4413_vm7 }
 0x37d   :  { %v8921_v16 = vsel %vm3507_vm6, %v4821_v54, %v4824_v41  ;;  %v4051_v19 = vadd.f32 %v4050_v23, %v4049_v32  ;;  %v4704_v55 = vmax.f32 %v4672_v29, 0.0 }
 0x37e   :  { %v6564_v25 = vpop.eup %6563  ;;  %v4411_v53 = vmul.f32 %v6562_v46, %v4410_v6 }
 0x37f   :  { %v4417_v40 = vmul.f32 %v6564_v25, %v4114_v12  ;;  %v4083_v18 = vmul.f32 %v4051_v19, %v7438_v17  ;;  %vm4423_vm6 = vweird.f32 %v6564_v25  ;;  %v4506_v17 = vperm.slane %v8793_v28, 6 }
 0x380   :  { %v4415_v14 = vsel %vm4414_vm9, %v6562_v46, %v4411_v53  ;;  %vm4424_vm10 = vmor %vm4422_vm8, %vm4423_vm6 }
 0x381   :  { %v4418_v3 = vmul.f32 %v6564_v25, %v4417_v40  ;;  %v4465_v5 = vmul.f32 %v4415_v14, %v8862_v8  ;;  %v4115_v44 = vadd.f32 1e-05, %v4083_v18 }
 0x383   :  { %v4419_v45 = vmul.f32 0.5, %v4418_v3  ;;  %v4569_v33 = vmul.f32 %v4505_v57, %v4465_v5  ;;  %6565 = vrsqrt.f32 %v4115_v44  ;;  %vm4432_vm13 = vweird.f32 %v4115_v44 }
 0x385   :  { %v4673_v11 = vadd.f32 %v4609_v47, %v4569_v33  ;;  %v4420_v1 = vsub.f32 1.5, %v4419_v45 }
 0x387   :  { %v4705_v4 = vmax.f32 %v4673_v11, 0.0  ;;  %v4421_v7 = vmul.f32 %v6564_v25, %v4420_v1 }
 0x389   :  { %v4722_v63 = vpack.c.bf16 %v4705_v4, %v4704_v55  ;;  %v6566_v49 = vpop.eup %6565  ;;  %v4425_v2 = vsel %vm4424_vm10, %v6564_v25, %v4421_v7 }
 0x38a   :  { %v4427_v8 = vmul.f32 %v6566_v49, %v4115_v44  ;;  %v4466_v0 = vmul.f32 %v4425_v2, %v8887_v35  ;;  %vm4433_vm12 = vweird.f32 %v6566_v49 }
 0x38b   :  { %vm4434_vm14 = vmor %vm4432_vm13, %vm4433_vm12  ;;  %v4764_v50 = vrot.slane %v4722_v63, 4  ;;  %v4765_v12 = vrot.slane %v4722_v63, 7 }
 0x38c   :  { %v4428_v59 = vmul.f32 %v6566_v49, %v4427_v8  ;;  %v4570_v31 = vmul.f32 %v4506_v17, %v4466_v0 }
 0x38d   :  { %v4828_v51 = vsel %vm4777_vm15, %v4764_v50, %v4765_v12 }
 0x38e   :  { %v4429_v30 = vmul.f32 0.5, %v4428_v59  ;;  %v4674_v21 = vadd.f32 %v4610_v56, %v4570_v31 }
 0x390   :  { %v4430_v26 = vsub.f32 1.5, %v4429_v30  ;;  %v4706_v20 = vmax.f32 %v4674_v21, 0.0 }
 0x392   :  { %v4431_v37 = vmul.f32 %v6566_v49, %v4430_v26 }
 0x394   :  { %v4435_v24 = vsel %vm4434_vm14, %v6566_v49, %v4431_v37 }
 0x395   :  { %v4467_v61 = vmul.f32 %v4435_v24, %v8907_v13 }
 0x397   :  { %v4571_v35 = vmul.f32 %v4507_v42, %v4467_v61 }
 0x399   :  { %v4675_v46 = vadd.f32 %v4611_v15, %v4571_v35 }
 0x39b   :  { %v4707_v62 = vmax.f32 %v4675_v46, 0.0 }
 0x39d   :  { %v4723_v22 = vpack.c.bf16 %v4707_v62, %v4706_v20 }
 0x39f   :  { %v4766_v34 = vrot.slane %v4723_v22, 2  ;;  %v4767_v60 = vrot.slane %v4723_v22, 5 }
 0x3a1   :  { %v4831_v58 = vsel %vm4781_vm3, %v4766_v34, %v4767_v60 }
 0x3a2   :  { %v4832_v28 = vsel %vm4785_vm4, %v4828_v51, %v4831_v58 }
 0x3a3   :  { %v4833_v13 = vsel %vm4787_vm5, %v8921_v16, %v4832_v28 }
 0x3a4   :  { %4841 = vst [vmem:[%s8952_s10 + $0x18] sm:$0xff] %v4833_v13 }
 0x3a5   :  { %6591 = dma.done.wait [#allocation3], 32  }
 0x3a6   :  { %6592 = vsyncadd [#allocation3], 4294967264 }
 0x3a7   :  { %4861 = vsyncpa [#allocation3], 1 }

</bundles_post_ra>
